<compile_context>
chip_gen: v5e
topology: v5e:2x2
jax: 0.10.0
libtpu: 0.0.40
codegen_flags: <defaults>
</compile_context>

<pallas_src>
from functools import partial

import jax
import jax.numpy as jnp
from jax.experimental import pallas as pl
from jax.experimental.pallas import tpu as pltpu


def _silu(x):
    return x * jax.nn.sigmoid(x)


def _round_up(x, m):
    return ((x + m - 1) // m) * m


def _vmem_budget_bytes():
    try:
        cap = int(pltpu.get_tpu_info().vmem_capacity_bytes)
    except Exception:
        cap = 64 * 1024 * 1024  # v7x-safe fallback
    return max(32 * 1024 * 1024, min(cap * 3 // 4, 100 * 1024 * 1024))


def _pick_chunk_rows(TH, Wp, Cout):
    """Largest divisor of TH whose f32 accumulator chunk stays register-friendly."""
    limit_flat = max(Wp, min(256, (128 * 1024) // max(4 * Cout, 1)))
    cr = 1
    for c in range(1, TH + 1):
        if TH % c == 0 and c * Wp <= limit_flat:
            cr = c
    return cr


# ----------------------------------------------------------------------------
# Kernel 1: fused 1x1 conv (pointwise matmul) + bias + SiLU  (used for n == 0)
# ----------------------------------------------------------------------------
def _pw_conv_silu_kernel(x_ref, w_ref, b_ref, o_ref):
    acc = jnp.dot(x_ref[...], w_ref[...], preferred_element_type=jnp.float32)
    o_ref[...] = _silu(acc + b_ref[...]).astype(o_ref.dtype)


def pointwise_conv_silu(x_nhwc, w_io, bias, *, out_dtype=None, tm=1024):
    N, H, W, Cin = x_nhwc.shape
    Cout = w_io.shape[1]
    if out_dtype is None:
        out_dtype = x_nhwc.dtype
    M = N * H * W

    x2 = x_nhwc.reshape(M, Cin)                      # lane-dense (M, C) view
    tm = max(16, min(tm, _round_up(M, 16)))          # bf16-native (16,128) rows
    b2 = bias.reshape(1, Cout).astype(jnp.float32)

    out = pl.pallas_call(
        _pw_conv_silu_kernel,
        out_shape=jax.ShapeDtypeStruct((M, Cout), out_dtype),
        grid_spec=pltpu.PrefetchScalarGridSpec(
            num_scalar_prefetch=0,
            grid=(pl.cdiv(M, tm),),                  # ragged last block is masked
            in_specs=[
                pl.BlockSpec((tm, Cin), lambda i: (i, 0)),
                pl.BlockSpec((Cin, Cout), lambda i: (0, 0)),   # loaded once
                pl.BlockSpec((1, Cout), lambda i: (0, 0)),     # loaded once
            ],
            out_specs=pl.BlockSpec((tm, Cout), lambda i: (i, 0)),
        ),
        compiler_params=pltpu.CompilerParams(dimension_semantics=("parallel",)),
    )(x2, w_io, b2)
    return out.reshape(N, H, W, Cout)


# ----------------------------------------------------------------------------
# Kernel 2: fused [optional 1x1+SiLU] -> 3x3 "same" conv + bias + SiLU
#           (+ optional residual), spatially tiled over (batch, row bands).
#
#   res_mode: 0 = no residual, 1 = residual read from HBM, 2 = residual = y
#             computed in-kernel (n == 1 fully-fused case).
# ----------------------------------------------------------------------------
def _c1_block_kernel(*refs, TH, W, Wp, CR, fuse_pw, emit_y, res_mode):
    it = iter(refs)
    x_ref, top_ref, bot_ref = next(it), next(it), next(it)
    if fuse_pw:
        w1_ref, b1_ref = next(it), next(it)
    w9_ref, b3_ref = next(it), next(it)
    res_ref = next(it) if res_mode == 1 else None
    o_ref = next(it)
    y_ref = next(it) if emit_y else None
    xp_s = next(it)

    h = pl.program_id(1)
    nh = pl.num_programs(1)
    cdt = xp_s.dtype
    C = xp_s.shape[-1]
    Cout = o_ref.shape[-1]

    cen_x = x_ref[0]            # (TH, W, Cin)
    top_x = top_ref[0, 0]       # (W, Cin)
    bot_x = bot_ref[0, 0]       # (W, Cin)

    cen_y32 = None
    if fuse_pw:
        w1 = w1_ref[...]
        b1 = b1_ref[...]        # (1, Cmid) f32

        def pw(v):              # (..., Cin) -> (rows, Cmid) f32, SiLU applied
            m = v.reshape(-1, v.shape[-1])
            return _silu(jnp.dot(m, w1, preferred_element_type=jnp.float32) + b1)

        cen_y32 = pw(cen_x).reshape(TH, W, C)        # kept f32 for residual
        cen_rows = cen_y32.astype(cdt)
        top_row = pw(top_x).astype(cdt)
        bot_row = pw(bot_x).astype(cdt)
        if emit_y:
            y_ref[...] = cen_y32[None].astype(y_ref.dtype)
    else:
        cen_rows, top_row, bot_row = cen_x, top_x, bot_x

    # Zero-pad in feature space: halo rows outside the image are zero.
    zero_row = jnp.zeros_like(top_row)
    top_row = jnp.where(h > 0, top_row, zero_row)
    bot_row = jnp.where(h < nh - 1, bot_row, zero_row)

    # Scratch fill (padded activations), right-pad layout:
    #   rows 0..TH+1 = [halo above, TH centre rows, halo below]
    #   cols 0..W-1  = data, cols W..Wp-1 = zero pad.
    # Only the small right-pad strip is memset; every data region is rewritten
    # each step (no full-scratch memset, aligned-start block stores).
    xp_s[0:TH + 2, W:Wp, :] = jnp.zeros((TH + 2, Wp - W, C), cdt)
    xp_s[0:1, 0:W, :] = top_row[None]
    xp_s[1:TH + 1, 0:W, :] = cen_rows
    xp_s[TH + 1:TH + 2, 0:W, :] = bot_row[None]

    b3 = b3_ref[...]            # (1, Cout) f32
    n_flat = CR * Wp

    # Chunked 9-tap accumulation: per chunk the f32 accumulator stays small,
    # tap reads are Wp-aligned row-band loads, and the +-1 column shift runs
    # on the XLU via pltpu.roll of the f32 partial (wrapped elements land only
    # in zero-pad / discarded columns, so the result is exact).
    for r0 in range(0, TH, CR):
        acc = jnp.zeros((n_flat, Cout), jnp.float32)
        for dy in range(3):
            win = xp_s[r0 + dy:r0 + dy + CR, :, :].reshape(n_flat, C)
            for dx in range(3):
                part = jnp.dot(win, w9_ref[3 * dy + dx],
                               preferred_element_type=jnp.float32)
                sh = (1 - dx) % n_flat
                if sh:
                    part = pltpu.roll(part, shift=sh, axis=0)
                acc = acc + part
        acc = acc + b3
        y = _silu(acc).reshape(CR, Wp, Cout)[:, :W, :][None]   # (1, CR, W, Cout)
        if res_mode == 1:
            y = y + res_ref[0:1, r0:r0 + CR, :, :].astype(jnp.float32)
        elif res_mode == 2:
            y = y + cen_y32[None, r0:r0 + CR, :, :]
        o_ref[0:1, r0:r0 + CR, :, :] = y.astype(o_ref.dtype)


def conv3x3_block(x_nhwc, w3_hwio, b3, *, pw=None, residual=None,
                  internal_residual=False, emit_y=False,
                  out_dtype=None, compute_dtype=jnp.bfloat16):
    N, H, W, Cin = x_nhwc.shape
    Cmid, Cout = w3_hwio.shape[2], w3_hwio.shape[3]
    fuse_pw = pw is not None
    if not fuse_pw:
        assert Cin == Cmid
    assert not (internal_residual and not fuse_pw)
    assert not (emit_y and not fuse_pw)
    if out_dtype is None:
        out_dtype = x_nhwc.dtype

    budget = _vmem_budget_bytes()
    th_target = 16 if budget >= 90 * 1024 * 1024 else 8
    Wp = _round_up(W + 1, 8)
    cbytes = jnp.dtype(compute_dtype).itemsize
    obytes = jnp.dtype(out_dtype).itemsize

    def vmem_est(TH):
        e = 2 * (TH + 2) * W * Cin * cbytes                 # x + halos (double buf)
        e += 2 * TH * W * Cout * obytes                     # z out (double buf)
        if emit_y:
            e += 2 * TH * W * Cmid * cbytes                 # y out (double buf)
        if residual is not None:
            e += 2 * TH * W * Cout * jnp.dtype(residual.dtype).itemsize
        e += 9 * Cmid * Cout * cbytes + 8 * Cout            # weights + bias
        if fuse_pw:
            e += Cin * Cmid * cbytes + 4 * Cmid
            e += TH * W * Cmid * 4                          # in-kernel f32 y
        e += (TH + 2) * Wp * Cmid * cbytes                  # padded scratch
        e += 2 * TH * Wp * Cout * 4                         # transient f32 temps
        return e

    divisors = [d for d in range(1, min(H, th_target) + 1) if H % d == 0]
    TH = divisors[-1]
    while len(divisors) > 1 and vmem_est(TH) > budget * 3 // 5:
        divisors.pop()
        TH = divisors[-1]
    nh = H // TH
    CR = _pick_chunk_rows(TH, Wp, Cout)

    w9 = w3_hwio.reshape(9, Cmid, Cout).astype(compute_dtype)
    b3v = b3.reshape(1, Cout).astype(jnp.float32)

    res_mode = 1 if residual is not None else (2 if internal_residual else 0)
    kern = partial(_c1_block_kernel, TH=TH, W=W, Wp=Wp, CR=CR,
                   fuse_pw=fuse_pw, emit_y=emit_y, res_mode=res_mode)

    in_specs = [
        pl.BlockSpec((1, TH, W, Cin), lambda n, h: (n, h, 0, 0)),
        pl.BlockSpec((1, 1, W, Cin),
                     lambda n, h: (n, jnp.maximum(h * TH - 1, 0), 0, 0)),
        pl.BlockSpec((1, 1, W, Cin),
                     lambda n, h: (n, jnp.minimum(h * TH + TH, H - 1), 0, 0)),
    ]
    inputs = [x_nhwc, x_nhwc, x_nhwc]
    if fuse_pw:
        w1, b1 = pw
        assert w1.shape == (Cin, Cmid)
        in_specs += [pl.BlockSpec((Cin, Cmid), lambda n, h: (0, 0)),
                     pl.BlockSpec((1, Cmid), lambda n, h: (0, 0))]
        inputs += [w1.astype(compute_dtype),
                   b1.reshape(1, Cmid).astype(jnp.float32)]
    in_specs += [pl.BlockSpec((9, Cmid, Cout), lambda n, h: (0, 0, 0)),
                 pl.BlockSpec((1, Cout), lambda n, h: (0, 0))]
    inputs += [w9, b3v]
    if residual is not None:
        in_specs.append(pl.BlockSpec((1, TH, W, Cout), lambda n, h: (n, h, 0, 0)))
        inputs.append(residual)

    out_shape = [jax.ShapeDtypeStruct((N, H, W, Cout), out_dtype)]
    out_specs = [pl.BlockSpec((1, TH, W, Cout), lambda n, h: (n, h, 0, 0))]
    if emit_y:
        out_shape.append(jax.ShapeDtypeStruct((N, H, W, Cmid), compute_dtype))
        out_specs.append(pl.BlockSpec((1, TH, W, Cmid), lambda n, h: (n, h, 0, 0)))

    return pl.pallas_call(
        kern,
        out_shape=tuple(out_shape) if emit_y else out_shape[0],
        grid_spec=pltpu.PrefetchScalarGridSpec(
            num_scalar_prefetch=0,
            grid=(N, nh),
            in_specs=in_specs,
            out_specs=out_specs if emit_y else out_specs[0],
            scratch_shapes=[pltpu.VMEM((TH + 2, Wp, Cmid), compute_dtype)],
        ),
        compiler_params=pltpu.CompilerParams(
            dimension_semantics=("parallel", "parallel"),
            vmem_limit_bytes=int(budget),
        ),
    )(*inputs)


# ----------------------------------------------------------------------------
# Parameter setup (deterministic) + BN folding
# ----------------------------------------------------------------------------
def _fold_bn(w_oihw, gamma, beta, mean, var, eps=1e-3):
    scale = gamma / jnp.sqrt(var + eps)
    w = w_oihw * scale[:, None, None, None]
    b = beta - mean * scale
    return w, b


def init_c1_params(key, c1, c2, n=1):
    keys = jax.random.split(key, 2 + 5 * n + 5)
    ki = iter(keys)

    # cv1: Conv2d(c1, c2, 1, bias=False) + BN(c2)
    w1 = jax.random.normal(next(ki), (c2, c1, 1, 1), jnp.float32) * 0.1
    g1 = 1.0 + 0.1 * jax.random.normal(next(ki), (c2,), jnp.float32)
    b1 = 0.1 * jax.random.normal(next(ki), (c2,), jnp.float32)
    m1 = 0.1 * jax.random.normal(next(ki), (c2,), jnp.float32)
    v1 = 1.0 + 0.1 * jax.random.uniform(next(ki), (c2,), jnp.float32)
    w1f, b1f = _fold_bn(w1, g1, b1, m1, v1)
    w1_io = w1f[:, :, 0, 0].T  # (c1, c2)

    # m: n x [Conv2d(c2, c2, 3, pad=1, bias=False) + BN(c2)]
    m_params = []
    for _ in range(n):
        w3 = jax.random.normal(next(ki), (c2, c2, 3, 3), jnp.float32) * 0.1
        g3 = 1.0 + 0.1 * jax.random.normal(next(ki), (c2,), jnp.float32)
        be3 = 0.1 * jax.random.normal(next(ki), (c2,), jnp.float32)
        m3 = 0.1 * jax.random.normal(next(ki), (c2,), jnp.float32)
        v3 = 1.0 + 0.1 * jax.random.uniform(next(ki), (c2,), jnp.float32)
        w3f, b3f = _fold_bn(w3, g3, be3, m3, v3)
        w3_hwio = jnp.transpose(w3f, (2, 3, 1, 0))  # OIHW -> HWIO
        m_params.append((w3_hwio, b3f))

    return {"w1": w1_io, "b1": b1f, "m": m_params}


# ----------------------------------------------------------------------------
# C1 forward
# ----------------------------------------------------------------------------
def c1_forward(x_nchw, params, *, compute_dtype=jnp.bfloat16):
    out_dtype = x_nchw.dtype
    x = jnp.transpose(x_nchw, (0, 2, 3, 1)).astype(compute_dtype)  # NCHW -> NHWC
    w1, b1 = params["w1"], params["b1"]
    m = params["m"]
    n = len(m)

    if n == 0:  # Sequential() is identity -> out = y + y
        y = pointwise_conv_silu(x, w1.astype(compute_dtype), b1,
                                out_dtype=jnp.float32)
        z = (y + y).astype(out_dtype)
        return jnp.transpose(z, (0, 3, 1, 2))

    w3_0, b3_0 = m[0]
    if n == 1:
        # Fully fused: cv1 + 3x3 + residual in one kernel; y never hits HBM.
        z = conv3x3_block(x, w3_0, b3_0, pw=(w1, b1), internal_residual=True,
                          out_dtype=out_dtype, compute_dtype=compute_dtype)
    else:
        # First layer fuses cv1 and emits y for the final fused residual.
        z, y = conv3x3_block(x, w3_0, b3_0, pw=(w1, b1), emit_y=True,
                             out_dtype=compute_dtype, compute_dtype=compute_dtype)
        for i in range(1, n):
            w3, b3 = m[i]
            last = i == n - 1
            z = conv3x3_block(z, w3, b3,
                              residual=y if last else None,
                              out_dtype=out_dtype if last else compute_dtype,
                              compute_dtype=compute_dtype)
    return jnp.transpose(z, (0, 3, 1, 2))  # NHWC -> NCHW


# Pure-JAX f32 reference for the correctness check.
def c1_reference(x_nchw, params):
    x = jnp.transpose(x_nchw, (0, 2, 3, 1))
    y = _silu(
        jnp.einsum("nhwc,cd->nhwd", x, params["w1"],
                   precision=jax.lax.Precision.HIGHEST)
        + params["b1"]
    )
    z = y
    for w_hwio, b in params["m"]:
        z = _silu(
            jax.lax.conv_general_dilated(
                z, w_hwio, (1, 1), "SAME",
                dimension_numbers=("NHWC", "HWIO", "NHWC"),
                precision=jax.lax.Precision.HIGHEST,
            )
            + b
        )
    return jnp.transpose(z + y, (0, 3, 1, 2))


if __name__ == "__main__":
    key = jax.random.PRNGKey(0)
    kx, kp = jax.random.split(key)

    N, c_in, c_out, H, W, n = 2, 4, 8, 16, 16, 2
    x = jax.random.normal(kx, (N, c_in, H, W), jnp.float32)

    # n = 2: fused first layer (emits y) + plain layer with fused residual.
    params = init_c1_params(kp, c_in, c_out, n)
    out = jax.block_until_ready(c1_forward(x, params))
    ref = jax.block_until_ready(c1_reference(x, params))
    assert out.shape == (N, c_out, H, W)
    assert jnp.allclose(out, ref, rtol=2e-2, atol=2e-2), "mismatch vs reference (n=2)"

    # n = 1 (module default): fully fused cv1 + 3x3 + residual kernel.
    params1 = init_c1_params(kp, c_in, c_out, 1)
    out1 = jax.block_until_ready(c1_forward(x, params1))
    ref1 = jax.block_until_ready(c1_reference(x, params1))
    assert jnp.allclose(out1, ref1, rtol=2e-2, atol=2e-2), "mismatch vs reference (n=1)"

    print("KERNEL_OK")
</pallas_src>

<mosaic_0001>
module attributes {stable_mosaic.version = 11 : i64} {
  func.func @_c1_block_kernel(%arg0: i32, %arg1: i32, %arg2: memref<1x8x16x4xbf16, #tpu.memory_space<vmem>>, %arg3: memref<1x1x16x4xbf16, #tpu.memory_space<vmem>>, %arg4: memref<1x1x16x4xbf16, #tpu.memory_space<vmem>>, %arg5: memref<4x8xbf16, #tpu.memory_space<vmem>>, %arg6: memref<1x8xf32, #tpu.memory_space<vmem>>, %arg7: memref<9x8x8xbf16, #tpu.memory_space<vmem>>, %arg8: memref<1x8xf32, #tpu.memory_space<vmem>>, %arg9: memref<1x8x16x8xbf16, #tpu.memory_space<vmem>>, %arg10: memref<1x8x16x8xbf16, #tpu.memory_space<vmem>>, %arg11: memref<10x24x8xbf16, #tpu.memory_space<vmem>>) attributes {dimension_semantics = [#tpu.dimension_semantics<parallel>, #tpu.dimension_semantics<parallel>], iteration_bounds = array<i64: 2, 2>, scalar_prefetch = 0 : i64, scratch_operands = 1 : i64, tpu.core_type = #tpu.core_type<tc>, window_params = [{transform_indices = @transform_0, window_bounds = array<i64: 1, 8, 16, 4>}, {transform_indices = @transform_1, window_bounds = array<i64: 1, 1, 16, 4>}, {transform_indices = @transform_2, window_bounds = array<i64: 1, 1, 16, 4>}, {pipeline_mode = #tpu.pipeline_mode<synchronous>, transform_indices = @transform_3, window_bounds = array<i64: 4, 8>}, {pipeline_mode = #tpu.pipeline_mode<synchronous>, transform_indices = @transform_4, window_bounds = array<i64: 1, 8>}, {pipeline_mode = #tpu.pipeline_mode<synchronous>, transform_indices = @transform_5, window_bounds = array<i64: 9, 8, 8>}, {pipeline_mode = #tpu.pipeline_mode<synchronous>, transform_indices = @transform_6, window_bounds = array<i64: 1, 8>}, {transform_indices = @transform_7, window_bounds = array<i64: 1, 8, 16, 8>}, {transform_indices = @transform_8, window_bounds = array<i64: 1, 8, 16, 8>}]} {
    %c0 = arith.constant 0 : index
    %c0_0 = arith.constant 0 : index
    %c0_1 = arith.constant 0 : index
    %c0_2 = arith.constant 0 : index
    %0 = vector.load %arg2[%c0, %c0_0, %c0_1, %c0_2] : memref<1x8x16x4xbf16, #tpu.memory_space<vmem>>, vector<1x8x16x4xbf16>
    %1 = vector.shape_cast %0 : vector<1x8x16x4xbf16> to vector<8x16x4xbf16>
    %c0_3 = arith.constant 0 : index
    %c0_4 = arith.constant 0 : index
    %c0_5 = arith.constant 0 : index
    %c0_6 = arith.constant 0 : index
    %2 = vector.load %arg3[%c0_3, %c0_4, %c0_5, %c0_6] : memref<1x1x16x4xbf16, #tpu.memory_space<vmem>>, vector<1x1x16x4xbf16>
    %3 = vector.shape_cast %2 : vector<1x1x16x4xbf16> to vector<16x4xbf16>
    %c0_7 = arith.constant 0 : index
    %c0_8 = arith.constant 0 : index
    %c0_9 = arith.constant 0 : index
    %c0_10 = arith.constant 0 : index
    %4 = vector.load %arg4[%c0_7, %c0_8, %c0_9, %c0_10] : memref<1x1x16x4xbf16, #tpu.memory_space<vmem>>, vector<1x1x16x4xbf16>
    %5 = vector.shape_cast %4 : vector<1x1x16x4xbf16> to vector<16x4xbf16>
    %c0_11 = arith.constant 0 : index
    %c0_12 = arith.constant 0 : index
    %6 = vector.load %arg5[%c0_11, %c0_12] : memref<4x8xbf16, #tpu.memory_space<vmem>>, vector<4x8xbf16>
    %c0_13 = arith.constant 0 : index
    %c0_14 = arith.constant 0 : index
    %7 = vector.load %arg6[%c0_13, %c0_14] : memref<1x8xf32, #tpu.memory_space<vmem>>, vector<1x8xf32>
    %8 = vector.shape_cast %1 : vector<8x16x4xbf16> to vector<128x4xbf16>
    %cst = arith.constant dense<0.000000e+00> : vector<128x8xf32>
    %9 = tpu.matmul %8, %6, %cst {dimension_numbers = #tpu.dot_dimension_numbers<[1], [0], [0], [1], [0, 0, 1, 1], [], []>} : vector<128x4xbf16>, vector<4x8xbf16>, vector<128x8xf32> -> vector<128x8xf32>
    %10 = vector.broadcast %7 : vector<1x8xf32> to vector<128x8xf32>
    %11 = arith.addf %9, %10 : vector<128x8xf32>
    %12 = arith.negf %11 : vector<128x8xf32>
    %13 = math.exp %12 : vector<128x8xf32>
    %cst_15 = arith.constant 1.000000e+00 : f32
    %14 = vector.broadcast %cst_15 : f32 to vector<128x8xf32>
    %15 = arith.addf %14, %13 : vector<128x8xf32>
    %16 = arith.divf %14, %15 : vector<128x8xf32>
    %17 = arith.mulf %11, %16 : vector<128x8xf32>
    %18 = vector.shape_cast %17 : vector<128x8xf32> to vector<8x16x8xf32>
    %19 = arith.truncf %18 : vector<8x16x8xf32> to vector<8x16x8xbf16>
    %cst_16 = arith.constant dense<0.000000e+00> : vector<16x8xf32>
    %20 = tpu.matmul %3, %6, %cst_16 {dimension_numbers = #tpu.dot_dimension_numbers<[1], [0], [0], [1], [0, 0, 1, 1], [], []>} : vector<16x4xbf16>, vector<4x8xbf16>, vector<16x8xf32> -> vector<16x8xf32>
    %21 = vector.broadcast %7 : vector<1x8xf32> to vector<16x8xf32>
    %22 = arith.addf %20, %21 : vector<16x8xf32>
    %23 = arith.negf %22 : vector<16x8xf32>
    %24 = math.exp %23 : vector<16x8xf32>
    %cst_17 = arith.constant 1.000000e+00 : f32
    %25 = vector.broadcast %cst_17 : f32 to vector<16x8xf32>
    %26 = arith.addf %25, %24 : vector<16x8xf32>
    %27 = arith.divf %25, %26 : vector<16x8xf32>
    %28 = arith.mulf %22, %27 : vector<16x8xf32>
    %29 = arith.truncf %28 : vector<16x8xf32> to vector<16x8xbf16>
    %cst_18 = arith.constant dense<0.000000e+00> : vector<16x8xf32>
    %30 = tpu.matmul %5, %6, %cst_18 {dimension_numbers = #tpu.dot_dimension_numbers<[1], [0], [0], [1], [0, 0, 1, 1], [], []>} : vector<16x4xbf16>, vector<4x8xbf16>, vector<16x8xf32> -> vector<16x8xf32>
    %31 = vector.broadcast %7 : vector<1x8xf32> to vector<16x8xf32>
    %32 = arith.addf %30, %31 : vector<16x8xf32>
    %33 = arith.negf %32 : vector<16x8xf32>
    %34 = math.exp %33 : vector<16x8xf32>
    %cst_19 = arith.constant 1.000000e+00 : f32
    %35 = vector.broadcast %cst_19 : f32 to vector<16x8xf32>
    %36 = arith.addf %35, %34 : vector<16x8xf32>
    %37 = arith.divf %35, %36 : vector<16x8xf32>
    %38 = arith.mulf %32, %37 : vector<16x8xf32>
    %39 = arith.truncf %38 : vector<16x8xf32> to vector<16x8xbf16>
    %40 = vector.shape_cast %18 : vector<8x16x8xf32> to vector<1x8x16x8xf32>
    %41 = arith.truncf %40 : vector<1x8x16x8xf32> to vector<1x8x16x8xbf16>
    %c0_20 = arith.constant 0 : index
    %c0_21 = arith.constant 0 : index
    %c0_22 = arith.constant 0 : index
    %c0_23 = arith.constant 0 : index
    %42 = vector.load %arg10[%c0_20, %c0_21, %c0_22, %c0_23] : memref<1x8x16x8xbf16, #tpu.memory_space<vmem>>, vector<1x8x16x8xbf16>
    tpu.vector_store %arg10[%c0_20, %c0_21, %c0_22, %c0_23], %41 {strides = array<i32>} : memref<1x8x16x8xbf16, #tpu.memory_space<vmem>>, vector<1x8x16x8xbf16>,
    %cst_24 = arith.constant 0.000000e+00 : bf16
    %43 = vector.broadcast %cst_24 : bf16 to vector<16x8xbf16>
    %c0_i32 = arith.constant 0 : i32
    %44 = arith.cmpi sgt, %arg1, %c0_i32 : i32
    %45 = arith.select %44, %29, %43 : vector<16x8xbf16>
    %c1_i32 = arith.constant 1 : i32
    %46 = arith.cmpi slt, %arg1, %c1_i32 : i32
    %47 = arith.select %46, %39, %43 : vector<16x8xbf16>
    %cst_25 = arith.constant 0.000000e+00 : bf16
    %48 = vector.broadcast %cst_25 : bf16 to vector<10x8x8xbf16>
    %c0_26 = arith.constant 0 : index
    %c16 = arith.constant 16 : index
    %c0_27 = arith.constant 0 : index
    %49 = vector.load %arg11[%c0_26, %c16, %c0_27] : memref<10x24x8xbf16, #tpu.memory_space<vmem>>, vector<10x8x8xbf16>
    tpu.vector_store %arg11[%c0_26, %c16, %c0_27], %48 {strides = array<i32>} : memref<10x24x8xbf16, #tpu.memory_space<vmem>>, vector<10x8x8xbf16>,
    %50 = vector.shape_cast %45 : vector<16x8xbf16> to vector<1x16x8xbf16>
    %c0_28 = arith.constant 0 : index
    %c0_29 = arith.constant 0 : index
    %c0_30 = arith.constant 0 : index
    %51 = vector.load %arg11[%c0_28, %c0_29, %c0_30] : memref<10x24x8xbf16, #tpu.memory_space<vmem>>, vector<1x16x8xbf16>
    tpu.vector_store %arg11[%c0_28, %c0_29, %c0_30], %50 {strides = array<i32>} : memref<10x24x8xbf16, #tpu.memory_space<vmem>>, vector<1x16x8xbf16>,
    %c1 = arith.constant 1 : index
    %c0_31 = arith.constant 0 : index
    %c0_32 = arith.constant 0 : index
    %52 = vector.load %arg11[%c1, %c0_31, %c0_32] : memref<10x24x8xbf16, #tpu.memory_space<vmem>>, vector<8x16x8xbf16>
    tpu.vector_store %arg11[%c1, %c0_31, %c0_32], %19 {strides = array<i32>} : memref<10x24x8xbf16, #tpu.memory_space<vmem>>, vector<8x16x8xbf16>,
    %53 = vector.shape_cast %47 : vector<16x8xbf16> to vector<1x16x8xbf16>
    %c9 = arith.constant 9 : index
    %c0_33 = arith.constant 0 : index
    %c0_34 = arith.constant 0 : index
    %54 = vector.load %arg11[%c9, %c0_33, %c0_34] : memref<10x24x8xbf16, #tpu.memory_space<vmem>>, vector<1x16x8xbf16>
    tpu.vector_store %arg11[%c9, %c0_33, %c0_34], %53 {strides = array<i32>} : memref<10x24x8xbf16, #tpu.memory_space<vmem>>, vector<1x16x8xbf16>,
    %c0_35 = arith.constant 0 : index
    %c0_36 = arith.constant 0 : index
    %55 = vector.load %arg8[%c0_35, %c0_36] : memref<1x8xf32, #tpu.memory_space<vmem>>, vector<1x8xf32>
    %cst_37 = arith.constant 0.000000e+00 : f32
    %56 = vector.broadcast %cst_37 : f32 to vector<192x8xf32>
    %c0_38 = arith.constant 0 : index
    %c0_39 = arith.constant 0 : index
    %c0_40 = arith.constant 0 : index
    %57 = vector.load %arg11[%c0_38, %c0_39, %c0_40] : memref<10x24x8xbf16, #tpu.memory_space<vmem>>, vector<8x24x8xbf16>
    %58 = vector.shape_cast %57 : vector<8x24x8xbf16> to vector<192x8xbf16>
    %c0_41 = arith.constant 0 : index
    %c0_42 = arith.constant 0 : index
    %c0_43 = arith.constant 0 : index
    %59 = vector.load %arg7[%c0_41, %c0_42, %c0_43] : memref<9x8x8xbf16, #tpu.memory_space<vmem>>, vector<1x8x8xbf16>
    %60 = vector.shape_cast %59 : vector<1x8x8xbf16> to vector<8x8xbf16>
    %cst_44 = arith.constant dense<0.000000e+00> : vector<192x8xf32>
    %61 = tpu.matmul %58, %60, %cst_44 {dimension_numbers = #tpu.dot_dimension_numbers<[1], [0], [0], [1], [0, 0, 1, 1], [], []>} : vector<192x8xbf16>, vector<8x8xbf16>, vector<192x8xf32> -> vector<192x8xf32>
    %c1_i32_45 = arith.constant 1 : i32
    %62 = tpu.dynamic_rotate %61 by %c1_i32_45 dim 0 : vector<192x8xf32>, i32 -> vector<192x8xf32>
    %63 = arith.addf %56, %62 : vector<192x8xf32>
    %c1_46 = arith.constant 1 : index
    %c0_47 = arith.constant 0 : index
    %c0_48 = arith.constant 0 : index
    %64 = vector.load %arg7[%c1_46, %c0_47, %c0_48] : memref<9x8x8xbf16, #tpu.memory_space<vmem>>, vector<1x8x8xbf16>
    %65 = vector.shape_cast %64 : vector<1x8x8xbf16> to vector<8x8xbf16>
    %cst_49 = arith.constant dense<0.000000e+00> : vector<192x8xf32>
    %66 = tpu.matmul %58, %65, %cst_49 {dimension_numbers = #tpu.dot_dimension_numbers<[1], [0], [0], [1], [0, 0, 1, 1], [], []>} : vector<192x8xbf16>, vector<8x8xbf16>, vector<192x8xf32> -> vector<192x8xf32>
    %67 = arith.addf %63, %66 : vector<192x8xf32>
    %c2 = arith.constant 2 : index
    %c0_50 = arith.constant 0 : index
    %c0_51 = arith.constant 0 : index
    %68 = vector.load %arg7[%c2, %c0_50, %c0_51] : memref<9x8x8xbf16, #tpu.memory_space<vmem>>, vector<1x8x8xbf16>
    %69 = vector.shape_cast %68 : vector<1x8x8xbf16> to vector<8x8xbf16>
    %cst_52 = arith.constant dense<0.000000e+00> : vector<192x8xf32>
    %70 = tpu.matmul %58, %69, %cst_52 {dimension_numbers = #tpu.dot_dimension_numbers<[1], [0], [0], [1], [0, 0, 1, 1], [], []>} : vector<192x8xbf16>, vector<8x8xbf16>, vector<192x8xf32> -> vector<192x8xf32>
    %c191_i32 = arith.constant 191 : i32
    %71 = tpu.dynamic_rotate %70 by %c191_i32 dim 0 : vector<192x8xf32>, i32 -> vector<192x8xf32>
    %72 = arith.addf %67, %71 : vector<192x8xf32>
    %c1_53 = arith.constant 1 : index
    %c0_54 = arith.constant 0 : index
    %c0_55 = arith.constant 0 : index
    %73 = vector.load %arg11[%c1_53, %c0_54, %c0_55] : memref<10x24x8xbf16, #tpu.memory_space<vmem>>, vector<8x24x8xbf16>
    %74 = vector.shape_cast %73 : vector<8x24x8xbf16> to vector<192x8xbf16>
    %c3 = arith.constant 3 : index
    %c0_56 = arith.constant 0 : index
    %c0_57 = arith.constant 0 : index
    %75 = vector.load %arg7[%c3, %c0_56, %c0_57] : memref<9x8x8xbf16, #tpu.memory_space<vmem>>, vector<1x8x8xbf16>
    %76 = vector.shape_cast %75 : vector<1x8x8xbf16> to vector<8x8xbf16>
    %cst_58 = arith.constant dense<0.000000e+00> : vector<192x8xf32>
    %77 = tpu.matmul %74, %76, %cst_58 {dimension_numbers = #tpu.dot_dimension_numbers<[1], [0], [0], [1], [0, 0, 1, 1], [], []>} : vector<192x8xbf16>, vector<8x8xbf16>, vector<192x8xf32> -> vector<192x8xf32>
    %c1_i32_59 = arith.constant 1 : i32
    %78 = tpu.dynamic_rotate %77 by %c1_i32_59 dim 0 : vector<192x8xf32>, i32 -> vector<192x8xf32>
    %79 = arith.addf %72, %78 : vector<192x8xf32>
    %c4 = arith.constant 4 : index
    %c0_60 = arith.constant 0 : index
    %c0_61 = arith.constant 0 : index
    %80 = vector.load %arg7[%c4, %c0_60, %c0_61] : memref<9x8x8xbf16, #tpu.memory_space<vmem>>, vector<1x8x8xbf16>
    %81 = vector.shape_cast %80 : vector<1x8x8xbf16> to vector<8x8xbf16>
    %cst_62 = arith.constant dense<0.000000e+00> : vector<192x8xf32>
    %82 = tpu.matmul %74, %81, %cst_62 {dimension_numbers = #tpu.dot_dimension_numbers<[1], [0], [0], [1], [0, 0, 1, 1], [], []>} : vector<192x8xbf16>, vector<8x8xbf16>, vector<192x8xf32> -> vector<192x8xf32>
    %83 = arith.addf %79, %82 : vector<192x8xf32>
    %c5 = arith.constant 5 : index
    %c0_63 = arith.constant 0 : index
    %c0_64 = arith.constant 0 : index
    %84 = vector.load %arg7[%c5, %c0_63, %c0_64] : memref<9x8x8xbf16, #tpu.memory_space<vmem>>, vector<1x8x8xbf16>
    %85 = vector.shape_cast %84 : vector<1x8x8xbf16> to vector<8x8xbf16>
    %cst_65 = arith.constant dense<0.000000e+00> : vector<192x8xf32>
    %86 = tpu.matmul %74, %85, %cst_65 {dimension_numbers = #tpu.dot_dimension_numbers<[1], [0], [0], [1], [0, 0, 1, 1], [], []>} : vector<192x8xbf16>, vector<8x8xbf16>, vector<192x8xf32> -> vector<192x8xf32>
    %c191_i32_66 = arith.constant 191 : i32
    %87 = tpu.dynamic_rotate %86 by %c191_i32_66 dim 0 : vector<192x8xf32>, i32 -> vector<192x8xf32>
    %88 = arith.addf %83, %87 : vector<192x8xf32>
    %c2_67 = arith.constant 2 : index
    %c0_68 = arith.constant 0 : index
    %c0_69 = arith.constant 0 : index
    %89 = vector.load %arg11[%c2_67, %c0_68, %c0_69] : memref<10x24x8xbf16, #tpu.memory_space<vmem>>, vector<8x24x8xbf16>
    %90 = vector.shape_cast %89 : vector<8x24x8xbf16> to vector<192x8xbf16>
    %c6 = arith.constant 6 : index
    %c0_70 = arith.constant 0 : index
    %c0_71 = arith.constant 0 : index
    %91 = vector.load %arg7[%c6, %c0_70, %c0_71] : memref<9x8x8xbf16, #tpu.memory_space<vmem>>, vector<1x8x8xbf16>
    %92 = vector.shape_cast %91 : vector<1x8x8xbf16> to vector<8x8xbf16>
    %cst_72 = arith.constant dense<0.000000e+00> : vector<192x8xf32>
    %93 = tpu.matmul %90, %92, %cst_72 {dimension_numbers = #tpu.dot_dimension_numbers<[1], [0], [0], [1], [0, 0, 1, 1], [], []>} : vector<192x8xbf16>, vector<8x8xbf16>, vector<192x8xf32> -> vector<192x8xf32>
    %c1_i32_73 = arith.constant 1 : i32
    %94 = tpu.dynamic_rotate %93 by %c1_i32_73 dim 0 : vector<192x8xf32>, i32 -> vector<192x8xf32>
    %95 = arith.addf %88, %94 : vector<192x8xf32>
    %c7 = arith.constant 7 : index
    %c0_74 = arith.constant 0 : index
    %c0_75 = arith.constant 0 : index
    %96 = vector.load %arg7[%c7, %c0_74, %c0_75] : memref<9x8x8xbf16, #tpu.memory_space<vmem>>, vector<1x8x8xbf16>
    %97 = vector.shape_cast %96 : vector<1x8x8xbf16> to vector<8x8xbf16>
    %cst_76 = arith.constant dense<0.000000e+00> : vector<192x8xf32>
    %98 = tpu.matmul %90, %97, %cst_76 {dimension_numbers = #tpu.dot_dimension_numbers<[1], [0], [0], [1], [0, 0, 1, 1], [], []>} : vector<192x8xbf16>, vector<8x8xbf16>, vector<192x8xf32> -> vector<192x8xf32>
    %99 = arith.addf %95, %98 : vector<192x8xf32>
    %c8 = arith.constant 8 : index
    %c0_77 = arith.constant 0 : index
    %c0_78 = arith.constant 0 : index
    %100 = vector.load %arg7[%c8, %c0_77, %c0_78] : memref<9x8x8xbf16, #tpu.memory_space<vmem>>, vector<1x8x8xbf16>
    %101 = vector.shape_cast %100 : vector<1x8x8xbf16> to vector<8x8xbf16>
    %cst_79 = arith.constant dense<0.000000e+00> : vector<192x8xf32>
    %102 = tpu.matmul %90, %101, %cst_79 {dimension_numbers = #tpu.dot_dimension_numbers<[1], [0], [0], [1], [0, 0, 1, 1], [], []>} : vector<192x8xbf16>, vector<8x8xbf16>, vector<192x8xf32> -> vector<192x8xf32>
    %c191_i32_80 = arith.constant 191 : i32
    %103 = tpu.dynamic_rotate %102 by %c191_i32_80 dim 0 : vector<192x8xf32>, i32 -> vector<192x8xf32>
    %104 = arith.addf %99, %103 : vector<192x8xf32>
    %105 = vector.broadcast %55 : vector<1x8xf32> to vector<192x8xf32>
    %106 = arith.addf %104, %105 : vector<192x8xf32>
    %107 = arith.negf %106 : vector<192x8xf32>
    %108 = math.exp %107 : vector<192x8xf32>
    %cst_81 = arith.constant 1.000000e+00 : f32
    %109 = vector.broadcast %cst_81 : f32 to vector<192x8xf32>
    %110 = arith.addf %109, %108 : vector<192x8xf32>
    %111 = arith.divf %109, %110 : vector<192x8xf32>
    %112 = arith.mulf %106, %111 : vector<192x8xf32>
    %113 = vector.shape_cast %112 : vector<192x8xf32> to vector<8x24x8xf32>
    %114 = vector.extract_strided_slice %113 {offsets = [0, 0, 0], sizes = [8, 16, 8], strides = [1, 1, 1]} : vector<8x24x8xf32> to vector<8x16x8xf32>
    %115 = vector.shape_cast %114 : vector<8x16x8xf32> to vector<1x8x16x8xf32>
    %116 = arith.truncf %115 : vector<1x8x16x8xf32> to vector<1x8x16x8xbf16>
    %c0_82 = arith.constant 0 : index
    %c0_83 = arith.constant 0 : index
    %c0_84 = arith.constant 0 : index
    %c0_85 = arith.constant 0 : index
    %117 = vector.load %arg9[%c0_82, %c0_83, %c0_84, %c0_85] : memref<1x8x16x8xbf16, #tpu.memory_space<vmem>>, vector<1x8x16x8xbf16>
    tpu.vector_store %arg9[%c0_82, %c0_83, %c0_84, %c0_85], %116 {strides = array<i32>} : memref<1x8x16x8xbf16, #tpu.memory_space<vmem>>, vector<1x8x16x8xbf16>,
    return
  }
  func.func @transform_0(%arg0: i32, %arg1: i32) -> (i32, i32, i32, i32) {
    %c0_i32 = arith.constant 0 : i32
    %c0_i32_0 = arith.constant 0 : i32
    %c0_i32_1 = arith.constant 0 : i32
    return %arg0, %arg1, %c0_i32, %c0_i32_0 : i32, i32, i32, i32
  }
  func.func @transform_1(%arg0: i32, %arg1: i32) -> (i32, i32, i32, i32) {
    %c8_i32 = arith.constant 8 : i32
    %0 = arith.muli %arg1, %c8_i32 : i32
    %c1_i32 = arith.constant 1 : i32
    %1 = arith.subi %0, %c1_i32 : i32
    %c0_i32 = arith.constant 0 : i32
    %2 = arith.maxsi %1, %c0_i32 : i32
    %c0_i32_0 = arith.constant 0 : i32
    %c0_i32_1 = arith.constant 0 : i32
    %c0_i32_2 = arith.constant 0 : i32
    return %arg0, %2, %c0_i32_0, %c0_i32_1 : i32, i32, i32, i32
  }
  func.func @transform_2(%arg0: i32, %arg1: i32) -> (i32, i32, i32, i32) {
    %c8_i32 = arith.constant 8 : i32
    %0 = arith.muli %arg1, %c8_i32 : i32
    %c8_i32_0 = arith.constant 8 : i32
    %1 = arith.addi %0, %c8_i32_0 : i32
    %c15_i32 = arith.constant 15 : i32
    %2 = arith.minsi %1, %c15_i32 : i32
    %c0_i32 = arith.constant 0 : i32
    %c0_i32_1 = arith.constant 0 : i32
    %c0_i32_2 = arith.constant 0 : i32
    return %arg0, %2, %c0_i32, %c0_i32_1 : i32, i32, i32, i32
  }
  func.func @transform_3(%arg0: i32, %arg1: i32) -> (i32, i32) {
    %c0_i32 = arith.constant 0 : i32
    %c0_i32_0 = arith.constant 0 : i32
    %c0_i32_1 = arith.constant 0 : i32
    return %c0_i32, %c0_i32_0 : i32, i32
  }
  func.func @transform_4(%arg0: i32, %arg1: i32) -> (i32, i32) {
    %c0_i32 = arith.constant 0 : i32
    %c0_i32_0 = arith.constant 0 : i32
    %c0_i32_1 = arith.constant 0 : i32
    return %c0_i32, %c0_i32_0 : i32, i32
  }
  func.func @transform_5(%arg0: i32, %arg1: i32) -> (i32, i32, i32) {
    %c0_i32 = arith.constant 0 : i32
    %c0_i32_0 = arith.constant 0 : i32
    %c0_i32_1 = arith.constant 0 : i32
    %c0_i32_2 = arith.constant 0 : i32
    return %c0_i32, %c0_i32_0, %c0_i32_1 : i32, i32, i32
  }
  func.func @transform_6(%arg0: i32, %arg1: i32) -> (i32, i32) {
    %c0_i32 = arith.constant 0 : i32
    %c0_i32_0 = arith.constant 0 : i32
    %c0_i32_1 = arith.constant 0 : i32
    return %c0_i32, %c0_i32_0 : i32, i32
  }
  func.func @transform_7(%arg0: i32, %arg1: i32) -> (i32, i32, i32, i32) {
    %c0_i32 = arith.constant 0 : i32
    %c0_i32_0 = arith.constant 0 : i32
    %c0_i32_1 = arith.constant 0 : i32
    return %arg0, %arg1, %c0_i32, %c0_i32_0 : i32, i32, i32, i32
  }
  func.func @transform_8(%arg0: i32, %arg1: i32) -> (i32, i32, i32, i32) {
    %c0_i32 = arith.constant 0 : i32
    %c0_i32_0 = arith.constant 0 : i32
    %c0_i32_1 = arith.constant 0 : i32
    return %arg0, %arg1, %c0_i32, %c0_i32_0 : i32, i32, i32, i32
  }
}

</mosaic_0001>

<bundles_post_ra>
// kernel: tpu_custom_call.1
= control target key start
LH: loop header
LB: loop body
LE: loop exit
PB: predicated region body
PF: predicated region fallthrough
CT: control target
= control target key end

     0   :  { %s3846_s27 = smov 0   ;;  %s3848_s28 = smov 0   ;;  %s5344_s0 = inlined_call_operand.vmem [shape: bf16[2,16,16,4], index: 0, kind: input, shape index: {}]   ;;  %s5345_s1 = inlined_call_operand.vmem [shape: bf16[2,16,16,4], index: 1, kind: input, shape index: {}]   ;;  %s5346_s2 = inlined_call_operand.vmem [shape: bf16[2,16,16,4], index: 2, kind: input, shape index: {}]   ;;  %s5347_s3 = inlined_call_operand.vmem [shape: bf16[4,8], index: 3, kind: input, shape index: {}]   ;;  %s5348_s4 = inlined_call_operand.vmem [shape: f32[1,8], index: 4, kind: input, shape index: {}]   ;;  %s5349_s5 = inlined_call_operand.vmem [shape: bf16[9,8,8], index: 5, kind: input, shape index: {}]   ;;  %s5350_s6 = inlined_call_operand.vmem [shape: f32[1,8], index: 6, kind: input, shape index: {}]   ;;  %s5351_s7 = inlined_call_operand.vmem [shape: bf16[2,16,16,8], index: 7, kind: output, shape index: {0}]   ;;  %s5352_s8 = inlined_call_operand.vmem [shape: bf16[2,16,16,8], index: 8, kind: output, shape index: {1}]  }
   0x1   :  { %s3850_s29 = smov 0   ;;  %s3852_s30 = smov 0  }
   0x2   :  { %s3854_s9 = smov 0  }
   0x3 LB: > { %s28_s10 = sadd.s32 1, %s3790_s29  ;;  %s31_s11 = sadd.s32 1, %s3794_s30  ;;  %s3798_s9 = sphi %s3854_s9, %s19_s9   ;;  %s3794_s30 = sphi %s3852_s30, %s5409_s30   ;;  %s3790_s29 = sphi %s3850_s29, %s5408_s29   ;;  %s3786_s28 = sphi %s3848_s28, %s5407_s28   ;;  %s3782_s27 = sphi %s3846_s27, %s5406_s27  }
   0x4   : > { %p29_p0 = scmp.ge.s32.totalorder %s28_s10, 2  ;;  %p3140_p1 = scmp.ge.s32.totalorder %s3798_s9, 1 }
   0x5   : > { %p353_p2 = scmp.lt.s32.totalorder %s3798_s9, 5 }
   0x6   : > { %s5411_s10 = smov (%p29_p0, %s28_s10), 0  ;;  %s5413_s11 = smov (!%p29_p0, %s31_s11), %s3794_s30 }
   0x7   : > { %p354_p3 = pnand %p3140_p1, %p353_p2  ;;  %p33_p4 = scmp.ge.s32.totalorder %s5413_s11, 2 }
   0x9   : > { %s5415_s11 = smov (%p33_p4, %s5413_s11), 0  ;;  %357 = sbr.rel (%p354_p3) target bundleno = 895 (0x37f), region = 48 }
   0xe   : > { %v521_v0 = vld [vmem:[%s5347_s3] sm:$0x3]  ;;  %vm591_vm0 = vcmask 1041408   ;;  %s3882_s14 = sshll.u32 %s3782_s27, 3  ;;  %p434_p5 = scmp.lt.s32.totalorder %s3786_s28, 1  ;;  %vm566_vm1 = vcmask 31744  }
   0xf   : > { %v593_v1 = vsel %vm591_vm0, %v521_v0, 0  ;;  %p436_p6 = scmp.lt.s32.totalorder %s3882_s14, 15  ;;  %s3146_s23 = sadd.s32 4294967295, %s3882_s14  ;;  %v3912_v11 = vld [vmem:[%s5348_s4] ss:$0 sm:$0xff]  ;;  %vm1108_vm2 = vcmask 60416  }
  0x10   : > { %602 = vmatpush.bf16.msra.mxu0 %v593_v1  ;;  %3566 = vmatpush.bf16.msra.mxu2 %v593_v1  ;;  %s5417_s28 = smov (!%p434_p5, %s3786_s28), 1  ;;  %p446_p7 = scmp.gt.s32.totalorder %s3146_s23, 0  ;;  %v3800_v26 = vmov 0  }
  0x11   : > { %s437_s15 = scalar_select %p436_p6, %s3882_s14, 15  ;;  %1138 = vst.msk [vmem:[#allocation2 + $0x14] sm:$0xf] %vm1108_vm2, %v3800_v26 }
  0x12   : > { %s3886_s16 = sshll.u32 %s5417_s28, 5  ;;  %p3147_p8 = scmp.lt.s32.totalorder %s3146_s23, 15  ;;  %1137 = vst.msk [vmem:[#allocation2 + $0x8] sm:$0xf] %vm1108_vm2, %v3800_v26 }
  0x13   : > { %s3142_s17 = sshll.u32 %s437_s15, 1  ;;  %s5419_s23 = smov (!%p446_p7, %s3146_s23), 0  ;;  %1139 = vst.msk [vmem:[#allocation2 + $0x20] sm:$0xf] %vm1108_vm2, %v3800_v26 }
  0x14   : > { %995 = vmatpush.bf16.msrb.mxu2 %v593_v1  ;;  %s440_s18 = sadd.s32 %s3886_s16, %s3142_s17  ;;  %s5421_s23 = smov (!%p3147_p8, %s5419_s23), 15  ;;  %1140 = vst.msk [vmem:[#allocation2 + $0x2c] sm:$0xf] %vm1108_vm2, %v3800_v26 }
  0x15   : > { %s3889_s19 = sshll.u32 %s440_s18, 2  ;;  %s3152_s24 = sshll.u32 %s5421_s23, 1  ;;  %1141 = vst.msk [vmem:[#allocation2 + $0x38] sm:$0xf] %vm1108_vm2, %v3800_v26 }
  0x16   : > { %s442_s22 = scalar_lea.vmem %s5344_s0, %s3889_s19  ;;  %s454_s25 = sadd.s32 %s3152_s24, %s3886_s16  ;;  %1142 = vst.msk [vmem:[#allocation2 + $0x44] sm:$0xf] %vm1108_vm2, %v3800_v26 }
  0x17   : > { %v3520_v2 = vld [vmem:[%s442_s22] sm:$0xff]  ;;  %v3526_v3 = vld [vmem:[%s442_s22 + $0x30] sm:$0xff]  ;;  %v3521_v4 = vld [vmem:[%s442_s22 + $0x8] sm:$0xff]  ;;  %s3154_s26 = sshll.u32 %s454_s25, 2  ;;  %1143 = vst.msk [vmem:[#allocation2 + $0x50] sm:$0xf] %vm1108_vm2, %v3800_v26  ;;  %s3995_s23 = scalar_lea.vmem %s5352_s8, %s3889_s19 }
  0x18   : > { %3202 = vmatmul.msk.bf16.vlgmr.msra.gmra.mxu0 %vm566_vm1, %v3520_v2  ;;  %3208 = vmatmul.msk.bf16.vlgmr.msra.gmra.mxu2 %vm566_vm1, %v3526_v3  ;;  %v3527_v5 = vld [vmem:[%s442_s22 + $0x38] sm:$0xff]  ;;  %s456_s13 = scalar_lea.vmem %s5345_s1, %s3154_s26  ;;  %v3522_v6 = vld [vmem:[%s442_s22 + $0x10] sm:$0xff]  ;;  %v3524_v9 = vld [vmem:[%s442_s22 + $0x20] sm:$0xff]  ;;  %1144 = vst.msk [vmem:[#allocation2 + $0x5c] sm:$0xf] %vm1108_vm2, %v3800_v26  ;;  %s462_s18 = sadd.s32 8, %s3882_s14 }
  0x19   : > { %1059 = vmatpush.bf16.msra.mxu2 %v593_v1  ;;  %v3528_v7 = vld [vmem:[%s456_s13] sm:$0xff]  ;;  %v3523_v8 = vld [vmem:[%s442_s22 + $0x18] sm:$0xff]  ;;  %v3525_v10 = vld [vmem:[%s442_s22 + $0x28] sm:$0xff]  ;;  %1145 = vst.msk [vmem:[#allocation2 + $0x68] sm:$0xf] %vm1108_vm2, %v3800_v26  ;;  %p3978_p9 = scmp.lt.s32.totalorder %s462_s18, 15 }
  0x1a   : > { %1146 = vst.msk [vmem:[#allocation2 + $0x74] sm:$0xf] %vm1108_vm2, %v3800_v26  ;;  %p1125_p10 = scmp.gt.s32.totalorder %s3782_s27, 0  ;;  %p1131_p11 = scmp.lt.s32.totalorder %s3782_s27, 1 }
  0x1b   : > { %s5423_s18 = smov (!%p3978_p9, %s462_s18), 15 }
  0x1c   : > { %s5425_s18 = smov (!%p3978_p9, %s5423_s18), 15 }
  0x1d   : > { %s4053_s14 = sshll.u32 %s5425_s18, 1 }
  0x1e   : > { %s471_s24 = sadd.s32 %s4053_s14, %s3886_s16 }
  0x1f   : > { %s4089_s16 = sshll.u32 %s471_s24, 2 }
  0x20   : > { %s473_s28 = scalar_lea.vmem %s5346_s2, %s4089_s16  ;;  %s5104_s16 = scalar_lea.vmem %s5351_s7, %s3889_s19 }
  0x21   : > { %s4192_s15 = scalar_select %p1125_p10, 1, 0 }
  0x22   : > { %s1132_s21 = scalar_select %p1131_p11, 1, 0 }
  0x28   : > { %3203 = vmatmul.msk.bf16.gmra.mxu0 %vm566_vm1, %v3521_v4  ;;  %3209 = vmatmul.msk.bf16.gmra.mxu2 %vm566_vm1, %v3527_v5 }
  0x38   : > { %3204 = vmatmul.msk.bf16.gmra.mxu0 %vm566_vm1, %v3522_v6  ;;  %3230 = vmatmul.msk.bf16.vlgmr.msrb.gmra.mxu2 %vm566_vm1, %v3528_v7 }
  0x48   : > { %3205 = vmatmul.msk.bf16.gmra.mxu0 %vm566_vm1, %v3523_v8 }
  0x58   : > { %3206 = vmatmul.msk.bf16.gmra.mxu0 %vm566_vm1, %v3524_v9 }
  0x68   : > { %3207 = vmatmul.msk.bf16.gmra.mxu0 %vm566_vm1, %v3525_v10 }
  0x95   : > { %v604_v12 = vpop.f32.mrf.mxu0 }
  0x96   : > { %v3915_v13 = vadd.f32 %v3912_v11, %v604_v12 }
  0x98   : > { %v3210_v14 = vmul.f32 -1.442695, %v3915_v13 }
  0x9a   : > { %3611 = vpow2.f32 %v3210_v14 }
  0x9b   : > { %v634_v15 = vpop.f32.mrf.mxu2 }
  0x9c   : > { %v3919_v16 = vadd.f32 %v3912_v11, %v634_v15 }
  0x9d   : > { %v606_v17 = vpop.f32.mrf.mxu0 }
  0x9e   : > { %v3222_v18 = vmul.f32 -1.442695, %v3919_v16  ;;  %v3923_v19 = vadd.f32 %v3912_v11, %v606_v17 }
  0xa0   : > { %v3612_v20 = vpop.eup %3611  ;;  %3613 = vpow2.f32 %v3222_v18  ;;  %v3211_v21 = vmul.f32 -1.442695, %v3923_v19 }
  0xa1   : > { %v692_v22 = vadd.f32 1.0, %v3612_v20 }
  0xa2   : > { %3615 = vpow2.f32 %v3211_v21 }
  0xa3   : > { %3617 = vrcp.f32 %v692_v22  ;;  %v636_v23 = vpop.f32.mrf.mxu2  ;;  %v717_v35 = vand.u32 2147483647, %v692_v22  ;;  %v719_v39 = vand.u32 2147483648, %v692_v22  ;;  %vm713_vm3 = vweird.f32 %v692_v22 }
  0xa4   : > { %v3927_v24 = vadd.f32 %v3912_v11, %v636_v23 }
  0xa5   : > { %v609_v25 = vpop.f32.mrf.mxu0  ;;  %vm3952_vm5 = vcmp.eq.f32.partialorder %v717_v35, 8.507059e+37  ;;  %v720_v53 = vor.u32 1.1754944e-38, %v719_v39 }
  0xa6   : > { %v3614_v27 = vpop.eup %3613  ;;  %v3223_v28 = vmul.f32 -1.442695, %v3927_v24  ;;  %v3932_v29 = vadd.f32 %v3912_v11, %v609_v25 }
  0xa7   : > { %v3935_v30 = vadd.f32 1.0, %v3614_v27 }
  0xa8   : > { %v3616_v31 = vpop.eup %3615  ;;  %3619 = vpow2.f32 %v3223_v28  ;;  %v3212_v32 = vmul.f32 -1.442695, %v3932_v29 }
  0xa9   : > { %v3618_v33 = vpop.eup %3617  ;;  %3621 = vrcp.f32 %v3935_v30  ;;  %v3942_v36 = vadd.f32 1.0, %v3616_v31  ;;  %v897_v47 = vand.u32 2147483647, %v3935_v30  ;;  %v899_v48 = vand.u32 2147483648, %v3935_v30 }
  0xaa   : > { %v709_v34 = vmul.f32 %v3618_v33, %v692_v22  ;;  %3623 = vpow2.f32 %v3212_v32  ;;  %vm714_vm4 = vweird.f32 %v3618_v33  ;;  %vm893_vm6 = vweird.f32 %v3935_v30 }
  0xab   : > { %v639_v37 = vpop.f32.mrf.mxu2  ;;  %3625 = vrcp.f32 %v3942_v36  ;;  %vm715_vm7 = vmor %vm713_vm3, %vm714_vm4  ;;  %v732_v55 = vand.u32 2147483647, %v3942_v36  ;;  %v734_v56 = vand.u32 2147483648, %v3942_v36  ;;  %vm3984_vm8 = vcmp.eq.f32.partialorder %v897_v47, 8.507059e+37 }
  0xac   : > { %v710_v38 = vsub.f32 1.0, %v709_v34  ;;  %v3949_v40 = vadd.f32 %v3912_v11, %v639_v37  ;;  %v900_v0 = vor.u32 1.1754944e-38, %v899_v48  ;;  %vm728_vm10 = vweird.f32 %v3942_v36 }
  0xad   : > { %v611_v41 = vpop.f32.mrf.mxu0  ;;  %vm3998_vm11 = vcmp.eq.f32.partialorder %v732_v55, 8.507059e+37  ;;  %v735_v7 = vor.u32 1.1754944e-38, %v734_v56 }
  0xae   : > { %v3620_v42 = vpop.eup %3619  ;;  %v711_v43 = vmul.f32 %v3618_v33, %v710_v38  ;;  %v3957_v45 = vadd.f32 %v3912_v11, %v611_v41  ;;  %v3224_v50 = vmul.f32 -1.442695, %v3949_v40 }
  0xaf   : > { %v3622_v46 = vpop.eup %3621  ;;  %v3963_v49 = vadd.f32 1.0, %v3620_v42 }
  0xb0   : > { %v3624_v51 = vpop.eup %3623  ;;  %v712_v52 = vadd.f32 %v3618_v33, %v711_v43  ;;  %v889_v54 = vmul.f32 %v3622_v46, %v3935_v30  ;;  %v3213_v57 = vmul.f32 -1.442695, %v3957_v45  ;;  %vm894_vm9 = vweird.f32 %v3622_v46 }
  0xb1   : > { %3627 = vrcp.f32 %v3963_v49  ;;  %v3626_v58 = vpop.eup %3625  ;;  %v3974_v61 = vadd.f32 1.0, %v3624_v51  ;;  %vm908_vm12 = vweird.f32 %v3963_v49  ;;  %vm895_vm13 = vmor %vm893_vm6, %vm894_vm9  ;;  %v912_v15 = vand.u32 2147483647, %v3963_v49 }
  0xb2   : > { %v716_v59 = vsel %vm715_vm7, %v3618_v33, %v712_v52  ;;  %v890_v60 = vsub.f32 1.0, %v889_v54  ;;  %3629 = vpow2.f32 %v3224_v50  ;;  %v724_v1 = vmul.f32 %v3626_v58, %v3942_v36 }
  0xb3   : > { %v721_v62 = vsel %vm3952_vm5, %v720_v53, %v716_v59  ;;  %v641_v2 = vpop.f32.mrf.mxu2  ;;  %3631 = vrcp.f32 %v3974_v61  ;;  %vm729_vm14 = vweird.f32 %v3626_v58  ;;  %v914_v22 = vand.u32 2147483648, %v3963_v49 }
  0xb4   : > { %v948_v3 = vmul.f32 %v721_v62, %v3915_v13  ;;  %v891_v4 = vmul.f32 %v3622_v46, %v890_v60  ;;  %v725_v5 = vsub.f32 1.0, %v724_v1  ;;  %3633 = vpow2.f32 %v3213_v57  ;;  %vm730_vm15 = vmor %vm728_vm10, %vm729_vm14 }
  0xb5   : > { %v614_v8 = vpop.f32.mrf.mxu0  ;;  %v4004_v12 = vadd.f32 %v3912_v11, %v641_v2  ;;  %v747_v27 = vand.u32 2147483647, %v3974_v61  ;;  %v749_v37 = vand.u32 2147483648, %v3974_v61  ;;  %vm4044_vm3 = vcmp.eq.f32.partialorder %v912_v15, 8.507059e+37 }
  0xb6   : > { %v964_v9 = vpack.c.bf16 %v948_v3, %v948_v3  ;;  %v892_v10 = vadd.f32 %v3622_v46, %v891_v4  ;;  %v726_v14 = vmul.f32 %v3626_v58, %v725_v5  ;;  %v4017_v17 = vadd.f32 %v3912_v11, %v614_v8 }
  0xb7   : > { %v3628_v13 = vpop.eup %3627  ;;  %v3225_v23 = vmul.f32 -1.442695, %v4004_v12  ;;  %v915_v43 = vor.u32 1.1754944e-38, %v914_v22  ;;  %vm743_vm4 = vweird.f32 %v3974_v61  ;;  %vm4059_vm7 = vcmp.eq.f32.partialorder %v747_v27, 8.507059e+37 }
  0xb8   : > { %v3630_v18 = vpop.eup %3629  ;;  %1109 = vst.msk [vmem:[%s3995_s23] sm:$0xf] %vm1108_vm2, %v964_v9  ;;  %v896_v20 = vsel %vm895_vm13, %v3622_v46, %v892_v10  ;;  %v904_v21 = vmul.f32 %v3628_v13, %v3963_v49  ;;  %v727_v26 = vadd.f32 %v3626_v58, %v726_v14  ;;  %v3214_v33 = vmul.f32 -1.442695, %v4017_v17 }
  0xb9   : > { %1150 = vst.msk [vmem:[#allocation2 + $0xc] sm:$0xf] %vm1108_vm2, %v964_v9  ;;  %v901_v25 = vsel %vm3984_vm8, %v900_v0, %v896_v20  ;;  %v4028_v28 = vadd.f32 1.0, %v3630_v18  ;;  %v3632_v30 = vpop.eup %3631  ;;  %3635 = vpow2.f32 %v3225_v23  ;;  %vm909_vm0 = vweird.f32 %v3628_v13 }
  0xba   : > { %v960_v31 = vmul.f32 %v901_v25, %v3919_v16  ;;  %v905_v32 = vsub.f32 1.0, %v904_v21  ;;  %v731_v34 = vsel %vm730_vm15, %v3626_v58, %v727_v26  ;;  %v739_v35 = vmul.f32 %v3632_v30, %v3974_v61  ;;  %v3634_v38 = vpop.eup %3633  ;;  %vm910_vm5 = vmor %vm908_vm12, %vm909_vm0 }
  0xbb   : > { %3637 = vrcp.f32 %v4028_v28  ;;  %v736_v36 = vsel %vm3998_vm11, %v735_v7, %v731_v34  ;;  %v4051_v48 = vadd.f32 1.0, %v3634_v38  ;;  %v997_v50 = vpop.f32.mrf.mxu2  ;;  %vm744_vm6 = vweird.f32 %v3632_v30 }
  0xbc   : > { %v976_v16 = vpack.c.bf16 %v960_v31, %v960_v31  ;;  %v906_v39 = vmul.f32 %v3628_v13, %v905_v32  ;;  %v949_v41 = vmul.f32 %v736_v36, %v3923_v19  ;;  %v740_v44 = vsub.f32 1.0, %v739_v35  ;;  %vm745_vm8 = vmor %vm743_vm4, %vm744_vm6  ;;  %v3529_v35 = vld [vmem:[%s473_s28] sm:$0xff] }
  0xbd   : > { %v616_v46 = vpop.f32.mrf.mxu0  ;;  %3639 = vpow2.f32 %v3214_v33  ;;  %v750_v55 = vor.u32 1.1754944e-38, %v749_v37  ;;  %v927_v56 = vand.u32 2147483647, %v4028_v28  ;;  %v4072_v60 = vadd.f32 %v3912_v11, %v997_v50  ;;  %3237 = vmatmul.msk.bf16.vlgmr.msra.gmra.mxu2 %vm566_vm1, %v3529_v35 }
  0xbe   : > { %1121 = vst.msk [vmem:[%s3995_s23 + $0x30] sm:$0xf] %vm1108_vm2, %v976_v16  ;;  %v907_v47 = vadd.f32 %v3628_v13, %v906_v39  ;;  %v965_v19 = vpack.c.bf16 %v949_v41, %v949_v41  ;;  %v741_v51 = vmul.f32 %v3632_v30, %v740_v44  ;;  %3641 = vrcp.f32 %v4051_v48 }
  0xbf   : > { %1162 = vst.msk [vmem:[#allocation2 + $0x54] sm:$0xf] %vm1108_vm2, %v976_v16  ;;  %v3636_v53 = vpop.eup %3635  ;;  %v929_v0 = vand.u32 2147483648, %v4028_v28  ;;  %vm1292_vm9 = vcmask 1043456   ;;  %vm923_vm10 = vweird.f32 %v4028_v28  ;;  %v762_v2 = vand.u32 2147483647, %v4051_v48 }
  0xc0   : > { %v911_v54 = vsel %vm910_vm5, %v3628_v13, %v907_v47  ;;  %1110 = vst.msk [vmem:[%s3995_s23 + $0x4] sm:$0xf] %vm1108_vm2, %v965_v19  ;;  %v742_v58 = vadd.f32 %v3632_v30, %v741_v51  ;;  %v4069_v59 = vadd.f32 1.0, %v3636_v53  ;;  %v764_v5 = vand.u32 2147483648, %v4051_v48 }
  0xc1   : > { %v3638_v57 = vpop.eup %3637  ;;  %v916_v49 = vsel %vm4044_vm3, %v915_v43, %v911_v54  ;;  %1151 = vst.msk [vmem:[#allocation2 + $0x10] sm:$0xf] %vm1108_vm2, %v965_v19  ;;  %vm4092_vm11 = vcmp.eq.f32.partialorder %v927_v56, 8.507059e+37  ;;  %v3231_v9 = vmul.f32 -1.442695, %v4072_v60  ;;  %v930_v15 = vor.u32 1.1754944e-38, %v929_v0 }
  0xc2   : > { %v961_v62 = vmul.f32 %v916_v49, %v3927_v24  ;;  %v919_v63 = vmul.f32 %v3638_v57, %v4028_v28  ;;  %v746_v1 = vsel %vm745_vm8, %v3632_v30, %v742_v58  ;;  %3643 = vrcp.f32 %v4069_v59  ;;  %v3326_v28 = vld [vmem:[%s5349_s5 + $0xc] sm:$0xf] }
  0xc3   : > { %v3640_v3 = vpop.eup %3639  ;;  %v751_v24 = vsel %vm4059_vm7, %v750_v55, %v746_v1  ;;  %vm924_vm12 = vweird.f32 %v3638_v57  ;;  %v942_v18 = vand.u32 2147483647, %v4069_v59  ;;  %vm758_vm13 = vweird.f32 %v4051_v48  ;;  %v999_v31 = vpop.f32.mrf.mxu2 }
  0xc4   : > { %v977_v4 = vpack.c.bf16 %v961_v62, %v961_v62  ;;  %v920_v61 = vsub.f32 1.0, %v919_v63  ;;  %v950_v6 = vmul.f32 %v751_v24, %v3932_v29  ;;  %v4096_v8 = vadd.f32 1.0, %v3640_v3  ;;  %v3642_v13 = vpop.eup %3641  ;;  %vm925_vm15 = vmor %vm923_vm10, %vm924_vm12 }
  0xc5   : > { %v619_v10 = vpop.f32.mrf.mxu0  ;;  %v754_v20 = vmul.f32 %v3642_v13, %v4051_v48  ;;  %v4106_v21 = vadd.f32 %v3912_v11, %v616_v46  ;;  %vm4112_vm14 = vcmp.eq.f32.partialorder %v762_v2, 8.507059e+37  ;;  %v765_v25 = vor.u32 1.1754944e-38, %v764_v5 }
  0xc6   : > { %1122 = vst.msk [vmem:[%s3995_s23 + $0x34] sm:$0xf] %vm1108_vm2, %v977_v4  ;;  %v921_v14 = vmul.f32 %v3638_v57, %v920_v61  ;;  %v966_v29 = vpack.c.bf16 %v950_v6, %v950_v6  ;;  %3645 = vrcp.f32 %v4096_v8  ;;  %vm938_vm0 = vweird.f32 %v4069_v59 }
  0xc7   : > { %1163 = vst.msk [vmem:[#allocation2 + $0x58] sm:$0xf] %vm1108_vm2, %v977_v4  ;;  %v755_v27 = vsub.f32 1.0, %v754_v20  ;;  %v944_v30 = vand.u32 2147483648, %v4069_v59  ;;  %3647 = vpow2.f32 %v3231_v9  ;;  %vm759_vm3 = vweird.f32 %v3642_v13 }
  0xc8   : > { %v922_v22 = vadd.f32 %v3638_v57, %v921_v14  ;;  %v4117_v26 = vpop.eup %3643  ;;  %1111 = vst.msk [vmem:[%s3995_s23 + $0x8] sm:$0xf] %vm1108_vm2, %v966_v29  ;;  %vm4129_vm4 = vcmp.eq.f32.partialorder %v942_v18, 8.507059e+37  ;;  %v3215_v16 = vmul.f32 -1.442695, %v4106_v21  ;;  %v4142_v41 = vadd.f32 %v3912_v11, %v999_v31  ;;  %v4149_v46 = vld [vmem:[#allocation2 + $0xc] sm:$0xff]  ;;  %vm760_vm7 = vmor %vm758_vm13, %vm759_vm3 }
  0xc9   : > { %1152 = vst.msk [vmem:[#allocation2 + $0x18] sm:$0xf] %vm1108_vm2, %v966_v29  ;;  %v934_v33 = vmul.f32 %v4117_v26, %v4069_v59  ;;  %v756_v38 = vmul.f32 %v3642_v13, %v755_v27  ;;  %vm939_vm5 = vweird.f32 %v4117_v26  ;;  %v4145_v42 = vadd.f32 %v3912_v11, %v619_v10  ;;  %v1194_v18 = vld [vmem:[%s5349_s5] sm:$0xf] }
  0xca   : > { %v926_v32 = vsel %vm925_vm15, %v3638_v57, %v922_v22  ;;  %3649 = vpow2.f32 %v3215_v16  ;;  %v1760_v44 = vsel %vm1292_vm9, %v3326_v28, 0  ;;  %vm1255_vm6 = vcmask 64512   ;;  %vm940_vm1 = vmor %vm938_vm0, %vm939_vm5 }
  0xcb   : > { %v931_v37 = vsel %vm4092_vm11, %v930_v15, %v926_v32  ;;  %v935_v39 = vsub.f32 1.0, %v934_v33  ;;  %v757_v43 = vadd.f32 %v3642_v13, %v756_v38  ;;  %v3232_v51 = vmul.f32 -1.442695, %v4142_v41  ;;  %1769 = vmatpush.bf16.msrb.mxu0 %v1760_v44 }
  0xcc   : > { %v962_v36 = vmul.f32 %v931_v37, %v3949_v40  ;;  %v3646_v50 = vpop.eup %3645  ;;  %v3216_v52 = vmul.f32 -1.442695, %v4145_v42  ;;  %v945_v55 = vor.u32 1.1754944e-38, %v944_v30  ;;  %v777_v2 = vand.u32 2147483647, %v4096_v8 }
  0xcd   : > { %v621_v47 = vpop.f32.mrf.mxu0  ;;  %v936_v19 = vmul.f32 %v4117_v26, %v935_v39  ;;  %v3648_v53 = vpop.eup %3647  ;;  %v761_v54 = vsel %vm760_vm7, %v3642_v13, %v757_v43  ;;  %v769_v56 = vmul.f32 %v3646_v50, %v4096_v8  ;;  %3651 = vpow2.f32 %v3232_v51 }
  0xce   : > { %v978_v40 = vpack.c.bf16 %v962_v36, %v962_v36  ;;  %v4159_v57 = vadd.f32 %v3912_v11, %v621_v47  ;;  %v766_v48 = vsel %vm4112_vm14, %v765_v25, %v761_v54  ;;  %v4166_v58 = vadd.f32 1.0, %v3648_v53  ;;  %3375 = vmatmul.msk.bf16.vlgmr.msrb.gmra.mxu0 %vm1255_vm6, %v4149_v46 }
  0xcf   : > { %v937_v49 = vadd.f32 %v4117_v26, %v936_v19  ;;  %v951_v62 = vmul.f32 %v766_v48, %v3957_v45  ;;  %v770_v63 = vsub.f32 1.0, %v769_v56  ;;  %3653 = vpow2.f32 %v3216_v52 }
  0xd0   : > { %1123 = vst.msk [vmem:[%s3995_s23 + $0x38] sm:$0xf] %vm1108_vm2, %v978_v40  ;;  %v3217_v0 = vmul.f32 -1.442695, %v4159_v57  ;;  %v779_v45 = vand.u32 2147483648, %v4096_v8  ;;  %3655 = vrcp.f32 %v4166_v58  ;;  %v3650_v59 = vpop.eup %3649  ;;  %vm774_vm8 = vweird.f32 %v3646_v50  ;;  %v4248_v56 = vld [vmem:[#allocation2 + $0x14] sm:$0xff] }
  0xd1   : > { %1164 = vst.msk [vmem:[#allocation2 + $0x60] sm:$0xf] %vm1108_vm2, %v978_v40  ;;  %v941_v1 = vsel %vm940_vm1, %v4117_v26, %v937_v49  ;;  %v967_v3 = vpack.c.bf16 %v951_v62, %v951_v62  ;;  %v771_v24 = vmul.f32 %v3646_v50, %v770_v63  ;;  %v4185_v5 = vadd.f32 1.0, %v3650_v59  ;;  %v3387_v59 = vld [vmem:[%s5349_s5 + $0x10] sm:$0xf] }
  0xd2   : > { %v946_v4 = vsel %vm4129_vm4, %v945_v55, %v941_v1  ;;  %3657 = vpow2.f32 %v3217_v0  ;;  %vm773_vm10 = vweird.f32 %v4096_v8  ;;  %v780_v13 = vor.u32 1.1754944e-38, %v779_v45 }
  0xd3   : > { %v963_v61 = vmul.f32 %v946_v4, %v4004_v12  ;;  %1112 = vst.msk [vmem:[%s3995_s23 + $0xc] sm:$0xf] %vm1108_vm2, %v967_v3  ;;  %v772_v6 = vadd.f32 %v3646_v50, %v771_v24  ;;  %v3652_v9 = vpop.eup %3651  ;;  %vm775_vm11 = vmor %vm773_vm10, %vm774_vm8  ;;  %3659 = vrcp.f32 %v4185_v5  ;;  %vm778_vm12 = vcmp.eq.f32.partialorder %v777_v2, 8.507059e+37 }
  0xd4   : > { %1153 = vst.msk [vmem:[#allocation2 + $0x1c] sm:$0xf] %vm1108_vm2, %v967_v3  ;;  %v1019_v15 = vand.u32 2147483647, %v4166_v58  ;;  %v4197_v8 = vadd.f32 1.0, %v3652_v9  ;;  %v1021_v22 = vand.u32 2147483648, %v4166_v58  ;;  %v1127_v30 = vstv %s4192_s15 }
  0xd5   : > { %v624_v7 = vpop.f32.mrf.mxu0  ;;  %v979_v10 = vpack.c.bf16 %v963_v61, %v963_v61  ;;  %v3654_v12 = vpop.eup %3653  ;;  %v776_v14 = vsel %vm775_vm11, %v3646_v50, %v772_v6  ;;  %v1294_v25 = vsel %vm1292_vm9, %v1194_v18, 0  ;;  %v792_v31 = vand.u32 2147483647, %v4185_v5 }
  0xd6   : > { %v3656_v29 = vpop.eup %3655  ;;  %v781_v20 = vsel %vm778_vm12, %v780_v13, %v776_v14  ;;  %v4205_v23 = vadd.f32 1.0, %v3654_v12  ;;  %1303 = vmatpush.bf16.msra.mxu1 %v1294_v25  ;;  %3567 = vmatpush.bf16.msra.mxu3 %v1294_v25  ;;  %v794_v33 = vand.u32 2147483648, %v4185_v5  ;;  %3661 = vrcp.f32 %v4197_v8 }
  0xd7   : > { %1124 = vst.msk [vmem:[%s3995_s23 + $0x3c] sm:$0xf] %vm1108_vm2, %v979_v10  ;;  %v952_v26 = vmul.f32 %v781_v20, %v4017_v17  ;;  %v1011_v27 = vmul.f32 %v3656_v29, %v4166_v58  ;;  %v4216_v34 = vadd.f32 %v3912_v11, %v624_v7  ;;  %vm1015_vm13 = vweird.f32 %v4166_v58  ;;  %v3313_v58 = vld [vmem:[%s5349_s5 + $0x8] sm:$0xf] }
  0xd8   : > { %1165 = vst.msk [vmem:[#allocation2 + $0x64] sm:$0xf] %vm1108_vm2, %v979_v10  ;;  %v3658_v32 = vpop.eup %3657  ;;  %3663 = vrcp.f32 %v4205_v23  ;;  %vm1016_vm14 = vweird.f32 %v3656_v29  ;;  %vm4220_vm15 = vcmp.eq.f32.partialorder %v1019_v15, 8.507059e+37  ;;  %v1022_v38 = vor.u32 1.1754944e-38, %v1021_v22 }
  0xd9   : > { %v968_v28 = vpack.c.bf16 %v952_v26, %v952_v26  ;;  %v1012_v35 = vsub.f32 1.0, %v1011_v27  ;;  %v3660_v17 = vpop.eup %3659  ;;  %vm4224_vm0 = vcmp.eq.s32.totalorder %v1127_v30, 1  ;;  %vm788_vm3 = vweird.f32 %v4185_v5  ;;  %vm1017_vm7 = vmor %vm1015_vm13, %vm1016_vm14 }
  0xda   : > { %v784_v39 = vmul.f32 %v3660_v17, %v4185_v5  ;;  %vm4232_vm4 = vcmp.eq.f32.partialorder %v792_v31, 8.507059e+37  ;;  %v1034_v44 = vand.u32 2147483647, %v4197_v8  ;;  %v4237_v47 = vadd.f32 1.0, %v3658_v32 }
  0xdb   : > { %1113 = vst.msk [vmem:[%s3995_s23 + $0x10] sm:$0xf] %vm1108_vm2, %v968_v28  ;;  %v1013_v36 = vmul.f32 %v3656_v29, %v1012_v35  ;;  %v795_v40 = vor.u32 1.1754944e-38, %v794_v33  ;;  %v1036_v19 = vand.u32 2147483648, %v4197_v8  ;;  %v3218_v51 = vmul.f32 -1.442695, %v4216_v34 }
  0xdc   : > { %1154 = vst.msk [vmem:[#allocation2 + $0x24] sm:$0xf] %vm1108_vm2, %v968_v28  ;;  %v785_v54 = vsub.f32 1.0, %v784_v39  ;;  %vm1030_vm5 = vweird.f32 %v4197_v8  ;;  %v807_v55 = vand.u32 2147483647, %v4205_v23  ;;  %3665 = vrcp.f32 %v4237_v47  ;;  %v3662_v48 = vpop.eup %3661 }
  0xdd   : > { %v626_v50 = vpop.f32.mrf.mxu0  ;;  %v1014_v53 = vadd.f32 %v3656_v29, %v1013_v36  ;;  %vm803_vm1 = vweird.f32 %v4205_v23  ;;  %v809_v49 = vand.u32 2147483648, %v4205_v23  ;;  %3667 = vpow2.f32 %v3218_v51 }
  0xde   : > { %v4243_v52 = vadd.f32 %v3912_v11, %v626_v50  ;;  %v3664_v63 = vpop.eup %3663  ;;  %v786_v1 = vmul.f32 %v3660_v17, %v785_v54  ;;  %vm789_vm8 = vweird.f32 %v3660_v17  ;;  %v1026_v2 = vmul.f32 %v3662_v48, %v4197_v8  ;;  %3376 = vmatmul.msk.bf16.gmra.mxu0 %vm1255_vm6, %v4248_v56 }
  0xdf   : > { %v1018_v0 = vsel %vm1017_vm7, %v3656_v29, %v1014_v53  ;;  %vm4264_vm10 = vcmp.eq.f32.partialorder %v1034_v44, 8.507059e+37  ;;  %v1037_v3 = vor.u32 1.1754944e-38, %v1036_v19  ;;  %v799_v4 = vmul.f32 %v3664_v63, %v4205_v23  ;;  %vm790_vm12 = vmor %vm788_vm3, %vm789_vm8 }
  0xe0   : > { %v3219_v62 = vmul.f32 -1.442695, %v4243_v52  ;;  %v1023_v45 = vsel %vm4220_vm15, %v1022_v38, %v1018_v0  ;;  %v787_v61 = vadd.f32 %v3660_v17, %v786_v1  ;;  %v1027_v6 = vsub.f32 1.0, %v1026_v2 }
  0xe1   : > { %v1040_v24 = vmul.f32 %v1023_v45, %v4072_v60  ;;  %vm4270_vm11 = vcmp.eq.f32.partialorder %v807_v55, 8.507059e+37  ;;  %v800_v9 = vsub.f32 1.0, %v799_v4  ;;  %v810_v10 = vor.u32 1.1754944e-38, %v809_v49  ;;  %v4312_v49 = vld [vmem:[#allocation2 + $0x1c] sm:$0xff] }
  0xe2   : > { %3669 = vpow2.f32 %v3219_v62  ;;  %v1509_v13 = vsel %vm1292_vm9, %v3313_v58, 0  ;;  %v3666_v12 = vpop.eup %3665  ;;  %v791_v15 = vsel %vm790_vm12, %v3660_v17, %v787_v61  ;;  %v1028_v18 = vmul.f32 %v3662_v48, %v1027_v6 }
  0xe3   : > { %v1042_v14 = vpack.c.bf16 %v1040_v24, %v1040_v24  ;;  %vm1031_vm13 = vweird.f32 %v3662_v48  ;;  %1518 = vmatpush.bf16.msrb.mxu2 %v1509_v13  ;;  %v3668_v29 = vpop.eup %3667  ;;  %v796_v20 = vsel %vm4232_vm4, %v795_v40, %v791_v15  ;;  %v801_v22 = vmul.f32 %v3664_v63, %v800_v9 }
  0xe4   : > { %vm804_vm14 = vweird.f32 %v3664_v63  ;;  %v814_v5 = vmul.f32 %v3666_v12, %v4237_v47  ;;  %v953_v26 = vmul.f32 %v796_v20, %v4106_v21  ;;  %v1029_v27 = vadd.f32 %v3662_v48, %v1028_v18  ;;  %vm1032_vm15 = vmor %vm1030_vm5, %vm1031_vm13 }
  0xe5   : > { %v629_v60 = vpop.f32.mrf.mxu0  ;;  %v1129_v25 = vsel %vm4224_vm0, %v1042_v14, 0  ;;  %v4283_v30 = vadd.f32 1.0, %v3668_v29  ;;  %v802_v31 = vadd.f32 %v3664_v63, %v801_v22  ;;  %v822_v33 = vand.u32 2147483647, %v4237_v47  ;;  %vm805_vm3 = vmor %vm803_vm1, %vm804_vm14 }
  0xe6   : > { %1147 = vst.msk [vmem:[#allocation2] sm:$0xf] %vm1108_vm2, %v1129_v25  ;;  %v815_v32 = vsub.f32 1.0, %v814_v5  ;;  %v4290_v28 = vadd.f32 %v3912_v11, %v629_v60  ;;  %v969_v35 = vpack.c.bf16 %v953_v26, %v953_v26  ;;  %v1033_v17 = vsel %vm1032_vm15, %v3662_v48, %v1029_v27 }
  0xe7   : > { %v824_v21 = vand.u32 2147483648, %v4237_v47  ;;  %3671 = vrcp.f32 %v4283_v30  ;;  %v1038_v8 = vsel %vm4264_vm10, %v1037_v3, %v1033_v17  ;;  %v806_v38 = vsel %vm805_vm3, %v3664_v63, %v802_v31 }
  0xe8   : > { %v3670_v37 = vpop.eup %3669  ;;  %v816_v36 = vmul.f32 %v3666_v12, %v815_v32  ;;  %vm819_vm4 = vweird.f32 %v3666_v12  ;;  %1114 = vst.msk [vmem:[%s3995_s23 + $0x14] sm:$0xf] %vm1108_vm2, %v969_v35  ;;  %v1041_v39 = vmul.f32 %v1038_v8, %v4142_v41  ;;  %v811_v43 = vsel %vm4270_vm11, %v810_v10, %v806_v38 }
  0xe9   : > { %v4303_v23 = vadd.f32 1.0, %v3670_v37  ;;  %1155 = vst.msk [vmem:[#allocation2 + $0x28] sm:$0xf] %vm1108_vm2, %v969_v35  ;;  %v954_v44 = vmul.f32 %v811_v43, %v4145_v42  ;;  %vm818_vm5 = vweird.f32 %v4237_v47  ;;  %v3220_v40 = vmul.f32 -1.442695, %v4290_v28 }
  0xea   : > { %v817_v50 = vadd.f32 %v3666_v12, %v816_v36  ;;  %v1043_v19 = vpack.c.bf16 %v1041_v39, %v1041_v39  ;;  %vm820_vm7 = vmor %vm818_vm5, %vm819_vm4  ;;  %v825_v51 = vor.u32 1.1754944e-38, %v824_v21  ;;  %vm823_vm1 = vcmp.eq.f32.partialorder %v822_v33, 8.507059e+37 }
  0xeb   : > { %3673 = vrcp.f32 %v4303_v23  ;;  %v970_v53 = vpack.c.bf16 %v954_v44, %v954_v44  ;;  %v837_v2 = vand.u32 2147483647, %v4283_v30  ;;  %v839_v58 = vand.u32 2147483648, %v4283_v30 }
  0xec   : > { %v821_v54 = vsel %vm820_vm7, %v3666_v12, %v817_v50  ;;  %v1130_v48 = vsel %vm4224_vm0, %v1043_v19, 0  ;;  %3675 = vpow2.f32 %v3220_v40  ;;  %vm833_vm0 = vweird.f32 %v4283_v30 }
  0xed   : > { %v631_v41 = vpop.f32.mrf.mxu0  ;;  %v3672_v55 = vpop.eup %3671  ;;  %v826_v42 = vsel %vm823_vm1, %v825_v51, %v821_v54  ;;  %1148 = vst.msk [vmem:[#allocation2 + $0x4] sm:$0xf] %vm1108_vm2, %v1130_v48  ;;  %v1890_v24 = vsel %vm1292_vm9, %v3387_v59, 0  ;;  %vm838_vm11 = vcmp.eq.f32.partialorder %v837_v2, 8.507059e+37  ;;  %v840_v10 = vor.u32 1.1754944e-38, %v839_v58  ;;  %v4368_v51 = vld [vmem:[#allocation2 + $0x8] sm:$0xff] }
  0xee   : > { %v4315_v47 = vadd.f32 %v3912_v11, %v631_v41  ;;  %v955_v62 = vmul.f32 %v826_v42, %v4159_v57  ;;  %v829_v63 = vmul.f32 %v3672_v55, %v4283_v30  ;;  %1115 = vst.msk [vmem:[%s3995_s23 + $0x18] sm:$0xf] %vm1108_vm2, %v970_v53  ;;  %3377 = vmatmul.msk.bf16.gmra.mxu0 %vm1255_vm6, %v4312_v49  ;;  %v3300_v11 = vld [vmem:[%s5349_s5 + $0x4] sm:$0xf]  ;;  %vm834_vm8 = vweird.f32 %v3672_v55  ;;  %v3413_v59 = vld [vmem:[%s5349_s5 + $0x18] sm:$0xf] }
  0xef   : > { %1156 = vst.msk [vmem:[#allocation2 + $0x30] sm:$0xf] %vm1108_vm2, %v970_v53  ;;  %v1427_v45 = vsel %vm1292_vm9, %v3300_v11, 0  ;;  %1899 = vmatpush.bf16.msrb.mxu3 %v1890_v24  ;;  %vm835_vm10 = vmor %vm833_vm0, %vm834_vm8  ;;  %v852_v13 = vand.u32 2147483647, %v4303_v23  ;;  %v854_v12 = vand.u32 2147483648, %v4303_v23  ;;  %vm848_vm13 = vweird.f32 %v4303_v23 }
  0xf0   : > { %v3221_v16 = vmul.f32 -1.442695, %v4315_v47  ;;  %v971_v0 = vpack.c.bf16 %v955_v62, %v955_v62  ;;  %v830_v1 = vsub.f32 1.0, %v829_v63  ;;  %1436 = vmatpush.bf16.msrb.mxu1 %v1427_v45  ;;  %v4361_v35 = vld [vmem:[#allocation2 + $0x24] sm:$0xff] }
  0xf1   : > { %v3674_v57 = vpop.eup %3673  ;;  %v855_v25 = vor.u32 1.1754944e-38, %v854_v12  ;;  %vm853_vm15 = vcmp.eq.f32.partialorder %v852_v13, 8.507059e+37  ;;  %v4418_v45 = vld [vmem:[#allocation2 + $0x20] sm:$0xff]  ;;  %v4450_v13 = vld [vmem:[#allocation2 + $0x58] sm:$0xff] }
  0xf2   : > { %3677 = vpow2.f32 %v3221_v16  ;;  %1116 = vst.msk [vmem:[%s3995_s23 + $0x1c] sm:$0xf] %vm1108_vm2, %v971_v0  ;;  %v831_v3 = vmul.f32 %v3672_v55, %v830_v1  ;;  %v844_v4 = vmul.f32 %v3674_v57, %v4303_v23  ;;  %v3676_v61 = vpop.eup %3675  ;;  %vm849_vm12 = vweird.f32 %v3674_v57  ;;  %v4390_v1 = vld [vmem:[#allocation2 + $0x10] sm:$0xff] }
  0xf3   : > { %1157 = vst.msk [vmem:[#allocation2 + $0x34] sm:$0xf] %vm1108_vm2, %v971_v0  ;;  %v702_v9 = vadd.f32 1.0, %v3676_v61  ;;  %vm850_vm14 = vmor %vm848_vm13, %vm849_vm12  ;;  %v3400_v61 = vld [vmem:[%s5349_s5 + $0x14] sm:$0xf] }
  0xf4   : > { %v832_v6 = vadd.f32 %v3672_v55, %v831_v3  ;;  %v845_v7 = vsub.f32 1.0, %v844_v4  ;;  %v4345_v14 = vld [vmem:[#allocation2] sm:$0xff]  ;;  %v2223_v3 = vsel %vm1292_vm9, %v3413_v59, 0  ;;  %v4428_v4 = vld [vmem:[#allocation2 + $0x50] sm:$0xff] }
  0xf5   : > { %3679 = vrcp.f32 %v702_v9  ;;  %3288 = vmatmul.msk.bf16.vlgmr.msra.gmra.mxu1 %vm1255_vm6, %v4345_v14  ;;  %3314 = vmatmul.msk.bf16.vlgmr.msrb.gmra.mxu2 %vm1255_vm6, %v4345_v14  ;;  %v869_v21 = vand.u32 2147483648, %v702_v9  ;;  %vm863_vm3 = vweird.f32 %v702_v9  ;;  %v867_v8 = vand.u32 2147483647, %v702_v9 }
  0xf6   : > { %v836_v15 = vsel %vm835_vm10, %v3672_v55, %v832_v6  ;;  %v846_v18 = vmul.f32 %v3674_v57, %v845_v7  ;;  %v4383_v0 = vld [vmem:[#allocation2 + $0x2c] sm:$0xff]  ;;  %2232 = vmatpush.bf16.msra.mxu2 %v2223_v3  ;;  %v3487_v6 = vld [vmem:[%s5349_s5 + $0x20] sm:$0xf]  ;;  %v1972_v7 = vsel %vm1292_vm9, %v3400_v61, 0 }
  0xf7   : > { %v841_v29 = vsel %vm838_vm11, %v840_v10, %v836_v15  ;;  %v870_v39 = vor.u32 1.1754944e-38, %v869_v21  ;;  %vm868_vm7 = vcmp.eq.f32.partialorder %v867_v8, 8.507059e+37  ;;  %1981 = vmatpush.bf16.msra.mxu1 %v1972_v7  ;;  %v4444_v10 = vld [vmem:[#allocation2 + $0x28] sm:$0xff]  ;;  %v1389_v21 = vlaneseq }
  0xf8   : > { %v3678_v60 = vpop.eup %3677  ;;  %v956_v20 = vmul.f32 %v841_v29, %v4216_v34  ;;  %v847_v22 = vadd.f32 %v3674_v57, %v846_v18 }
  0xf9   : > { %v703_v5 = vadd.f32 1.0, %v3678_v60  ;;  %v3755_v60 = vld [vmem:[%s5348_s4] ss:$0 sm:$0xff] }
  0xfa   : > { %v972_v26 = vpack.c.bf16 %v956_v20, %v956_v20  ;;  %v851_v27 = vsel %vm850_vm14, %v3674_v57, %v847_v22  ;;  %v4353_v30 = vld [vmem:[#allocation2 + $0x30] sm:$0xff]  ;;  %v4404_v57 = vld [vmem:[#allocation2 + $0x18] sm:$0xff] }
  0xfb   : > { %3681 = vrcp.f32 %v703_v5  ;;  %v856_v31 = vsel %vm853_vm15, %v855_v25, %v851_v27  ;;  %v3680_v32 = vpop.eup %3679  ;;  %3294 = vmatmul.msk.bf16.vlgmr.msra.gmra.mxu3 %vm1255_vm6, %v4353_v30  ;;  %vm878_vm1 = vweird.f32 %v703_v5  ;;  %v884_v44 = vand.u32 2147483648, %v703_v5  ;;  %v4400_v11 = vld [vmem:[#allocation2 + $0x34] sm:$0xff]  ;;  %v3474_v22 = vld [vmem:[%s5349_s5 + $0x1c] sm:$0xf] }
  0xfc   : > { %1117 = vst.msk [vmem:[%s3995_s23 + $0x20] sm:$0xf] %vm1108_vm2, %v972_v26  ;;  %v957_v33 = vmul.f32 %v856_v31, %v4243_v52  ;;  %v859_v34 = vmul.f32 %v3680_v32, %v702_v9  ;;  %vm864_vm4 = vweird.f32 %v3680_v32  ;;  %v882_v19 = vand.u32 2147483647, %v703_v5 }
  0xfd   : > { %1158 = vst.msk [vmem:[#allocation2 + $0x3c] sm:$0xf] %vm1108_vm2, %v972_v26  ;;  %vm865_vm5 = vmor %vm863_vm3, %vm864_vm4  ;;  %v885_v55 = vor.u32 1.1754944e-38, %v884_v44  ;;  %v2435_v9 = vsel %vm1292_vm9, %v3487_v6, 0  ;;  %v4500_v6 = vld [vmem:[#allocation2 + $0x5c] sm:$0xff] }
  0xfe   : > { %v973_v17 = vpack.c.bf16 %v957_v33, %v957_v33  ;;  %v860_v37 = vsub.f32 1.0, %v859_v34  ;;  %3378 = vmatmul.msk.bf16.gmra.mxu0 %vm1255_vm6, %v4361_v35  ;;  %vm883_vm10 = vcmp.eq.f32.partialorder %v882_v19, 8.507059e+37  ;;  %2444 = vmatpush.bf16.msra.mxu3 %v2435_v9 }
 0x100   : > { %1118 = vst.msk [vmem:[%s3995_s23 + $0x24] sm:$0xf] %vm1108_vm2, %v973_v17  ;;  %v861_v52 = vmul.f32 %v3680_v32, %v860_v37 }
 0x101   : > { %v3682_v38 = vpop.eup %3681  ;;  %1159 = vst.msk [vmem:[#allocation2 + $0x40] sm:$0xf] %vm1108_vm2, %v973_v17  ;;  %v4478_v17 = vld [vmem:[#allocation2 + $0x54] sm:$0xff] }
 0x102   : > { %v874_v36 = vmul.f32 %v3682_v38, %v703_v5  ;;  %v862_v43 = vadd.f32 %v3680_v32, %v861_v52  ;;  %vm879_vm0 = vweird.f32 %v3682_v38  ;;  %v2353_v5 = vsel %vm1292_vm9, %v3474_v22, 0 }
 0x103   : > { %vm880_vm8 = vmor %vm878_vm1, %vm879_vm0  ;;  %2362 = vmatpush.bf16.msra.mxu0 %v2353_v5  ;;  %v4483_v52 = vshrl.u32 %v1389_v21, 7 }
 0x104   : > { %v875_v23 = vsub.f32 1.0, %v874_v36  ;;  %v866_v50 = vsel %vm865_vm5, %v3680_v32, %v862_v43  ;;  %v4375_v63 = vld [vmem:[#allocation2 + $0x38] sm:$0xff] }
 0x105   : > { %v871_v41 = vsel %vm868_vm7, %v870_v39, %v866_v50  ;;  %3289 = vmatmul.msk.bf16.gmra.mxu1 %vm1255_vm6, %v4368_v51  ;;  %3315 = vmatmul.msk.bf16.gmra.mxu2 %vm1255_vm6, %v4368_v51  ;;  %vm1391_vm12 = vcmp.lt.s32.totalorder %v4483_v52, 1  ;;  %vm1604_vm1 = vcmp.lt.s32.totalorder %v4483_v52, 7 }
 0x106   : > { %v876_v40 = vmul.f32 %v3682_v38, %v875_v23  ;;  %v958_v53 = vmul.f32 %v871_v41, %v4290_v28 }
 0x108   : > { %v877_v54 = vadd.f32 %v3682_v38, %v876_v40  ;;  %v974_v48 = vpack.c.bf16 %v958_v53, %v958_v53  ;;  %v4414_v58 = vld [vmem:[#allocation2 + $0x3c] sm:$0xff] }
 0x109   : > { %5385 = vst [vmem:[#allocation3_spill] sm:$0xff] %v4414_v58 }
 0x10a   : > { %v881_v42 = vsel %vm880_vm8, %v3682_v38, %v877_v54  ;;  %1119 = vst.msk [vmem:[%s3995_s23 + $0x28] sm:$0xf] %vm1108_vm2, %v974_v48 }
 0x10b   : > { %v886_v62 = vsel %vm883_vm10, %v885_v55, %v881_v42  ;;  %1160 = vst.msk [vmem:[#allocation2 + $0x48] sm:$0xf] %vm1108_vm2, %v974_v48  ;;  %3295 = vmatmul.msk.bf16.gmra.mxu3 %vm1255_vm6, %v4375_v63  ;;  %v1133_v55 = vstv %s1132_s21 }
 0x10c   : > { %v959_v28 = vmul.f32 %v886_v62, %v4315_v47  ;;  %v4396_v47 = vld [vmem:[#allocation2 + $0x40] sm:$0xff]  ;;  %vm4496_vm4 = vcmp.eq.s32.totalorder %v1133_v55, 1 }
 0x10e   : > { %v975_v16 = vpack.c.bf16 %v959_v28, %v959_v28  ;;  %3379 = vmatmul.msk.bf16.gmra.mxu0 %vm1255_vm6, %v4383_v0 }
 0x110   : > { %1120 = vst.msk [vmem:[%s3995_s23 + $0x2c] sm:$0xf] %vm1108_vm2, %v975_v16 }
 0x111   : > { %1161 = vst.msk [vmem:[#allocation2 + $0x4c] sm:$0xf] %vm1108_vm2, %v975_v16 }
 0x112   : > { %v4432_v24 = vld [vmem:[#allocation2 + $0x44] sm:$0xff] }
 0x113   : > { %5386 = vst [vmem:[#allocation4_spill] sm:$0xff] %v4432_v24 }
 0x115   : > { %3290 = vmatmul.msk.bf16.gmra.mxu1 %vm1255_vm6, %v4390_v1  ;;  %3316 = vmatmul.msk.bf16.gmra.mxu2 %vm1255_vm6, %v4390_v1 }
 0x118   : > { %v4410_v2 = vld [vmem:[#allocation2 + $0x48] sm:$0xff] }
 0x119   : > { %v4456_v15 = vld [vmem:[#allocation2 + $0x4c] sm:$0xff] }
 0x11b   : > { %3296 = vmatmul.msk.bf16.gmra.mxu3 %vm1255_vm6, %v4396_v47 }
 0x11e   : > { %3380 = vmatmul.msk.bf16.gmra.mxu0 %vm1255_vm6, %v4400_v11 }
 0x125   : > { %3291 = vmatmul.msk.bf16.gmra.mxu1 %vm1255_vm6, %v4404_v57  ;;  %3317 = vmatmul.msk.bf16.gmra.mxu2 %vm1255_vm6, %v4404_v57 }
 0x12b   : > { %3297 = vmatmul.msk.bf16.gmra.mxu3 %vm1255_vm6, %v4410_v2 }
 0x12e   : > { %3381 = vmatmul.msk.bf16.gmra.mxu0 %vm1255_vm6, %v4414_v58 }
 0x135   : > { %3292 = vmatmul.msk.bf16.gmra.mxu1 %vm1255_vm6, %v4418_v45  ;;  %3318 = vmatmul.msk.bf16.gmra.mxu2 %vm1255_vm6, %v4418_v45 }
 0x13b   : > { %3298 = vmatmul.msk.bf16.gmra.mxu3 %vm1255_vm6, %v4428_v4 }
 0x13e   : > { %3382 = vmatmul.msk.bf16.gmra.mxu0 %vm1255_vm6, %v4432_v24 }
 0x140   : > { %v1061_v18 = vpop.f32.mrf.mxu2 }
 0x141   : > { %v1062_v29 = vadd.f32 %v3755_v60, %v1061_v18 }
 0x143   : > { %v3238_v20 = vmul.f32 -1.442695, %v1062_v29 }
 0x145   : > { %3293 = vmatmul.msk.bf16.gmra.mxu1 %vm1255_vm6, %v4444_v10  ;;  %3319 = vmatmul.msk.bf16.gmra.mxu2 %vm1255_vm6, %v4444_v10  ;;  %3683 = vpow2.f32 %v3238_v20 }
 0x148   : > { %v1063_v26 = vpop.f32.mrf.mxu2 }
 0x149   : > { %v4469_v27 = vadd.f32 %v3755_v60, %v1063_v26 }
 0x14b   : > { %v4452_v12 = vpop.f32.mrf.mxu0  ;;  %3299 = vmatmul.msk.bf16.gmra.mxu3 %vm1255_vm6, %v4450_v13  ;;  %v3684_v31 = vpop.eup %3683  ;;  %v3239_v32 = vmul.f32 -1.442695, %v4469_v27 }
 0x14c   : > { %v1072_v33 = vadd.f32 1.0, %v3684_v31 }
 0x14d   : > { %3685 = vpow2.f32 %v3239_v32 }
 0x14e   : > { %3383 = vmatmul.msk.bf16.gmra.mxu0 %vm1255_vm6, %v4456_v15  ;;  %3687 = vrcp.f32 %v1072_v33  ;;  %v1085_v36 = vand.u32 2147483648, %v1072_v33  ;;  %vm1079_vm9 = vweird.f32 %v1072_v33 }
 0x150   : > { %v1086_v40 = vor.u32 1.1754944e-38, %v1085_v36 }
 0x153   : > { %v4467_v25 = vpop.f32.mrf.mxu0 }
 0x155   : > { %3301 = vmatmul.msk.bf16.vlgmr.msrb.gmra.mxu1 %vm1255_vm6, %v4345_v14  ;;  %3320 = vmatmul.msk.bf16.gmra.mxu2 %vm1255_vm6, %v4353_v30  ;;  %v3686_v14 = vpop.eup %3685 }
 0x156   : > { %v3688_v37 = vpop.eup %3687  ;;  %v1073_v8 = vadd.f32 1.0, %v3686_v14 }
 0x157   : > { %v1075_v38 = vmul.f32 %v3688_v37, %v1072_v33  ;;  %vm1080_vm11 = vweird.f32 %v3688_v37 }
 0x158   : > { %3689 = vrcp.f32 %v1073_v8  ;;  %vm1081_vm13 = vmor %vm1079_vm9, %vm1080_vm11  ;;  %vm1094_vm15 = vweird.f32 %v1073_v8  ;;  %v1100_v62 = vand.u32 2147483648, %v1073_v8  ;;  %v1098_v59 = vand.u32 2147483647, %v1073_v8 }
 0x159   : > { %v1076_v43 = vsub.f32 1.0, %v1075_v38 }
 0x15a   : > { %v1101_v18 = vor.u32 1.1754944e-38, %v1100_v62  ;;  %vm1099_vm7 = vcmp.eq.f32.partialorder %v1098_v59, 8.507059e+37 }
 0x15b   : > { %v1776_v34 = vpop.f32.mrf.mxu0  ;;  %3388 = vmatmul.msk.bf16.vlgmr.msrb.gmra.mxu3 %vm1255_vm6, %v4149_v46  ;;  %v1083_v46 = vand.u32 2147483647, %v1072_v33  ;;  %v1077_v50 = vmul.f32 %v3688_v37, %v1076_v43 }
 0x15c   : > { %v1833_v23 = vrot.slane %v1776_v34, 7 }
 0x15d   : > { %v1078_v41 = vadd.f32 %v3688_v37, %v1077_v50  ;;  %vm1084_vm14 = vcmp.eq.f32.partialorder %v1083_v46, 8.507059e+37 }
 0x15e   : > { %3384 = vmatmul.msk.bf16.gmra.mxu0 %vm1255_vm6, %v4478_v17  ;;  %v3690_v53 = vpop.eup %3689 }
 0x15f   : > { %v1082_v54 = vsel %vm1081_vm13, %v3688_v37, %v1078_v41  ;;  %v1090_v48 = vmul.f32 %v3690_v53, %v1073_v8  ;;  %vm1095_vm3 = vweird.f32 %v3690_v53  ;;  %v4525_v8 = vld [vmem:[#allocation2 + $0x64] sm:$0xff] }
 0x160   : > { %v1087_v42 = vsel %vm1084_vm14, %v1086_v40, %v1082_v54  ;;  %vm1096_vm5 = vmor %vm1094_vm15, %vm1095_vm3 }
 0x161   : > { %v1104_v28 = vmul.f32 %v1087_v42, %v1062_v29  ;;  %v1091_v16 = vsub.f32 1.0, %v1090_v48 }
 0x163   : > { %v1778_v39 = vpop.f32.mrf.mxu0  ;;  %v1106_v7 = vpack.c.bf16 %v1104_v28, %v1104_v28  ;;  %v1092_v9 = vmul.f32 %v3690_v53, %v1091_v16 }
 0x164   : > { %v1834_v44 = vrot.slane %v1778_v39, 7 }
 0x165   : > { %3302 = vmatmul.msk.bf16.gmra.mxu1 %vm1255_vm6, %v4368_v51  ;;  %3321 = vmatmul.msk.bf16.gmra.mxu2 %vm1255_vm6, %v4375_v63  ;;  %v1135_v60 = vsel %vm4496_vm4, %v1106_v7, 0  ;;  %v1093_v29 = vadd.f32 %v3690_v53, %v1092_v9 }
 0x166   : > { %v4492_v19 = vsel %vm1391_vm12, %v1833_v23, %v1834_v44  ;;  %1167 = vst.msk [vmem:[#allocation2 + $0x6c] sm:$0xf] %vm1108_vm2, %v1135_v60 }
 0x167   : > { %v1097_v20 = vsel %vm1096_vm5, %v3690_v53, %v1093_v29 }
 0x168   : > { %v1102_v22 = vsel %vm1099_vm7, %v1101_v18, %v1097_v20 }
 0x169   : > { %v1105_v5 = vmul.f32 %v1102_v22, %v4469_v27 }
 0x16b   : > { %v1781_v51 = vpop.f32.mrf.mxu0  ;;  %3389 = vmatmul.msk.bf16.gmra.mxu3 %vm1255_vm6, %v4248_v56  ;;  %v1107_v32 = vpack.c.bf16 %v1105_v5, %v1105_v5 }
 0x16c   : > { %v1835_v61 = vrot.slane %v1781_v51, 7  ;;  %v4557_v51 = vld [vmem:[#allocation2 + $0x18] sm:$0xff] }
 0x16d   : > { %v1136_v33 = vsel %vm4496_vm4, %v1107_v32, 0 }
 0x16e   : > { %3385 = vmatmul.msk.bf16.gmra.mxu0 %vm1255_vm6, %v4500_v6  ;;  %v4506_v56 = vsel %vm1391_vm12, %v1834_v44, %v1835_v61  ;;  %1168 = vst.msk [vmem:[#allocation2 + $0x70] sm:$0xf] %vm1108_vm2, %v1136_v33 }
 0x172   : > { %v4512_v26 = vpop.f32.mrf.mxu1 }
 0x173   : > { %v1783_v31 = vpop.f32.mrf.mxu0 }
 0x174   : > { %v1836_v27 = vrot.slane %v1783_v31, 7 }
 0x175   : > { %3303 = vmatmul.msk.bf16.gmra.mxu1 %vm1255_vm6, %v4390_v1  ;;  %3322 = vmatmul.msk.bf16.gmra.mxu2 %vm1255_vm6, %v4396_v47 }
 0x178   : > { %v1520_v34 = vpop.f32.mrf.mxu2 }
 0x179   : > { %v1580_v39 = vrot.slane %v1520_v34, 1 }
 0x17a   : > { %v4521_v21 = vpop.f32.mrf.mxu1 }
 0x17b   : > { %v1786_v14 = vpop.f32.mrf.mxu0  ;;  %3390 = vmatmul.msk.bf16.gmra.mxu3 %vm1255_vm6, %v4312_v49 }
 0x17c   : > { %v1837_v37 = vrot.slane %v1786_v14, 7 }
 0x17e   : > { %3386 = vmatmul.msk.bf16.gmra.mxu0 %vm1255_vm6, %v4525_v8  ;;  %v4529_v1 = vpop.f32.mrf.mxu3  ;;  %v4533_v38 = vsel %vm1391_vm12, %v1836_v27, %v1837_v37 }
 0x17f   : > { %v5353_v41 = vrot.slane %v4529_v1, 7 }
 0x180   : > { %v1522_v36 = vpop.f32.mrf.mxu2 }
 0x181   : > { %v1581_v43 = vrot.slane %v1522_v36, 1 }
 0x182   : > { %v1310_v46 = vpop.f32.mrf.mxu1 }
 0x183   : > { %v1788_v49 = vpop.f32.mrf.mxu0  ;;  %v4538_v23 = vsel %vm1604_vm1, %v1580_v39, %v1581_v43  ;;  %v1367_v62 = vrot.slane %v1310_v46, 7  ;;  %v4587_v39 = vld [vmem:[#allocation2 + $0x20] sm:$0xff] }
 0x184   : > { %v1838_v44 = vrot.slane %v1788_v49, 7 }
 0x185   : > { %3304 = vmatmul.msk.bf16.gmra.mxu1 %vm1255_vm6, %v4404_v57  ;;  %3323 = vmatmul.msk.bf16.gmra.mxu2 %vm1255_vm6, %v4410_v2 }
 0x186   : > { %v1337_v50 = vpop.f32.mrf.mxu3  ;;  %v4546_v40 = vsel %vm1391_vm12, %v1837_v37, %v1838_v44 }
 0x187   : > { %v1378_v53 = vrot.slane %v1337_v50, 7 }
 0x188   : > { %v1525_v54 = vpop.f32.mrf.mxu2 }
 0x189   : > { %v4553_v55 = vsel %vm1391_vm12, %v5353_v41, %v1378_v53  ;;  %v1582_v48 = vrot.slane %v1525_v54, 1 }
 0x18a   : > { %v1312_v57 = vpop.f32.mrf.mxu1 }
 0x18b   : > { %v1791_v42 = vpop.f32.mrf.mxu0  ;;  %3391 = vmatmul.msk.bf16.gmra.mxu3 %vm1255_vm6, %v4361_v35  ;;  %v1368_v28 = vrot.slane %v1312_v57, 7  ;;  %v4561_v16 = vsel %vm1604_vm1, %v1581_v43, %v1582_v48 }
 0x18c   : > { %v1839_v18 = vrot.slane %v1791_v42, 7 }
 0x18d   : > { %v4567_v3 = vsel %vm1391_vm12, %v1367_v62, %v1368_v28 }
 0x18e   : > { %3475 = vmatmul.msk.bf16.vlgmr.msra.gmra.mxu0 %vm1255_vm6, %v4557_v51  ;;  %v1340_v59 = vpop.f32.mrf.mxu3 }
 0x18f   : > { %v1379_v31 = vrot.slane %v1340_v59, 7 }
 0x190   : > { %v1527_v61 = vpop.f32.mrf.mxu2 }
 0x192   : > { %v1315_v7 = vpop.f32.mrf.mxu1 }
 0x193   : > { %v1793_v9 = vpop.f32.mrf.mxu0  ;;  %v1369_v60 = vrot.slane %v1315_v7, 7 }
 0x194   : > { %v1840_v29 = vrot.slane %v1793_v9, 7 }
 0x195   : > { %3305 = vmatmul.msk.bf16.gmra.mxu1 %vm1255_vm6, %v4418_v45  ;;  %3324 = vmatmul.msk.bf16.gmra.mxu2 %vm1255_vm6, %v4428_v4  ;;  %v4575_v22 = vsel %vm1391_vm12, %v1368_v28, %v1369_v60  ;;  %v1583_v45 = vrot.slane %v1527_v61, 1 }
 0x196   : > { %v1342_v20 = vpop.f32.mrf.mxu3  ;;  %v4579_v5 = vsel %vm1391_vm12, %v1839_v18, %v1840_v29 }
 0x197   : > { %v1380_v32 = vrot.slane %v1342_v20, 7 }
 0x198   : > { %v1530_v33 = vpop.f32.mrf.mxu2 }
 0x199   : > { %v4583_v34 = vsel %vm1391_vm12, %v1379_v31, %v1380_v32  ;;  %v1584_v14 = vrot.slane %v1530_v33, 1  ;;  %v4617_v31 = vld [vmem:[#allocation2 + $0x28] sm:$0xff] }
 0x19a   : > { %v1317_v27 = vpop.f32.mrf.mxu1 }
 0x19b   : > { %v1796_v37 = vpop.f32.mrf.mxu0  ;;  %3392 = vmatmul.msk.bf16.gmra.mxu3 %vm1255_vm6, %v4383_v0  ;;  %v4591_v43 = vsel %vm1604_vm1, %v1583_v45, %v1584_v14  ;;  %v1370_v42 = vrot.slane %v1317_v27, 7 }
 0x19c   : > { %v1841_v36 = vrot.slane %v1796_v37, 7 }
 0x19e   : > { %3476 = vmatmul.msk.bf16.gmra.mxu0 %vm1255_vm6, %v4587_v39  ;;  %v1345_v46 = vpop.f32.mrf.mxu3  ;;  %v4597_v49 = vsel %vm1391_vm12, %v1840_v29, %v1841_v36 }
 0x19f   : > { %v1381_v44 = vrot.slane %v1345_v46, 7 }
 0x1a0   : > { %v1532_v50 = vpop.f32.mrf.mxu2 }
 0x1a1   : > { %v4601_v53 = vsel %vm1391_vm12, %v1380_v32, %v1381_v44  ;;  %v1585_v54 = vrot.slane %v1532_v50, 1 }
 0x1a2   : > { %v1320_v48 = vpop.f32.mrf.mxu1 }
 0x1a3   : > { %v1798_v57 = vpop.f32.mrf.mxu0  ;;  %v1371_v62 = vrot.slane %v1320_v48, 7  ;;  %v4605_v28 = vsel %vm1604_vm1, %v1584_v14, %v1585_v54 }
 0x1a4   : > { %v1842_v60 = vrot.slane %v1798_v57, 7 }
 0x1a5   : > { %3306 = vmatmul.msk.bf16.gmra.mxu1 %vm1255_vm6, %v4444_v10  ;;  %3325 = vmatmul.msk.bf16.gmra.mxu2 %vm1255_vm6, %v4450_v13  ;;  %v4613_v61 = vsel %vm1391_vm12, %v1370_v42, %v1371_v62 }
 0x1a6   : > { %v1347_v59 = vpop.f32.mrf.mxu3 }
 0x1a7   : > { %v1382_v45 = vrot.slane %v1347_v59, 7 }
 0x1a8   : > { %v1535_v7 = vpop.f32.mrf.mxu2 }
 0x1a9   : > { %v1586_v36 = vrot.slane %v1535_v7, 1 }
 0x1aa   : > { %v1322_v9 = vpop.f32.mrf.mxu1 }
 0x1ab   : > { %v1801_v18 = vpop.f32.mrf.mxu0  ;;  %3393 = vmatmul.msk.bf16.gmra.mxu3 %vm1255_vm6, %v4400_v11  ;;  %v1372_v29 = vrot.slane %v1322_v9, 7 }
 0x1ac   : > { %v1843_v20 = vrot.slane %v1801_v18, 7 }
 0x1ad   : > { %v4623_v32 = vsel %vm1391_vm12, %v1371_v62, %v1372_v29 }
 0x1ae   : > { %3477 = vmatmul.msk.bf16.gmra.mxu0 %vm1255_vm6, %v4617_v31  ;;  %v1350_v10 = vpop.f32.mrf.mxu3  ;;  %v4627_v33 = vsel %vm1391_vm12, %v1842_v60, %v1843_v20 }
 0x1af   : > { %v1383_v14 = vrot.slane %v1350_v10, 7  ;;  %v4651_v10 = vld [vmem:[#allocation2 + $0x30] sm:$0xff] }
 0x1b0   : > { %v1537_v27 = vpop.f32.mrf.mxu2 }
 0x1b1   : > { %v4631_v37 = vsel %vm1391_vm12, %v1382_v45, %v1383_v14  ;;  %v1587_v46 = vrot.slane %v1537_v27, 1 }
 0x1b2   : > { %v1325_v44 = vpop.f32.mrf.mxu1 }
 0x1b3   : > { %v1803_v50 = vpop.f32.mrf.mxu0  ;;  %v4635_v48 = vsel %vm1604_vm1, %v1586_v36, %v1587_v46 }
 0x1b4   : > { %v1844_v54 = vrot.slane %v1803_v50, 7 }
 0x1b5   : > { %3307 = vmatmul.msk.bf16.gmra.mxu1 %vm1255_vm6, %v4353_v30  ;;  %3462 = vmatmul.msk.bf16.vlgmr.msra.gmra.mxu2 %vm1255_vm6, %v4557_v51  ;;  %v1373_v30 = vrot.slane %v1325_v44, 7 }
 0x1b6   : > { %v1352_v57 = vpop.f32.mrf.mxu3  ;;  %v4643_v42 = vsel %vm1391_vm12, %v1843_v20, %v1844_v54 }
 0x1b7   : > { %v1384_v62 = vrot.slane %v1352_v57, 7 }
 0x1b8   : > { %v1540_v59 = vpop.f32.mrf.mxu2 }
 0x1b9   : > { %v4647_v7 = vsel %vm1391_vm12, %v1383_v14, %v1384_v62  ;;  %v1588_v9 = vrot.slane %v1540_v59, 1 }
 0x1ba   : > { %5389 = vst [vmem:[#allocation5_spill] sm:$0xff] %v4647_v7  ;;  %v1327_v18 = vpop.f32.mrf.mxu1 }
 0x1bb   : > { %v1806_v60 = vpop.f32.mrf.mxu0  ;;  %3394 = vmatmul.msk.bf16.gmra.mxu3 %vm1255_vm6, %v4414_v58  ;;  %v1374_v29 = vrot.slane %v1327_v18, 7  ;;  %v4655_v20 = vsel %vm1604_vm1, %v1587_v46, %v1588_v9  ;;  %v4681_v58 = vld [vmem:[#allocation2 + $0x38] sm:$0xff] }
 0x1bc   : > { %v1845_v54 = vrot.slane %v1806_v60, 7 }
 0x1bd   : > { %v4661_v14 = vsel %vm1391_vm12, %v1373_v30, %v1374_v29 }
 0x1be   : > { %3478 = vmatmul.msk.bf16.gmra.mxu0 %vm1255_vm6, %v4651_v10  ;;  %v1355_v45 = vpop.f32.mrf.mxu3 }
 0x1bf   : > { %v1385_v9 = vrot.slane %v1355_v45, 7 }
 0x1c0   : > { %v1542_v27 = vpop.f32.mrf.mxu2 }
 0x1c2   : > { %v1330_v36 = vpop.f32.mrf.mxu1 }
 0x1c3   : > { %v1808_v50 = vpop.f32.mrf.mxu0  ;;  %v1375_v44 = vrot.slane %v1330_v36, 7 }
 0x1c4   : > { %v1846_v57 = vrot.slane %v1808_v50, 7 }
 0x1c5   : > { %3308 = vmatmul.msk.bf16.gmra.mxu1 %vm1255_vm6, %v4375_v63  ;;  %3463 = vmatmul.msk.bf16.gmra.mxu2 %vm1255_vm6, %v4587_v39  ;;  %v4669_v62 = vsel %vm1391_vm12, %v1374_v29, %v1375_v44  ;;  %v1589_v63 = vrot.slane %v1542_v27, 1  ;;  %v5391_v27 = vrot.slane %v4529_v1, 7 }
 0x1c6   : > { %v1357_v46 = vpop.f32.mrf.mxu3  ;;  %v4673_v59 = vsel %vm1391_vm12, %v1845_v54, %v1846_v57 }
 0x1c7   : > { %v1386_v18 = vrot.slane %v1357_v46, 7 }
 0x1c8   : > { %v1545_v60 = vpop.f32.mrf.mxu2 }
 0x1c9   : > { %v4677_v30 = vsel %vm1391_vm12, %v1385_v9, %v1386_v18  ;;  %v1590_v36 = vrot.slane %v1545_v60, 1 }
 0x1ca   : > { %5390 = vst [vmem:[#allocation6_spill] sm:$0xff] %v4677_v30  ;;  %v1332_v50 = vpop.f32.mrf.mxu1 }
 0x1cb   : > { %v1811_v41 = vpop.f32.mrf.mxu0  ;;  %3395 = vmatmul.msk.bf16.gmra.mxu3 %vm1255_vm6, %v4432_v24  ;;  %v1376_v29 = vrot.slane %v1332_v50, 7  ;;  %v4685_v45 = vsel %vm1604_vm1, %v1589_v63, %v1590_v36 }
 0x1cc   : > { %v1847_v44 = vrot.slane %v1811_v41, 7 }
 0x1cd   : > { %v4693_v46 = vsel %vm1391_vm12, %v1376_v29, %v5391_v27  ;;  %v1365_v29 = vrot.slane %v4512_v26, 7 }
 0x1ce   : > { %3479 = vmatmul.msk.bf16.gmra.mxu0 %vm1255_vm6, %v4681_v58  ;;  %v1360_v54 = vpop.f32.mrf.mxu3  ;;  %v4697_v9 = vsel %vm1391_vm12, %v1846_v57, %v1847_v44  ;;  %v1366_v44 = vrot.slane %v4521_v21, 7  ;;  %v4720_v21 = vld [vmem:[#allocation2 + $0x40] sm:$0xff] }
 0x1cf   : > { %v1387_v41 = vrot.slane %v1360_v54, 7 }
 0x1d0   : > { %v1547_v60 = vpop.f32.mrf.mxu2 }
 0x1d1   : > { %v4701_v63 = vsel %vm1391_vm12, %v1386_v18, %v1387_v41  ;;  %v1591_v50 = vrot.slane %v1547_v60, 1  ;;  %v1406_v60 = vsel %vm1391_vm12, %v1365_v29, %v1366_v44 }
 0x1d2   : > { %5392 = vst [vmem:[#allocation7_spill] sm:$0xff] %v4701_v63  ;;  %v1438_v24 = vpop.f32.mrf.mxu1 }
 0x1d3   : > { %v1813_v30 = vpop.f32.mrf.mxu0  ;;  %v4705_v1 = vsel %vm1604_vm1, %v1590_v36, %v1591_v50  ;;  %v1832_v36 = vrot.slane %v4467_v25, 7 }
 0x1d4   : > { %v1848_v63 = vrot.slane %v1813_v30, 7 }
 0x1d5   : > { %3309 = vmatmul.msk.bf16.gmra.mxu1 %vm1255_vm6, %v4396_v47  ;;  %3464 = vmatmul.msk.bf16.gmra.mxu2 %vm1255_vm6, %v4617_v31 }
 0x1d6   : > { %v1362_v57 = vpop.f32.mrf.mxu3 }
 0x1d7   : > { %v1388_v18 = vrot.slane %v1362_v57, 7 }
 0x1d8   : > { %v1550_v54 = vpop.f32.mrf.mxu2 }
 0x1d9   : > { %v1407_v27 = vsel %vm1391_vm12, %v1388_v18, %v1365_v29 }
 0x1da   : > { %v1490_v41 = vadd.f32 %v1438_v24, %v1407_v27  ;;  %v1440_v47 = vpop.f32.mrf.mxu1  ;;  %v5356_v24 = vrot.slane %v4452_v12, 7  ;;  %v1592_v27 = vrot.slane %v1550_v54, 1 }
 0x1db   : > { %v1816_v50 = vpop.f32.mrf.mxu0  ;;  %3396 = vmatmul.msk.bf16.gmra.mxu3 %vm1255_vm6, %v4456_v15  ;;  %v1491_v26 = vadd.f32 %v1440_v47, %v1406_v60 }
 0x1dc   : > { %v1849_v7 = vrot.slane %v1816_v50, 7  ;;  %v4723_v57 = vadd.f32 %v4538_v23, %v1490_v41  ;;  %v1869_v30 = vsel %vm1391_vm12, %v5356_v24, %v1832_v36 }
 0x1dd   : > { %v1622_v25 = vadd.f32 %v4561_v16, %v1491_v26 }
 0x1de   : > { %3480 = vmatmul.msk.bf16.gmra.mxu0 %vm1255_vm6, %v4720_v21  ;;  %v4729_v29 = vpop.f32.mrf.mxu3  ;;  %v4733_v44 = vsel %vm1391_vm12, %v1848_v63, %v1849_v7 }
 0x1df   : > { %v1872_v23 = vadd.f32 %v1869_v30, %v1622_v25 }
 0x1e0   : > { %v1552_v18 = vpop.f32.mrf.mxu2 }
 0x1e1   : > { %v1593_v41 = vrot.slane %v1552_v18, 1 }
 0x1e2   : > { %v1443_v60 = vpop.f32.mrf.mxu1 }
 0x1e3   : > { %v1818_v16 = vpop.f32.mrf.mxu0  ;;  %v4741_v50 = vsel %vm1604_vm1, %v1592_v27, %v1593_v41 }
 0x1e4   : > { %v1850_v47 = vrot.slane %v1818_v16, 7 }
 0x1e5   : > { %3310 = vmatmul.msk.bf16.gmra.mxu1 %vm1255_vm6, %v4410_v2  ;;  %3465 = vmatmul.msk.bf16.gmra.mxu2 %vm1255_vm6, %v4651_v10  ;;  %v4756_v2 = vld [vmem:[#allocation2 + $0x48] sm:$0xff] }
 0x1e6   : > { %v1903_v63 = vpop.f32.mrf.mxu3  ;;  %v4749_v36 = vsel %vm1391_vm12, %v1849_v7, %v1850_v47 }
 0x1e7   : > { %v4751_v54 = vadd.f32 %v1903_v63, %v1872_v23 }
 0x1e8   : > { %v1555_v26 = vpop.f32.mrf.mxu2 }
 0x1e9   : > { %5393 = vst [vmem:[#allocation8_spill] sm:$0xff] %v4751_v54  ;;  %v1594_v25 = vrot.slane %v1555_v26, 1 }
 0x1ea   : > { %v1444_v30 = vpop.f32.mrf.mxu1 }
 0x1eb   : > { %v1821_v18 = vpop.f32.mrf.mxu0  ;;  %3397 = vmatmul.msk.bf16.gmra.mxu3 %vm1255_vm6, %v4478_v17  ;;  %v1492_v27 = vadd.f32 %v1444_v30, %v4567_v3  ;;  %v4760_v60 = vsel %vm1604_vm1, %v1593_v41, %v1594_v25 }
 0x1ec   : > { %v1851_v24 = vrot.slane %v1821_v18, 7 }
 0x1ed   : > { %v1623_v7 = vadd.f32 %v4591_v43, %v1492_v27 }
 0x1ee   : > { %3481 = vmatmul.msk.bf16.gmra.mxu0 %vm1255_vm6, %v4756_v2  ;;  %v1906_v23 = vpop.f32.mrf.mxu3 }
 0x1ef   : > { %v1873_v16 = vadd.f32 %v4492_v19, %v1623_v7  ;;  %v4781_v23 = vld [vmem:[#allocation2 + $0x50] sm:$0xff] }
 0x1f0   : > { %v1557_v47 = vpop.f32.mrf.mxu2 }
 0x1f2   : > { %v1447_v63 = vpop.f32.mrf.mxu1 }
 0x1f3   : > { %v1823_v26 = vpop.f32.mrf.mxu0  ;;  %v1493_v3 = vadd.f32 %v1447_v63, %v4575_v22  ;;  %v1595_v22 = vrot.slane %v1557_v47, 1 }
 0x1f4   : > { %v1852_v30 = vrot.slane %v1823_v26, 7 }
 0x1f5   : > { %v1624_v54 = vadd.f32 %v4605_v28, %v1493_v3  ;;  %3311 = vmatmul.msk.bf16.gmra.mxu1 %vm1255_vm6, %v4428_v4  ;;  %3466 = vmatmul.msk.bf16.gmra.mxu2 %vm1255_vm6, %v4681_v58 }
 0x1f6   : > { %v1907_v43 = vpop.f32.mrf.mxu3  ;;  %v4774_v41 = vsel %vm1391_vm12, %v1851_v24, %v1852_v30 }
 0x1f7   : > { %v4776_v19 = vadd.f32 %v1907_v43, %v1873_v16  ;;  %v1874_v25 = vadd.f32 %v4506_v56, %v1624_v54 }
 0x1f8   : > { %v1560_v18 = vpop.f32.mrf.mxu2 }
 0x1f9   : > { %v1596_v27 = vrot.slane %v1560_v18, 1 }
 0x1fa   : > { %v1449_v7 = vpop.f32.mrf.mxu1 }
 0x1fb   : > { %v1826_v28 = vpop.f32.mrf.mxu0  ;;  %3398 = vmatmul.msk.bf16.gmra.mxu3 %vm1255_vm6, %v4500_v6  ;;  %v4785_v63 = vsel %vm1604_vm1, %v1595_v22, %v1596_v27 }
 0x1fc   : > { %v1853_v4 = vrot.slane %v1826_v28, 7  ;;  %v5394_v28 = vrot.slane %v4452_v12, 7 }
 0x1fe   : > { %3482 = vmatmul.msk.bf16.gmra.mxu0 %vm1255_vm6, %v4781_v23  ;;  %v1910_v24 = vpop.f32.mrf.mxu3  ;;  %v4791_v56 = vsel %vm1391_vm12, %v1852_v30, %v1853_v4 }
 0x1ff   : > { %v4793_v54 = vadd.f32 %v1910_v24, %v1874_v25 }
 0x200   : > { %v1562_v16 = vpop.f32.mrf.mxu2 }
 0x201   : > { %v1597_v47 = vrot.slane %v1562_v16, 1  ;;  %v4819_v16 = vld [vmem:[#allocation2 + $0x58] sm:$0xff] }
 0x202   : > { %v1451_v26 = vpop.f32.mrf.mxu1 }
 0x203   : > { %v1828_v3 = vpop.f32.mrf.mxu0  ;;  %v1494_v43 = vadd.f32 %v1451_v26, %v4613_v61  ;;  %v4798_v22 = vsel %vm1604_vm1, %v1596_v27, %v1597_v47 }
 0x204   : > { %v1854_v18 = vrot.slane %v1828_v3, 7 }
 0x205   : > { %v1625_v7 = vadd.f32 %v4635_v48, %v1494_v43  ;;  %3312 = vmatmul.msk.bf16.gmra.mxu1 %vm1255_vm6, %v4450_v13  ;;  %3467 = vmatmul.msk.bf16.gmra.mxu2 %vm1255_vm6, %v4720_v21 }
 0x206   : > { %v1870_v30 = vsel %vm1391_vm12, %v1854_v18, %v5394_v28  ;;  %v1912_v25 = vpop.f32.mrf.mxu3  ;;  %v3756_v28 = vld [vmem:[#allocation2 + $0xc] sm:$0xff] }
 0x207   : > { %v1871_v61 = vadd.f32 %v1870_v30, %v4723_v57  ;;  %v1875_v4 = vadd.f32 %v4533_v38, %v1625_v7 }
 0x208   : > { %v1565_v27 = vpop.f32.mrf.mxu2 }
 0x209   : > { %v4812_v24 = vadd.f32 %v4729_v29, %v1871_v61  ;;  %v1598_v3 = vrot.slane %v1565_v27, 1 }
 0x20a   : > { %v1453_v48 = vpop.f32.mrf.mxu1 }
 0x20b   : > { %v4814_v12 = vpop.f32.mrf.mxu0  ;;  %3399 = vmatmul.msk.bf16.gmra.mxu3 %vm1255_vm6, %v4525_v8  ;;  %v1495_v13 = vadd.f32 %v1453_v48, %v4623_v32  ;;  %v4841_v48 = vld [vmem:[#allocation2 + $0x60] sm:$0xff] }
 0x20d   : > { %v1626_v47 = vadd.f32 %v4655_v20, %v1495_v13 }
 0x20e   : > { %3483 = vmatmul.msk.bf16.gmra.mxu0 %vm1255_vm6, %v4819_v16  ;;  %v1914_v38 = vpop.f32.mrf.mxu3 }
 0x20f   : > { %v4824_v57 = vadd.f32 %v1914_v38, %v1875_v4  ;;  %v1876_v29 = vadd.f32 %v4546_v40, %v1626_v47 }
 0x210   : > { %v1567_v26 = vpop.f32.mrf.mxu2 }
 0x211   : > { %v1599_v43 = vrot.slane %v1567_v26, 1 }
 0x212   : > { %v1456_v18 = vpop.f32.mrf.mxu1 }
 0x213   : > { %v4827_v7 = vpop.f32.mrf.mxu0  ;;  %v4831_v32 = vsel %vm1604_vm1, %v1598_v3, %v1599_v43 }
 0x215   : > { %3401 = vmatmul.msk.bf16.vlgmr.msra.gmra.mxu1 %vm1255_vm6, %v3756_v28  ;;  %3468 = vmatmul.msk.bf16.gmra.mxu2 %vm1255_vm6, %v4756_v2  ;;  %v3757_v28 = vld [vmem:[#allocation2 + $0x14] sm:$0xff] }
 0x216   : > { %v1916_v20 = vpop.f32.mrf.mxu3 }
 0x217   : > { %v4836_v30 = vadd.f32 %v1916_v20, %v1876_v29 }
 0x218   : > { %v1570_v40 = vpop.f32.mrf.mxu2 }
 0x219   : > { %v1600_v25 = vrot.slane %v1570_v40, 1 }
 0x21a   : > { %v1457_v61 = vpop.f32.mrf.mxu1 }
 0x21b   : > { %v2369_v4 = vpop.f32.mrf.mxu0  ;;  %3488 = vmatmul.msk.bf16.vlgmr.msra.gmra.mxu3 %vm1255_vm6, %v4557_v51  ;;  %v1496_v27 = vadd.f32 %v1457_v61, %v4661_v14  ;;  %v4845_v13 = vsel %vm1604_vm1, %v1599_v43, %v1600_v25 }
 0x21d   : > { %v1627_v47 = vadd.f32 %v4685_v45, %v1496_v27 }
 0x21e   : > { %3484 = vmatmul.msk.bf16.gmra.mxu0 %vm1255_vm6, %v4841_v48  ;;  %v1919_v38 = vpop.f32.mrf.mxu3 }
 0x21f   : > { %v1877_v29 = vadd.f32 %v4579_v5, %v1627_v47 }
 0x220   : > { %v1572_v26 = vpop.f32.mrf.mxu2 }
 0x221   : > { %v1601_v40 = vrot.slane %v1572_v26, 1 }
 0x222   : > { %v1460_v3 = vpop.f32.mrf.mxu1 }
 0x223   : > { %v4851_v18 = vpop.f32.mrf.mxu0  ;;  %v1497_v51 = vadd.f32 %v1460_v3, %v4669_v62  ;;  %v4865_v62 = vld [vmem:[#allocation2 + $0x68] sm:$0xff] }
 0x225   : > { %v1628_v14 = vadd.f32 %v4705_v1, %v1497_v51  ;;  %3402 = vmatmul.msk.bf16.gmra.mxu1 %vm1255_vm6, %v3757_v28  ;;  %3469 = vmatmul.msk.bf16.gmra.mxu2 %vm1255_vm6, %v4781_v23 }
 0x226   : > { %v1920_v45 = vpop.f32.mrf.mxu3 }
 0x227   : > { %v4858_v43 = vadd.f32 %v1920_v45, %v1877_v29  ;;  %v1878_v20 = vadd.f32 %v4597_v49, %v1628_v14  ;;  %v3758_v14 = vld [vmem:[#allocation2 + $0x1c] sm:$0xff] }
 0x228   : > { %v1575_v5 = vpop.f32.mrf.mxu2 }
 0x229   : > { %v1602_v25 = vrot.slane %v1575_v5, 1 }
 0x22a   : > { %v1462_v61 = vpop.f32.mrf.mxu1 }
 0x22b   : > { %v4861_v4 = vpop.f32.mrf.mxu0  ;;  %3489 = vmatmul.msk.bf16.gmra.mxu3 %vm1255_vm6, %v4587_v39  ;;  %v4869_v1 = vsel %vm1604_vm1, %v1601_v40, %v1602_v25 }
 0x22e   : > { %3485 = vmatmul.msk.bf16.gmra.mxu0 %vm1255_vm6, %v4865_v62  ;;  %v1923_v27 = vpop.f32.mrf.mxu3 }
 0x22f   : > { %v4873_v49 = vadd.f32 %v1923_v27, %v1878_v20 }
 0x230   : > { %v1577_v47 = vpop.f32.mrf.mxu2 }
 0x231   : > { %v1603_v38 = vrot.slane %v1577_v47, 1 }
 0x232   : > { %v1464_v29 = vpop.f32.mrf.mxu1 }
 0x233   : > { %v2375_v26 = vpop.f32.mrf.mxu0  ;;  %v1498_v3 = vadd.f32 %v1464_v29, %v4693_v46  ;;  %v4878_v39 = vsel %vm1604_vm1, %v1602_v25, %v1603_v38 }
 0x235   : > { %v1629_v51 = vadd.f32 %v4741_v50, %v1498_v3  ;;  %3403 = vmatmul.msk.bf16.gmra.mxu1 %vm1255_vm6, %v3758_v14  ;;  %3470 = vmatmul.msk.bf16.gmra.mxu2 %vm1255_vm6, %v4819_v16  ;;  %v4892_v50 = vld [vmem:[#allocation2 + $0x70] sm:$0xff] }
 0x236   : > { %v1925_v28 = vpop.f32.mrf.mxu3 }
 0x237   : > { %v1879_v45 = vadd.f32 %v4627_v33, %v1629_v51 }
 0x238   : > { %v4885_v20 = vpop.f32.mrf.mxu2 }
 0x23a   : > { %v1466_v5 = vpop.f32.mrf.mxu1 }
 0x23b   : > { %v4887_v40 = vpop.f32.mrf.mxu0  ;;  %3490 = vmatmul.msk.bf16.gmra.mxu3 %vm1255_vm6, %v4617_v31  ;;  %v1499_v46 = vadd.f32 %v1466_v5, %v4553_v55 }
 0x23d   : > { %v1630_v25 = vadd.f32 %v4760_v60, %v1499_v46 }
 0x23e   : > { %3486 = vmatmul.msk.bf16.gmra.mxu0 %vm1255_vm6, %v4892_v50  ;;  %v1927_v61 = vpop.f32.mrf.mxu3 }
 0x23f   : > { %v4897_v27 = vadd.f32 %v1927_v61, %v1879_v45  ;;  %v1880_v33 = vadd.f32 %v4643_v42, %v1630_v25 }
 0x240   : > { %v4900_v47 = vpop.f32.mrf.mxu2 }
 0x242   : > { %v1469_v38 = vpop.f32.mrf.mxu1 }
 0x243   : > { %v4902_v29 = vpop.f32.mrf.mxu0 }
 0x245   : > { %3404 = vmatmul.msk.bf16.gmra.mxu1 %vm1255_vm6, %v4361_v35  ;;  %3471 = vmatmul.msk.bf16.gmra.mxu2 %vm1255_vm6, %v4841_v48 }
 0x246   : > { %v1929_v55 = vpop.f32.mrf.mxu3 }
 0x247   : > { %v4908_v31 = vadd.f32 %v1929_v55, %v1880_v33 }
 0x248   : > { %v2239_v60 = vpop.f32.mrf.mxu2 }
 0x249   : > { %v2296_v45 = vrot.slane %v2239_v60, 7 }
 0x24a   : > { %v1470_v26 = vpop.f32.mrf.mxu1 }
 0x24b   : > { %v2382_v3 = vpop.f32.mrf.mxu0  ;;  %3491 = vmatmul.msk.bf16.gmra.mxu3 %vm1255_vm6, %v4651_v10  ;;  %v1500_v42 = vadd.f32 %v1470_v26, %v4583_v34 }
 0x24d   : > { %v1631_v51 = vadd.f32 %v4785_v63, %v1500_v42 }
 0x24e   : > { %v1932_v14 = vpop.f32.mrf.mxu3 }
 0x24f   : > { %v1881_v28 = vadd.f32 %v4673_v59, %v1631_v51 }
 0x250   : > { %v2241_v35 = vpop.f32.mrf.mxu2 }
 0x251   : > { %v2297_v5 = vrot.slane %v2241_v35, 7 }
 0x252   : > { %v1473_v46 = vpop.f32.mrf.mxu1 }
 0x253   : > { %v4915_v25 = vpop.f32.mrf.mxu0  ;;  %v4919_v61 = vsel %vm1391_vm12, %v2296_v45, %v2297_v5  ;;  %v1501_v33 = vadd.f32 %v1473_v46, %v4601_v53 }
 0x255   : > { %v1632_v10 = vadd.f32 %v4798_v22, %v1501_v33  ;;  %3405 = vmatmul.msk.bf16.gmra.mxu1 %vm1255_vm6, %v4383_v0  ;;  %3472 = vmatmul.msk.bf16.gmra.mxu2 %vm1255_vm6, %v4865_v62 }
 0x256   : > { %v1933_v34 = vpop.f32.mrf.mxu3 }
 0x257   : > { %v4927_v59 = vadd.f32 %v1933_v34, %v1881_v28  ;;  %v1882_v63 = vadd.f32 %v4697_v9, %v1632_v10 }
 0x258   : > { %v2244_v38 = vpop.f32.mrf.mxu2 }
 0x259   : > { %v2298_v55 = vrot.slane %v2244_v38, 7 }
 0x25a   : > { %v1475_v60 = vpop.f32.mrf.mxu1 }
 0x25b   : > { %v4930_v26 = vpop.f32.mrf.mxu0  ;;  %3492 = vmatmul.msk.bf16.gmra.mxu3 %vm1255_vm6, %v4681_v58  ;;  %v4936_v53 = vsel %vm1391_vm12, %v2297_v5, %v2298_v55 }
 0x25e   : > { %v1936_v0 = vpop.f32.mrf.mxu3 }
 0x25f   : > { %v4938_v22 = vadd.f32 %v1936_v0, %v1882_v63 }
 0x260   : > { %v2246_v3 = vpop.f32.mrf.mxu2 }
 0x261   : > { %v2299_v45 = vrot.slane %v2246_v3, 7  ;;  %v5396_v3 = vld [vmem:[#allocation3_spill] sm:$0xff] }
 0x262   : > { %v1477_v42 = vpop.f32.mrf.mxu1 }
 0x263   : > { %v2388_v51 = vpop.f32.mrf.mxu0  ;;  %v1502_v9 = vadd.f32 %v1477_v42, %v4631_v37 }
 0x265   : > { %v1633_v14 = vadd.f32 %v4831_v32, %v1502_v9  ;;  %3406 = vmatmul.msk.bf16.gmra.mxu1 %vm1255_vm6, %v4400_v11  ;;  %3473 = vmatmul.msk.bf16.gmra.mxu2 %vm1255_vm6, %v4892_v50  ;;  %v5395_v11 = vld [vmem:[#allocation5_spill] sm:$0xff] }
 0x266   : > { %v1938_v58 = vpop.f32.mrf.mxu3 }
 0x267   : > { %v1883_v28 = vadd.f32 %v4733_v44, %v1633_v14 }
 0x268   : > { %v2249_v35 = vpop.f32.mrf.mxu2 }
 0x269   : > { %v2300_v5 = vrot.slane %v2249_v35, 7 }
 0x26a   : > { %v1479_v46 = vpop.f32.mrf.mxu1 }
 0x26b   : > { %v4947_v33 = vpop.f32.mrf.mxu0  ;;  %3493 = vmatmul.msk.bf16.gmra.mxu3 %vm1255_vm6, %v4720_v21  ;;  %v4953_v37 = vsel %vm1391_vm12, %v2299_v45, %v2300_v5  ;;  %v1503_v32 = vadd.f32 %v1479_v46, %v5395_v11 }
 0x26d   : > { %v1634_v10 = vadd.f32 %v4845_v13, %v1503_v32 }
 0x26e   : > { %v1940_v34 = vpop.f32.mrf.mxu3 }
 0x26f   : > { %v4957_v63 = vadd.f32 %v1940_v34, %v1883_v28  ;;  %v1884_v44 = vadd.f32 %v4749_v36, %v1634_v10  ;;  %v5397_v36 = vld [vmem:[#allocation6_spill] sm:$0xff] }
 0x270   : > { %v2251_v38 = vpop.f32.mrf.mxu2 }
 0x271   : > { %v2301_v55 = vrot.slane %v2251_v38, 7 }
 0x272   : > { %v1482_v60 = vpop.f32.mrf.mxu1 }
 0x273   : > { %v4960_v0 = vpop.f32.mrf.mxu0  ;;  %v4964_v21 = vsel %vm1391_vm12, %v2300_v5, %v2301_v55  ;;  %v5399_v55 = vld [vmem:[#allocation4_spill] sm:$0xff] }
 0x275   : > { %3407 = vmatmul.msk.bf16.gmra.mxu1 %vm1255_vm6, %v5396_v3 }
 0x276   : > { %v1942_v42 = vpop.f32.mrf.mxu3 }
 0x277   : > { %v4968_v51 = vadd.f32 %v1942_v42, %v1884_v44  ;;  %v5398_v44 = vld [vmem:[#allocation7_spill] sm:$0xff] }
 0x278   : > { %v2254_v13 = vpop.f32.mrf.mxu2 }
 0x279   : > { %v2302_v46 = vrot.slane %v2254_v13, 7 }
 0x27a   : > { %v1483_v9 = vpop.f32.mrf.mxu1 }
 0x27b   : > { %v2395_v14 = vpop.f32.mrf.mxu0  ;;  %3494 = vmatmul.msk.bf16.gmra.mxu3 %vm1255_vm6, %v4756_v2  ;;  %v1504_v58 = vadd.f32 %v1483_v9, %v5397_v36 }
 0x27d   : > { %v1635_v28 = vadd.f32 %v4869_v1, %v1504_v58 }
 0x27e   : > { %v1945_v35 = vpop.f32.mrf.mxu3 }
 0x27f   : > { %v1885_v45 = vadd.f32 %v4774_v41, %v1635_v28 }
 0x280   : > { %v2256_v5 = vpop.f32.mrf.mxu2 }
 0x281   : > { %v2303_v11 = vrot.slane %v2256_v5, 7 }
 0x282   : > { %v1486_v32 = vpop.f32.mrf.mxu1 }
 0x283   : > { %v4975_v10 = vpop.f32.mrf.mxu0  ;;  %v4979_v34 = vsel %vm1391_vm12, %v2302_v46, %v2303_v11  ;;  %v1505_v38 = vadd.f32 %v1486_v32, %v5398_v44 }
 0x285   : > { %v1636_v2 = vadd.f32 %v4878_v39, %v1505_v38  ;;  %3408 = vmatmul.msk.bf16.gmra.mxu1 %vm1255_vm6, %v5399_v55 }
 0x286   : > { %v1946_v1 = vpop.f32.mrf.mxu3 }
 0x287   : > { %v4985_v60 = vadd.f32 %v1946_v1, %v1885_v45  ;;  %v1886_v41 = vadd.f32 %v4791_v56, %v1636_v2 }
 0x288   : > { %v2259_v3 = vpop.f32.mrf.mxu2 }
 0x289   : > { %v2304_v42 = vrot.slane %v2259_v3, 7 }
 0x28a   : > { %v1488_v13 = vpop.f32.mrf.mxu1 }
 0x28b   : > { %v4988_v9 = vpop.f32.mrf.mxu0  ;;  %3495 = vmatmul.msk.bf16.gmra.mxu3 %vm1255_vm6, %v4781_v23  ;;  %v4994_v14 = vsel %vm1391_vm12, %v2303_v11, %v2304_v42 }
 0x28e   : > { %v1949_v39 = vpop.f32.mrf.mxu3 }
 0x28f   : > { %v4996_v36 = vadd.f32 %v1949_v39, %v1886_v41 }
 0x290   : > { %v2261_v58 = vpop.f32.mrf.mxu2 }
 0x291   : > { %v2305_v5 = vrot.slane %v2261_v58, 7  ;;  %v5357_v58 = vrot.slane %v4885_v20, 7 }
 0x292   : > { %v1983_v28 = vpop.f32.mrf.mxu1 }
 0x293   : > { %v2401_v35 = vpop.f32.mrf.mxu0  ;;  %v2043_v23 = vrot.slane %v1983_v28, 1 }
 0x295   : > { %3409 = vmatmul.msk.bf16.gmra.mxu1 %vm1255_vm6, %v4456_v15 }
 0x296   : > { %v1951_v56 = vpop.f32.mrf.mxu3 }
 0x297   : > { %v5400_v56 = vld [vmem:[#allocation8_spill] sm:$0xff] }
 0x298   : > { %v2264_v45 = vpop.f32.mrf.mxu2 }
 0x299   : > { %v2306_v46 = vrot.slane %v2264_v45, 7 }
 0x29a   : > { %v1985_v32 = vpop.f32.mrf.mxu1 }
 0x29b   : > { %v5000_v44 = vpop.f32.mrf.mxu0  ;;  %3496 = vmatmul.msk.bf16.gmra.mxu3 %vm1255_vm6, %v4819_v16  ;;  %v5006_v11 = vsel %vm1391_vm12, %v2305_v5, %v2306_v46  ;;  %v2044_v38 = vrot.slane %v1985_v32, 1  ;;  %v2295_v16 = vrot.slane %v4900_v47, 7 }
 0x29d   : > { %v2082_v2 = vsel %vm1604_vm1, %v2043_v23, %v2044_v38  ;;  %v2332_v47 = vsel %vm1391_vm12, %v5357_v58, %v2295_v16 }
 0x29e   : > { %v2446_v15 = vpop.f32.mrf.mxu3  ;;  %v5011_v55 = vadd.f32 %v2082_v2, %v4812_v24 }
 0x29f   : > { %v2506_v35 = vrot.slane %v2446_v15, 1 }
 0x2a0   : > { %v2266_v1 = vpop.f32.mrf.mxu2 }
 0x2a1   : > { %v2307_v41 = vrot.slane %v2266_v1, 7 }
 0x2a2   : > { %v1988_v3 = vpop.f32.mrf.mxu1 }
 0x2a3   : > { %v5013_v42 = vpop.f32.mrf.mxu0  ;;  %v5018_v13 = vsel %vm1391_vm12, %v2306_v46, %v2307_v41  ;;  %v2045_v39 = vrot.slane %v1988_v3, 1  ;;  %v5040_v41 = vld [vmem:[%s5350_s6] ss:$0 sm:$0xff] }
 0x2a5   : > { %v2081_v28 = vsel %vm1604_vm1, %v2044_v38, %v2045_v39  ;;  %3410 = vmatmul.msk.bf16.gmra.mxu1 %vm1255_vm6, %v4478_v17 }
 0x2a6   : > { %v2448_v24 = vpop.f32.mrf.mxu3  ;;  %v2084_v45 = vadd.f32 %v2081_v28, %v5400_v56 }
 0x2a7   : > { %v2507_v5 = vrot.slane %v2448_v24, 1 }
 0x2a8   : > { %v2335_v46 = vadd.f32 %v2332_v47, %v2084_v45  ;;  %v2269_v32 = vpop.f32.mrf.mxu2 }
 0x2a9   : > { %v5032_v23 = vsel %vm1604_vm1, %v2506_v35, %v2507_v5  ;;  %v2308_v39 = vrot.slane %v2269_v32, 7 }
 0x2aa   : > { %v1990_v38 = vpop.f32.mrf.mxu1  ;;  %v2417_v1 = vadd.f32 %v4827_v7, %v2335_v46 }
 0x2ab   : > { %v2408_v2 = vpop.f32.mrf.mxu0  ;;  %3497 = vmatmul.msk.bf16.gmra.mxu3 %vm1255_vm6, %v4841_v48  ;;  %v2046_v48 = vrot.slane %v1990_v38, 1 }
 0x2ae   : > { %v2451_v17 = vpop.f32.mrf.mxu3 }
 0x2af   : > { %v2508_v15 = vrot.slane %v2451_v17, 1 }
 0x2b0   : > { %v2271_v3 = vpop.f32.mrf.mxu2 }
 0x2b1   : > { %v2544_v16 = vsel %vm1604_vm1, %v2507_v5, %v2508_v15  ;;  %v2309_v28 = vrot.slane %v2271_v3, 7 }
 0x2b2   : > { %v2547_v24 = vadd.f32 %v2544_v16, %v2417_v1  ;;  %v1993_v35 = vpop.f32.mrf.mxu1 }
 0x2b3   : > { %v5044_v56 = vpop.f32.mrf.mxu0  ;;  %v5048_v45 = vsel %vm1391_vm12, %v2308_v39, %v2309_v28  ;;  %v2047_v47 = vrot.slane %v1993_v35, 1 }
 0x2b4   : > { %v5051_v7 = vadd.f32 %v5040_v41, %v2547_v24 }
 0x2b5   : > { %v2080_v5 = vsel %vm1604_vm1, %v2046_v48, %v2047_v47  ;;  %3411 = vmatmul.msk.bf16.gmra.mxu1 %vm1255_vm6, %v4500_v6 }
 0x2b6   : > { %v3501_v46 = vmul.f32 -1.442695, %v5051_v7  ;;  %v2453_v32 = vpop.f32.mrf.mxu3  ;;  %v2085_v2 = vadd.f32 %v2080_v5, %v4776_v19 }
 0x2b8   : > { %3691 = vpow2.f32 %v3501_v46  ;;  %v2336_v38 = vadd.f32 %v4919_v61, %v2085_v2  ;;  %v2274_v17 = vpop.f32.mrf.mxu2  ;;  %v2509_v46 = vrot.slane %v2453_v32, 1 }
 0x2b9   : > { %v2310_v15 = vrot.slane %v2274_v17, 7 }
 0x2ba   : > { %v1995_v1 = vpop.f32.mrf.mxu1  ;;  %v2418_v2 = vadd.f32 %v4851_v18, %v2336_v38 }
 0x2bb   : > { %v5060_v3 = vpop.f32.mrf.mxu0  ;;  %3498 = vmatmul.msk.bf16.gmra.mxu3 %vm1255_vm6, %v4865_v62  ;;  %v5066_v16 = vsel %vm1391_vm12, %v2309_v28, %v2310_v15  ;;  %v2048_v39 = vrot.slane %v1995_v1, 1 }
 0x2bc   : > { %5401 = vst [vmem:[#allocation5_spill] sm:$0xff] %v5060_v3 }
 0x2bd   : > { %v2079_v19 = vsel %vm1604_vm1, %v2047_v47, %v2048_v39 }
 0x2be   : > { %v3692_v6 = vpop.eup %3691  ;;  %v2456_v24 = vpop.f32.mrf.mxu3  ;;  %v2086_v61 = vadd.f32 %v2079_v19, %v4793_v54 }
 0x2bf   : > { %v2630_v35 = vadd.f32 1.0, %v3692_v6  ;;  %v2510_v48 = vrot.slane %v2456_v24, 1 }
 0x2c0   : > { %v2276_v5 = vpop.f32.mrf.mxu2  ;;  %v2337_v62 = vadd.f32 %v4936_v53, %v2086_v61 }
 0x2c1   : > { %3693 = vrcp.f32 %v2630_v35  ;;  %v2543_v28 = vsel %vm1604_vm1, %v2509_v46, %v2510_v48  ;;  %v2311_v61 = vrot.slane %v2276_v5, 7  ;;  %vm2665_vm8 = vweird.f32 %v2630_v35 }
 0x2c2   : > { %v2548_v17 = vadd.f32 %v2543_v28, %v2418_v2  ;;  %v1998_v15 = vpop.f32.mrf.mxu1  ;;  %v2419_v53 = vadd.f32 %v4861_v4, %v2337_v62  ;;  %v2669_v28 = vand.u32 2147483647, %v2630_v35 }
 0x2c3   : > { %v2414_v1 = vpop.f32.mrf.mxu0 }
 0x2c4   : > { %v5076_v47 = vadd.f32 %v5040_v41, %v2548_v17  ;;  %v2049_v17 = vrot.slane %v1998_v15, 1  ;;  %vm2670_vm10 = vcmp.eq.f32.partialorder %v2669_v28, 8.507059e+37 }
 0x2c5   : > { %3412 = vmatmul.msk.bf16.gmra.mxu1 %vm1255_vm6, %v4525_v8  ;;  %v2671_v8 = vand.u32 2147483648, %v2630_v35 }
 0x2c6   : > { %v2458_v54 = vpop.f32.mrf.mxu3  ;;  %v3502_v39 = vmul.f32 -1.442695, %v5076_v47 }
 0x2c7   : > { %v3694_v32 = vpop.eup %3693  ;;  %v2511_v6 = vrot.slane %v2458_v54, 1 }
 0x2c8   : > { %v2661_v18 = vmul.f32 %v3694_v32, %v2630_v35  ;;  %3695 = vpow2.f32 %v3502_v39  ;;  %v2279_v38 = vpop.f32.mrf.mxu2  ;;  %vm2666_vm0 = vweird.f32 %v3694_v32 }
 0x2c9   : > { %v2542_v19 = vsel %vm1604_vm1, %v2510_v48, %v2511_v6  ;;  %v2312_v46 = vrot.slane %v2279_v38, 7 }
 0x2ca   : > { %v2662_v24 = vsub.f32 1.0, %v2661_v18  ;;  %v2549_v2 = vadd.f32 %v2542_v19, %v2419_v53  ;;  %v2000_v1 = vpop.f32.mrf.mxu1 }
 0x2cb   : > { %3499 = vmatmul.msk.bf16.gmra.mxu3 %vm1255_vm6, %v4892_v50  ;;  %v5088_v4 = vsel %vm1391_vm12, %v2311_v61, %v2312_v46  ;;  %v2050_v48 = vrot.slane %v2000_v1, 1  ;;  %vm2667_vm6 = vmor %vm2665_vm8, %vm2666_vm0  ;;  %v2672_v50 = vor.u32 1.1754944e-38, %v2671_v8 }
 0x2cc   : > { %v2663_v54 = vmul.f32 %v3694_v32, %v2662_v24  ;;  %v5091_v62 = vadd.f32 %v5040_v41, %v2549_v2 }
 0x2cd   : > { %v2078_v15 = vsel %vm1604_vm1, %v2049_v17, %v2050_v48 }
 0x2ce   : > { %v2664_v5 = vadd.f32 %v3694_v32, %v2663_v54  ;;  %v3503_v39 = vmul.f32 -1.442695, %v5091_v62  ;;  %v2461_v6 = vpop.f32.mrf.mxu3  ;;  %v3696_v18 = vpop.eup %3695  ;;  %v2087_v53 = vadd.f32 %v2078_v15, %v4824_v57 }
 0x2cf   : > { %v2631_v19 = vadd.f32 1.0, %v3696_v18 }
 0x2d0   : > { %v2668_v38 = vsel %vm2667_vm6, %v3694_v32, %v2664_v5  ;;  %3697 = vpow2.f32 %v3503_v39  ;;  %v2338_v35 = vadd.f32 %v4953_v37, %v2087_v53  ;;  %v2281_v61 = vpop.f32.mrf.mxu2 }
 0x2d1   : > { %v2673_v24 = vsel %vm2670_vm10, %v2672_v50, %v2668_v38  ;;  %3699 = vrcp.f32 %v2631_v19  ;;  %v2313_v8 = vrot.slane %v2281_v61, 7  ;;  %v2512_v50 = vrot.slane %v2461_v6, 1 }
 0x2d2   : > { %v2886_v2 = vmul.f32 %v2673_v24, %v5051_v7  ;;  %v2003_v17 = vpop.f32.mrf.mxu1  ;;  %v2684_v61 = vand.u32 2147483647, %v2631_v19  ;;  %vm2680_vm11 = vweird.f32 %v2631_v19 }
 0x2d3   : > { %v2051_v32 = vrot.slane %v2003_v17, 1  ;;  %v5108_v28 = vsel %vm1391_vm12, %v2312_v46, %v2313_v8  ;;  %v2420_v46 = vadd.f32 %v4887_v40, %v2338_v35  ;;  %v2686_v8 = vand.u32 2147483648, %v2631_v19 }
 0x2d4   : > { %v2902_v57 = vpack.c.bf16 %v2886_v2, %v2886_v2  ;;  %vm2685_vm13 = vcmp.eq.f32.partialorder %v2684_v61, 8.507059e+37 }
 0x2d5   : > { %v2077_v37 = vsel %vm1604_vm1, %v2050_v48, %v2051_v32  ;;  %v2687_v40 = vor.u32 1.1754944e-38, %v2686_v8 }
 0x2d6   : > { %v3698_v1 = vpop.eup %3697  ;;  %2918 = vst.msk [vmem:[%s5104_s16 + $0x4] sm:$0xf] %vm1108_vm2, %v2902_v57  ;;  %v2463_v7 = vpop.f32.mrf.mxu3  ;;  %v2088_v5 = vadd.f32 %v2077_v37, %v4836_v30 }
 0x2d7   : > { %v2632_v54 = vadd.f32 1.0, %v3698_v1  ;;  %v2513_v39 = vrot.slane %v2463_v7, 1  ;;  %v3700_v15 = vpop.eup %3699 }
 0x2d8   : > { %v2676_v18 = vmul.f32 %v3700_v15, %v2631_v19  ;;  %v2284_v53 = vpop.f32.mrf.mxu2  ;;  %v2339_v38 = vadd.f32 %v4964_v21, %v2088_v5  ;;  %vm2681_vm9 = vweird.f32 %v3700_v15 }
 0x2d9   : > { %3701 = vrcp.f32 %v2632_v54  ;;  %v2541_v2 = vsel %vm1604_vm1, %v2512_v50, %v2513_v39  ;;  %vm2682_vm14 = vmor %vm2680_vm11, %vm2681_vm9  ;;  %v2699_v37 = vand.u32 2147483647, %v2632_v54  ;;  %v2701_v8 = vand.u32 2147483648, %v2632_v54 }
 0x2da   : > { %v2677_v24 = vsub.f32 1.0, %v2676_v18  ;;  %v2005_v48 = vpop.f32.mrf.mxu1  ;;  %v2550_v17 = vadd.f32 %v2541_v2, %v2420_v46  ;;  %v2314_v18 = vrot.slane %v2284_v53, 7  ;;  %v2421_v46 = vadd.f32 %v4902_v29, %v2339_v38 }
 0x2db   : > { %vm2695_vm3 = vweird.f32 %v2632_v54  ;;  %vm2700_vm5 = vcmp.eq.f32.partialorder %v2699_v37, 8.507059e+37 }
 0x2dc   : > { %v2678_v57 = vmul.f32 %v3700_v15, %v2677_v24  ;;  %v5120_v30 = vadd.f32 %v5040_v41, %v2550_v17 }
 0x2de   : > { %v2466_v32 = vpop.f32.mrf.mxu3  ;;  %v2679_v1 = vadd.f32 %v3700_v15, %v2678_v57  ;;  %v3504_v7 = vmul.f32 -1.442695, %v5120_v30  ;;  %v2052_v57 = vrot.slane %v2005_v48, 1  ;;  %v2702_v48 = vor.u32 1.1754944e-38, %v2701_v8 }
 0x2df   : > { %v3702_v6 = vpop.eup %3701  ;;  %v2514_v21 = vrot.slane %v2466_v32, 1 }
 0x2e0   : > { %v2691_v35 = vmul.f32 %v3702_v6, %v2632_v54  ;;  %v2683_v5 = vsel %vm2682_vm14, %v3700_v15, %v2679_v1  ;;  %v2286_v50 = vpop.f32.mrf.mxu2  ;;  %3703 = vpow2.f32 %v3504_v7  ;;  %vm2696_vm15 = vweird.f32 %v3702_v6 }
 0x2e1   : > { %v2540_v24 = vsel %vm1604_vm1, %v2513_v39, %v2514_v21  ;;  %v2688_v2 = vsel %vm2685_vm13, %v2687_v40, %v2683_v5  ;;  %v2315_v19 = vrot.slane %v2286_v50, 7  ;;  %vm2697_vm4 = vmor %vm2695_vm3, %vm2696_vm15 }
 0x2e2   : > { %v2692_v17 = vsub.f32 1.0, %v2691_v35  ;;  %v2887_v61 = vmul.f32 %v2688_v2, %v5076_v47  ;;  %v2551_v32 = vadd.f32 %v2540_v24, %v2421_v46  ;;  %v2008_v58 = vpop.f32.mrf.mxu1 }
 0x2e3   : > { %v5129_v15 = vsel %vm1391_vm12, %v2314_v18, %v2315_v19  ;;  %v2053_v29 = vrot.slane %v2008_v58, 1 }
 0x2e4   : > { %v2693_v3 = vmul.f32 %v3702_v6, %v2692_v17  ;;  %v2903_v53 = vpack.c.bf16 %v2887_v61, %v2887_v61  ;;  %v5132_v39 = vadd.f32 %v5040_v41, %v2551_v32 }
 0x2e5   : > { %v2076_v47 = vsel %vm1604_vm1, %v2052_v57, %v2053_v29 }
 0x2e6   : > { %v2694_v38 = vadd.f32 %v3702_v6, %v2693_v3  ;;  %v2468_v1 = vpop.f32.mrf.mxu3  ;;  %2919 = vst.msk [vmem:[%s5104_s16 + $0x8] sm:$0xf] %vm1108_vm2, %v2903_v53  ;;  %v3505_v21 = vmul.f32 -1.442695, %v5132_v39  ;;  %v2089_v40 = vadd.f32 %v2076_v47, %v4858_v43  ;;  %v3704_v58 = vpop.eup %3703 }
 0x2e7   : > { %v2633_v5 = vadd.f32 1.0, %v3704_v58 }
 0x2e8   : > { %v2698_v35 = vsel %vm2697_vm4, %v3702_v6, %v2694_v38  ;;  %3705 = vpow2.f32 %v3505_v21  ;;  %v2340_v3 = vadd.f32 %v4979_v34, %v2089_v40  ;;  %v2289_v54 = vpop.f32.mrf.mxu2  ;;  %v2515_v34 = vrot.slane %v2468_v1, 1 }
 0x2e9   : > { %v2703_v7 = vsel %vm2700_vm5, %v2702_v48, %v2698_v35  ;;  %v2316_v50 = vrot.slane %v2289_v54, 7  ;;  %3707 = vrcp.f32 %v2633_v5  ;;  %v5402_v40 = vrot.slane %v4885_v20, 7 }
 0x2ea   : > { %v2888_v18 = vmul.f32 %v2703_v7, %v5091_v62  ;;  %v2010_v46 = vpop.f32.mrf.mxu1  ;;  %v2714_v35 = vand.u32 2147483647, %v2633_v5  ;;  %vm2710_vm0 = vweird.f32 %v2633_v5 }
 0x2eb   : > { %v5144_v2 = vsel %vm1391_vm12, %v2315_v19, %v2316_v50  ;;  %v2054_v43 = vrot.slane %v2010_v46, 1  ;;  %v2422_v19 = vadd.f32 %v4915_v25, %v2340_v3 }
 0x2ec   : > { %v2904_v24 = vpack.c.bf16 %v2888_v18, %v2888_v18  ;;  %vm2715_vm8 = vcmp.eq.f32.partialorder %v2714_v35, 8.507059e+37 }
 0x2ed   : > { %v2075_v6 = vsel %vm1604_vm1, %v2053_v29, %v2054_v43 }
 0x2ee   : > { %2920 = vst.msk [vmem:[%s5104_s16 + $0xc] sm:$0xf] %vm1108_vm2, %v2904_v24  ;;  %v2471_v37 = vpop.f32.mrf.mxu3  ;;  %v3706_v17 = vpop.eup %3705  ;;  %v2090_v61 = vadd.f32 %v2075_v6, %v4873_v49  ;;  %v2716_v49 = vand.u32 2147483648, %v2633_v5 }
 0x2ef   : > { %v2516_v62 = vrot.slane %v2471_v37, 1  ;;  %v5151_v8 = vadd.f32 1.0, %v3706_v17  ;;  %v3708_v57 = vpop.eup %3707 }
 0x2f0   : > { %v2341_v32 = vadd.f32 %v4994_v14, %v2090_v61  ;;  %v2291_v53 = vpop.f32.mrf.mxu2  ;;  %v2706_v47 = vmul.f32 %v3708_v57, %v2633_v5  ;;  %vm2711_vm7 = vweird.f32 %v3708_v57  ;;  %v2717_v43 = vor.u32 1.1754944e-38, %v2716_v49 }
 0x2f1   : > { %v2539_v38 = vsel %vm1604_vm1, %v2515_v34, %v2516_v62  ;;  %3709 = vrcp.f32 %v5151_v8  ;;  %v2317_v29 = vrot.slane %v2291_v53, 7  ;;  %v2731_v5 = vand.u32 2147483648, %v5151_v8 }
 0x2f2   : > { %v2552_v48 = vadd.f32 %v2539_v38, %v2422_v19  ;;  %v2013_v1 = vpop.f32.mrf.mxu1  ;;  %v2707_v21 = vsub.f32 1.0, %v2706_v47  ;;  %v2423_v24 = vadd.f32 %v4930_v26, %v2341_v32  ;;  %vm2725_vm10 = vweird.f32 %v5151_v8 }
 0x2f3   : > { %v2333_v58 = vsel %vm1391_vm12, %v2317_v29, %v5402_v40  ;;  %vm2712_vm12 = vmor %vm2710_vm0, %vm2711_vm7 }
 0x2f4   : > { %v5163_v14 = vadd.f32 %v5040_v41, %v2552_v48  ;;  %v2708_v25 = vmul.f32 %v3708_v57, %v2707_v21  ;;  %v2334_v7 = vadd.f32 %v2333_v58, %v5011_v55  ;;  %v2732_v58 = vor.u32 1.1754944e-38, %v2731_v5 }
 0x2f6   : > { %v2473_v3 = vpop.f32.mrf.mxu3  ;;  %v3506_v54 = vmul.f32 -1.442695, %v5163_v14  ;;  %v2709_v46 = vadd.f32 %v3708_v57, %v2708_v25  ;;  %v2416_v20 = vadd.f32 %v4814_v12, %v2334_v7  ;;  %v2055_v12 = vrot.slane %v2013_v1, 1 }
 0x2f7   : > { %v2517_v18 = vrot.slane %v2473_v3, 1  ;;  %v3710_v50 = vpop.eup %3709 }
 0x2f8   : > { %v2721_v6 = vmul.f32 %v3710_v50, %v5151_v8  ;;  %3711 = vpow2.f32 %v3506_v54  ;;  %v2713_v55 = vsel %vm2712_vm12, %v3708_v57, %v2709_v46  ;;  %v2546_v17 = vadd.f32 %v5032_v23, %v2416_v20 }
 0x2f9   : > { %v2538_v37 = vsel %vm1604_vm1, %v2516_v62, %v2517_v18  ;;  %v2718_v61 = vsel %vm2715_vm8, %v2717_v43, %v2713_v55  ;;  %vm2726_vm6 = vweird.f32 %v3710_v50  ;;  %v2729_v23 = vand.u32 2147483647, %v5151_v8 }
 0x2fa   : > { %v2553_v34 = vadd.f32 %v2538_v37, %v2423_v24  ;;  %v2722_v53 = vsub.f32 1.0, %v2721_v6  ;;  %v2015_v19 = vpop.f32.mrf.mxu1  ;;  %v2889_v26 = vmul.f32 %v2718_v61, %v5120_v30  ;;  %v5176_v32 = vadd.f32 %v5040_v41, %v2546_v17  ;;  %vm2727_vm9 = vmor %vm2725_vm10, %vm2726_vm6 }
 0x2fb   : > { %v2056_v62 = vrot.slane %v2015_v19, 1  ;;  %vm2730_vm11 = vcmp.eq.f32.partialorder %v2729_v23, 8.507059e+37 }
 0x2fc   : > { %v5179_v38 = vadd.f32 %v5040_v41, %v2553_v34  ;;  %v2723_v57 = vmul.f32 %v3710_v50, %v2722_v53  ;;  %v2905_v47 = vpack.c.bf16 %v2889_v26, %v2889_v26  ;;  %v3500_v29 = vmul.f32 -1.442695, %v5176_v32 }
 0x2fd   : > { %v2074_v30 = vsel %vm1604_vm1, %v2055_v12, %v2056_v62 }
 0x2fe   : > { %v3507_v48 = vmul.f32 -1.442695, %v5179_v38  ;;  %v2476_v1 = vpop.f32.mrf.mxu3  ;;  %v3712_v21 = vpop.eup %3711  ;;  %v2724_v49 = vadd.f32 %v3710_v50, %v2723_v57  ;;  %v2091_v40 = vadd.f32 %v2074_v30, %v4897_v27  ;;  %2921 = vst.msk [vmem:[%s5104_s16 + $0x10] sm:$0xf] %vm1108_vm2, %v2905_v47  ;;  %3713 = vpow2.f32 %v3500_v29 }
 0x2ff   : > { %v2635_v25 = vadd.f32 1.0, %v3712_v21  ;;  %v2518_v34 = vrot.slane %v2476_v1, 1 }
 0x300   : > { %v2728_v35 = vsel %vm2727_vm9, %v3710_v50, %v2724_v49  ;;  %3715 = vpow2.f32 %v3507_v48  ;;  %v2342_v7 = vadd.f32 %v5006_v11, %v2091_v40 }
 0x301   : > { %v2733_v3 = vsel %vm2730_vm11, %v2732_v58, %v2728_v35  ;;  %3717 = vrcp.f32 %v2635_v25  ;;  %v2744_v17 = vand.u32 2147483647, %v2635_v25  ;;  %v2746_v61 = vand.u32 2147483648, %v2635_v25 }
 0x302   : > { %v2890_v54 = vmul.f32 %v2733_v3, %v5132_v39  ;;  %v2018_v18 = vpop.f32.mrf.mxu1  ;;  %v2424_v53 = vadd.f32 %v4947_v33, %v2342_v7  ;;  %vm2740_vm13 = vweird.f32 %v2635_v25 }
 0x303   : > { %v2057_v8 = vrot.slane %v2018_v18, 1  ;;  %vm5207_vm15 = vcmp.eq.f32.partialorder %v2744_v17, 8.507059e+37  ;;  %v2747_v33 = vor.u32 1.1754944e-38, %v2746_v61 }
 0x304   : > { %v2906_v46 = vpack.c.bf16 %v2890_v54, %v2890_v54  ;;  %v3714_v27 = vpop.eup %3713 }
 0x305   : > { %v2073_v20 = vsel %vm1604_vm1, %v2056_v62, %v2057_v8  ;;  %v5196_v50 = vadd.f32 1.0, %v3714_v27 }
 0x306   : > { %v2478_v24 = vpop.f32.mrf.mxu3  ;;  %v3716_v43 = vpop.eup %3715  ;;  %2922 = vst.msk [vmem:[%s5104_s16 + $0x14] sm:$0xf] %vm1108_vm2, %v2906_v46  ;;  %v2092_v11 = vadd.f32 %v2073_v20, %v4908_v31 }
 0x307   : > { %v3718_v6 = vpop.eup %3717  ;;  %v5198_v37 = vadd.f32 1.0, %v3716_v43  ;;  %v2519_v55 = vrot.slane %v2478_v24, 1  ;;  %3719 = vrcp.f32 %v5196_v50  ;;  %v2654_v29 = vand.u32 2147483647, %v5196_v50 }
 0x308   : > { %v2736_v39 = vmul.f32 %v3718_v6, %v2635_v25  ;;  %v2343_v19 = vadd.f32 %v5018_v13, %v2092_v11  ;;  %vm2741_vm14 = vweird.f32 %v3718_v6  ;;  %v2656_v21 = vand.u32 2147483648, %v5196_v50 }
 0x309   : > { %3721 = vrcp.f32 %v5198_v37  ;;  %v2537_v26 = vsel %vm1604_vm1, %v2518_v34, %v2519_v55  ;;  %vm2742_vm3 = vmor %vm2740_vm13, %vm2741_vm14  ;;  %v2761_v25 = vand.u32 2147483648, %v5198_v37  ;;  %vm2650_vm5 = vweird.f32 %v5196_v50 }
 0x30a   : > { %v2020_v5 = vpop.f32.mrf.mxu1  ;;  %v2737_v12 = vsub.f32 1.0, %v2736_v39  ;;  %v2554_v62 = vadd.f32 %v2537_v26, %v2424_v53  ;;  %v2425_v40 = vadd.f32 %v4960_v0, %v2343_v19  ;;  %vm2755_vm12 = vweird.f32 %v5198_v37 }
 0x30b   : > { %v2058_v18 = vrot.slane %v2020_v5, 1  ;;  %vm2655_vm8 = vcmp.eq.f32.partialorder %v2654_v29, 8.507059e+37  ;;  %v2762_v19 = vor.u32 1.1754944e-38, %v2761_v25 }
 0x30c   : > { %v2738_v31 = vmul.f32 %v3718_v6, %v2737_v12  ;;  %v5213_v48 = vadd.f32 %v5040_v41, %v2554_v62 }
 0x30d   : > { %v3720_v47 = vpop.eup %3719 }
 0x30e   : > { %v2481_v23 = vpop.f32.mrf.mxu3  ;;  %v2646_v1 = vmul.f32 %v3720_v47, %v5196_v50  ;;  %v2739_v49 = vadd.f32 %v3718_v6, %v2738_v31  ;;  %v3508_v35 = vmul.f32 -1.442695, %v5213_v48  ;;  %vm2651_vm4 = vweird.f32 %v3720_v47 }
 0x30f   : > { %v2520_v13 = vrot.slane %v2481_v23, 1  ;;  %v3722_v30 = vpop.eup %3721  ;;  %vm2652_vm0 = vmor %vm2650_vm5, %vm2651_vm4 }
 0x310   : > { %v2751_v58 = vmul.f32 %v3722_v30, %v5198_v37  ;;  %v2647_v3 = vsub.f32 1.0, %v2646_v1  ;;  %v2743_v54 = vsel %vm2742_vm3, %v3718_v6, %v2739_v49  ;;  %3723 = vpow2.f32 %v3508_v35 }
 0x311   : > { %v2536_v7 = vsel %vm1604_vm1, %v2519_v55, %v2520_v13  ;;  %v2748_v46 = vsel %vm5207_vm15, %v2747_v33, %v2743_v54  ;;  %vm2756_vm7 = vweird.f32 %v3722_v30  ;;  %v2759_v55 = vand.u32 2147483647, %v5198_v37 }
 0x312   : > { %v2555_v8 = vadd.f32 %v2536_v7, %v2425_v40  ;;  %v2752_v27 = vsub.f32 1.0, %v2751_v58  ;;  %v2023_v0 = vpop.f32.mrf.mxu1  ;;  %v2648_v20 = vmul.f32 %v3720_v47, %v2647_v3  ;;  %v2891_v24 = vmul.f32 %v2748_v46, %v5163_v14  ;;  %vm2757_vm6 = vmor %vm2755_vm12, %vm2756_vm7 }
 0x313   : > { %v2059_v11 = vrot.slane %v2023_v0, 1  ;;  %v2657_v14 = vor.u32 1.1754944e-38, %v2656_v21  ;;  %vm2760_vm10 = vcmp.eq.f32.partialorder %v2759_v55, 8.507059e+37 }
 0x314   : > { %v5227_v43 = vadd.f32 %v5040_v41, %v2555_v8  ;;  %v2753_v6 = vmul.f32 %v3722_v30, %v2752_v27  ;;  %v2649_v39 = vadd.f32 %v3720_v47, %v2648_v20  ;;  %v2907_v17 = vpack.c.bf16 %v2891_v24, %v2891_v24 }
 0x315   : > { %v2072_v61 = vsel %vm1604_vm1, %v2058_v18, %v2059_v11 }
 0x316   : > { %v3509_v34 = vmul.f32 -1.442695, %v5227_v43  ;;  %v2483_v53 = vpop.f32.mrf.mxu3  ;;  %v2754_v5 = vadd.f32 %v3722_v30, %v2753_v6  ;;  %v2093_v50 = vadd.f32 %v2072_v61, %v4927_v59  ;;  %v2653_v12 = vsel %vm2652_vm0, %v3720_v47, %v2649_v39  ;;  %2923 = vst.msk [vmem:[%s5104_s16 + $0x18] sm:$0xf] %vm1108_vm2, %v2907_v17  ;;  %v3724_v26 = vpop.eup %3723 }
 0x317   : > { %v2658_v62 = vsel %vm2655_vm8, %v2657_v14, %v2653_v12  ;;  %v2637_v59 = vadd.f32 1.0, %v3724_v26  ;;  %v2521_v40 = vrot.slane %v2483_v53, 1 }
 0x318   : > { %3725 = vpow2.f32 %v3509_v34  ;;  %v2758_v31 = vsel %vm2757_vm6, %v3722_v30, %v2754_v5  ;;  %v2344_v57 = vadd.f32 %v5048_v45, %v2093_v50  ;;  %v2885_v37 = vmul.f32 %v2658_v62, %v5176_v32 }
 0x319   : > { %v2763_v23 = vsel %vm2760_vm10, %v2762_v19, %v2758_v31  ;;  %3727 = vrcp.f32 %v2637_v59  ;;  %v2774_v46 = vand.u32 2147483647, %v2637_v59  ;;  %v2776_v27 = vand.u32 2147483648, %v2637_v59 }
 0x31a   : > { %v2892_v47 = vmul.f32 %v2763_v23, %v5179_v38  ;;  %v2025_v29 = vpop.f32.mrf.mxu1  ;;  %v2901_v33 = vpack.c.bf16 %v2885_v37, %v2885_v37  ;;  %v2426_v35 = vadd.f32 %v4975_v10, %v2344_v57  ;;  %vm2770_vm11 = vweird.f32 %v2637_v59 }
 0x31b   : > { %v2060_v1 = vrot.slane %v2025_v29, 1  ;;  %vm2775_vm13 = vcmp.eq.f32.partialorder %v2774_v46, 8.507059e+37  ;;  %v2777_v39 = vor.u32 1.1754944e-38, %v2776_v27 }
 0x31c   : > { %v2908_v13 = vpack.c.bf16 %v2892_v47, %v2892_v47  ;;  %2917 = vst.msk [vmem:[%s5104_s16] sm:$0xf] %vm1108_vm2, %v2901_v33 }
 0x31d   : > { %v2071_v45 = vsel %vm1604_vm1, %v2059_v11, %v2060_v1 }
 0x31e   : > { %v3726_v21 = vpop.eup %3725  ;;  %v2486_v49 = vpop.f32.mrf.mxu3  ;;  %2924 = vst.msk [vmem:[%s5104_s16 + $0x1c] sm:$0xf] %vm1108_vm2, %v2908_v13  ;;  %v2094_v58 = vadd.f32 %v2071_v45, %v4938_v22 }
 0x31f   : > { %v2638_v30 = vadd.f32 1.0, %v3726_v21  ;;  %v2522_v32 = vrot.slane %v2486_v49, 1  ;;  %v3728_v38 = vpop.eup %3727 }
 0x320   : > { %v2345_v25 = vadd.f32 %v5066_v16, %v2094_v58  ;;  %v2766_v3 = vmul.f32 %v3728_v38, %v2637_v59  ;;  %vm2771_vm9 = vweird.f32 %v3728_v38 }
 0x321   : > { %3729 = vrcp.f32 %v2638_v30  ;;  %v2535_v7 = vsel %vm1604_vm1, %v2521_v40, %v2522_v32  ;;  %vm2772_vm14 = vmor %vm2770_vm11, %vm2771_vm9  ;;  %v2789_v61 = vand.u32 2147483647, %v2638_v30  ;;  %v2791_v5 = vand.u32 2147483648, %v2638_v30 }
 0x322   : > { %v2028_v54 = vpop.f32.mrf.mxu1  ;;  %v2556_v18 = vadd.f32 %v2535_v7, %v2426_v35  ;;  %v2767_v8 = vsub.f32 1.0, %v2766_v3  ;;  %v2427_v6 = vadd.f32 %v4988_v9, %v2345_v25  ;;  %vm2785_vm3 = vweird.f32 %v2638_v30 }
 0x323   : > { %v2061_v50 = vrot.slane %v2028_v54, 1  ;;  %v2792_v29 = vor.u32 1.1754944e-38, %v2791_v5  ;;  %vm2790_vm5 = vcmp.eq.f32.partialorder %v2789_v61, 8.507059e+37 }
 0x324   : > { %v5255_v0 = vadd.f32 %v5040_v41, %v2556_v18  ;;  %v2768_v24 = vmul.f32 %v3728_v38, %v2767_v8 }
 0x326   : > { %v2488_v20 = vpop.f32.mrf.mxu3  ;;  %v3510_v10 = vmul.f32 -1.442695, %v5255_v0  ;;  %v2769_v55 = vadd.f32 %v3728_v38, %v2768_v24 }
 0x327   : > { %v3730_v22 = vpop.eup %3729  ;;  %v2523_v11 = vrot.slane %v2488_v20, 1 }
 0x328   : > { %v2781_v16 = vmul.f32 %v3730_v22, %v2638_v30  ;;  %3731 = vpow2.f32 %v3510_v10  ;;  %v2773_v14 = vsel %vm2772_vm14, %v3728_v38, %v2769_v55  ;;  %vm2786_vm15 = vweird.f32 %v3730_v22 }
 0x329   : > { %v2534_v17 = vsel %vm1604_vm1, %v2522_v32, %v2523_v11  ;;  %v2778_v19 = vsel %vm2775_vm13, %v2777_v39, %v2773_v14  ;;  %vm2787_vm4 = vmor %vm2785_vm3, %vm2786_vm15 }
 0x32a   : > { %v2782_v34 = vsub.f32 1.0, %v2781_v16  ;;  %v2557_v53 = vadd.f32 %v2534_v17, %v2427_v6  ;;  %v2030_v12 = vpop.f32.mrf.mxu1  ;;  %v2893_v31 = vmul.f32 %v2778_v19, %v5213_v48 }
 0x32b   : > { %v2062_v62 = vrot.slane %v2030_v12, 1 }
 0x32c   : > { %v2783_v26 = vmul.f32 %v3730_v22, %v2782_v34  ;;  %v5262_v9 = vadd.f32 %v5040_v41, %v2557_v53  ;;  %v2909_v47 = vpack.c.bf16 %v2893_v31, %v2893_v31 }
 0x32d   : > { %v2070_v23 = vsel %vm1604_vm1, %v2061_v50, %v2062_v62 }
 0x32e   : > { %v2784_v57 = vadd.f32 %v3730_v22, %v2783_v26  ;;  %v3511_v37 = vmul.f32 -1.442695, %v5262_v9  ;;  %v2491_v59 = vpop.f32.mrf.mxu3  ;;  %v2095_v33 = vadd.f32 %v2070_v23, %v4957_v63  ;;  %v3732_v13 = vpop.eup %3731  ;;  %2925 = vst.msk [vmem:[%s5104_s16 + $0x20] sm:$0xf] %vm1108_vm2, %v2909_v47 }
 0x32f   : > { %v2639_v21 = vadd.f32 1.0, %v3732_v13  ;;  %v2524_v3 = vrot.slane %v2491_v59, 1 }
 0x330   : > { %v2788_v1 = vsel %vm2787_vm4, %v3730_v22, %v2784_v57  ;;  %3733 = vpow2.f32 %v3511_v37  ;;  %v2346_v49 = vadd.f32 %v5088_v4, %v2095_v33 }
 0x331   : > { %v2793_v48 = vsel %vm2790_vm5, %v2792_v29, %v2788_v1  ;;  %3735 = vrcp.f32 %v2639_v21  ;;  %v2804_v22 = vand.u32 2147483647, %v2639_v21  ;;  %v2806_v24 = vand.u32 2147483648, %v2639_v21 }
 0x332   : > { %v2894_v30 = vmul.f32 %v2793_v48, %v5227_v43  ;;  %v2033_v45 = vpop.f32.mrf.mxu1  ;;  %v2428_v4 = vadd.f32 %v5000_v44, %v2346_v49  ;;  %vm2800_vm0 = vweird.f32 %v2639_v21 }
 0x333   : > { %v2063_v40 = vrot.slane %v2033_v45, 1  ;;  %vm2805_vm8 = vcmp.eq.f32.partialorder %v2804_v22, 8.507059e+37  ;;  %v2807_v17 = vor.u32 1.1754944e-38, %v2806_v24 }
 0x334   : > { %v2910_v32 = vpack.c.bf16 %v2894_v30, %v2894_v30 }
 0x335   : > { %v2069_v63 = vsel %vm1604_vm1, %v2062_v62, %v2063_v40 }
 0x336   : > { %v3734_v58 = vpop.eup %3733  ;;  %2926 = vst.msk [vmem:[%s5104_s16 + $0x24] sm:$0xf] %vm1108_vm2, %v2910_v32  ;;  %v2493_v38 = vpop.f32.mrf.mxu3  ;;  %v2096_v35 = vadd.f32 %v2069_v63, %v4968_v51 }
 0x337   : > { %v2640_v25 = vadd.f32 1.0, %v3734_v58  ;;  %v2525_v7 = vrot.slane %v2493_v38, 1  ;;  %v3736_v54 = vpop.eup %3735 }
 0x338   : > { %v2796_v43 = vmul.f32 %v3736_v54, %v2639_v21  ;;  %v2347_v18 = vadd.f32 %v5108_v28, %v2096_v35  ;;  %vm2801_vm7 = vweird.f32 %v3736_v54 }
 0x339   : > { %3737 = vrcp.f32 %v2640_v25  ;;  %v2533_v8 = vsel %vm1604_vm1, %v2524_v3, %v2525_v7  ;;  %vm2802_vm12 = vmor %vm2800_vm0, %vm2801_vm7  ;;  %v2819_v14 = vand.u32 2147483647, %v2640_v25  ;;  %v2821_v12 = vand.u32 2147483648, %v2640_v25 }
 0x33a   : > { %v2558_v46 = vadd.f32 %v2533_v8, %v2428_v4  ;;  %v2035_v27 = vpop.f32.mrf.mxu1  ;;  %v2797_v20 = vsub.f32 1.0, %v2796_v43  ;;  %v2429_v39 = vadd.f32 %v5013_v42, %v2347_v18  ;;  %vm2815_vm10 = vweird.f32 %v2640_v25 }
 0x33b   : > { %v2064_v19 = vrot.slane %v2035_v27, 1  ;;  %v2822_v13 = vor.u32 1.1754944e-38, %v2821_v12  ;;  %vm2820_vm11 = vcmp.eq.f32.partialorder %v2819_v14, 8.507059e+37  ;;  %v3759_v14 = vld [vmem:[%s5350_s6] ss:$0 sm:$0xff] }
 0x33c   : > { %v5284_v11 = vadd.f32 %v5040_v41, %v2558_v46  ;;  %v2798_v51 = vmul.f32 %v3736_v54, %v2797_v20 }
 0x33e   : > { %v2496_v16 = vpop.f32.mrf.mxu3  ;;  %v3512_v44 = vmul.f32 -1.442695, %v5284_v11  ;;  %v2799_v55 = vadd.f32 %v3736_v54, %v2798_v51 }
 0x33f   : > { %v3738_v10 = vpop.eup %3737  ;;  %v2526_v6 = vrot.slane %v2496_v16, 1 }
 0x340   : > { %v2811_v28 = vmul.f32 %v3738_v10, %v2640_v25  ;;  %3739 = vpow2.f32 %v3512_v44  ;;  %v2803_v61 = vsel %vm2802_vm12, %v3736_v54, %v2799_v55  ;;  %vm2816_vm6 = vweird.f32 %v3738_v10 }
 0x341   : > { %v2532_v34 = vsel %vm1604_vm1, %v2525_v7, %v2526_v6  ;;  %v2808_v50 = vsel %vm2805_vm8, %v2807_v17, %v2803_v61  ;;  %vm2817_vm9 = vmor %vm2815_vm10, %vm2816_vm6 }
 0x342   : > { %v2812_v53 = vsub.f32 1.0, %v2811_v28  ;;  %v2559_v5 = vadd.f32 %v2532_v34, %v2429_v39  ;;  %v2038_v26 = vpop.f32.mrf.mxu1  ;;  %v2895_v62 = vmul.f32 %v2808_v50, %v5255_v0 }
 0x343   : > { %v2065_v57 = vrot.slane %v2038_v26, 1 }
 0x344   : > { %v2813_v42 = vmul.f32 %v3738_v10, %v2812_v53  ;;  %v5292_v31 = vadd.f32 %v5040_v41, %v2559_v5  ;;  %v2911_v37 = vpack.c.bf16 %v2895_v62, %v2895_v62 }
 0x345   : > { %v2068_v47 = vsel %vm1604_vm1, %v2064_v19, %v2065_v57 }
 0x346   : > { %v2814_v23 = vadd.f32 %v3738_v10, %v2813_v42  ;;  %v3513_v59 = vmul.f32 -1.442695, %v5292_v31  ;;  %v2498_v29 = vpop.f32.mrf.mxu3  ;;  %v3740_v33 = vpop.eup %3739  ;;  %v2097_v0 = vadd.f32 %v2068_v47, %v4985_v60  ;;  %2927 = vst.msk [vmem:[%s5104_s16 + $0x28] sm:$0xf] %vm1108_vm2, %v2911_v37 }
 0x347   : > { %v2641_v48 = vadd.f32 1.0, %v3740_v33  ;;  %v2527_v3 = vrot.slane %v2498_v29, 1 }
 0x348   : > { %v2818_v1 = vsel %vm2817_vm9, %v3738_v10, %v2814_v23  ;;  %3741 = vpow2.f32 %v3513_v59  ;;  %v2348_v49 = vadd.f32 %v5129_v15, %v2097_v0  ;;  %v5405_v10 = vld [vmem:[#allocation5_spill] sm:$0xff] }
 0x349   : > { %v2823_v21 = vsel %vm2820_vm11, %v2822_v13, %v2818_v1  ;;  %3743 = vrcp.f32 %v2641_v48  ;;  %v2836_v8 = vand.u32 2147483648, %v2641_v48  ;;  %v2834_v27 = vand.u32 2147483647, %v2641_v48 }
 0x34a   : > { %v2896_v30 = vmul.f32 %v2823_v21, %v5262_v9  ;;  %v2040_v45 = vpop.f32.mrf.mxu1  ;;  %v2430_v9 = vadd.f32 %v5044_v56, %v2348_v49  ;;  %vm2830_vm14 = vweird.f32 %v2641_v48 }
 0x34b   : > { %v2066_v40 = vrot.slane %v2040_v45, 1  ;;  %v2837_v56 = vor.u32 1.1754944e-38, %v2836_v8  ;;  %vm2835_vm3 = vcmp.eq.f32.partialorder %v2834_v27, 8.507059e+37 }
 0x34c   : > { %v2912_v32 = vpack.c.bf16 %v2896_v30, %v2896_v30 }
 0x34d   : > { %v2067_v60 = vsel %vm1604_vm1, %v2065_v57, %v2066_v40 }
 0x34e   : > { %v3742_v58 = vpop.eup %3741  ;;  %2928 = vst.msk [vmem:[%s5104_s16 + $0x2c] sm:$0xf] %vm1108_vm2, %v2912_v32  ;;  %v2501_v63 = vpop.f32.mrf.mxu3  ;;  %v2098_v25 = vadd.f32 %v2067_v60, %v4996_v36 }
 0x34f   : > { %v2642_v38 = vadd.f32 1.0, %v3742_v58  ;;  %v2528_v35 = vrot.slane %v2501_v63, 1  ;;  %v3744_v7 = vpop.eup %3743 }
 0x350   : > { %v2826_v15 = vmul.f32 %v3744_v7, %v2641_v48  ;;  %v2349_v54 = vadd.f32 %v5144_v2, %v2098_v25  ;;  %vm2831_vm13 = vweird.f32 %v3744_v7 }
 0x351   : > { %3745 = vrcp.f32 %v2642_v38  ;;  %v2531_v4 = vsel %vm1604_vm1, %v2527_v3, %v2528_v35  ;;  %vm2832_vm15 = vmor %vm2830_vm14, %vm2831_vm13  ;;  %v2851_v34 = vand.u32 2147483648, %v2642_v38  ;;  %v2849_v53 = vand.u32 2147483647, %v2642_v38 }
 0x352   : > { %v2827_v43 = vsub.f32 1.0, %v2826_v15  ;;  %v2560_v18 = vadd.f32 %v2531_v4, %v2430_v9  ;;  %v2431_v44 = vadd.f32 %v5405_v10, %v2349_v54  ;;  %vm2845_vm5 = vweird.f32 %v2642_v38 }
 0x353   : > { %v2852_v26 = vor.u32 1.1754944e-38, %v2851_v34  ;;  %vm2850_vm7 = vcmp.eq.f32.partialorder %v2849_v53, 8.507059e+37 }
 0x354   : > { %v2828_v46 = vmul.f32 %v3744_v7, %v2827_v43  ;;  %v2579_v36 = vadd.f32 %v5040_v41, %v2560_v18 }
 0x356   : > { %v2503_v20 = vpop.f32.mrf.mxu3  ;;  %v2829_v24 = vadd.f32 %v3744_v7, %v2828_v46  ;;  %v3514_v51 = vmul.f32 -1.442695, %v2579_v36 }
 0x357   : > { %v3746_v22 = vpop.eup %3745  ;;  %v2529_v16 = vrot.slane %v2503_v20, 1 }
 0x358   : > { %v2841_v2 = vmul.f32 %v3746_v22, %v2642_v38  ;;  %v2833_v6 = vsel %vm2832_vm15, %v3744_v7, %v2829_v24  ;;  %3747 = vpow2.f32 %v3514_v51  ;;  %vm2846_vm4 = vweird.f32 %v3746_v22 }
 0x359   : > { %v2530_v55 = vsel %vm1604_vm1, %v2528_v35, %v2529_v16  ;;  %v2838_v28 = vsel %vm2835_vm3, %v2837_v56, %v2833_v6  ;;  %vm2847_vm1 = vmor %vm2845_vm5, %vm2846_vm4 }
 0x35a   : > { %v2842_v41 = vsub.f32 1.0, %v2841_v2  ;;  %v2561_v39 = vadd.f32 %v2530_v55, %v2431_v44  ;;  %v2897_v17 = vmul.f32 %v2838_v28, %v5284_v11 }
 0x35c   : > { %v2843_v61 = vmul.f32 %v3746_v22, %v2842_v41  ;;  %v2580_v5 = vadd.f32 %v3759_v14, %v2561_v39  ;;  %v2913_v50 = vpack.c.bf16 %v2897_v17, %v2897_v17 }
 0x35e   : > { %v2844_v12 = vadd.f32 %v3746_v22, %v2843_v61  ;;  %v3515_v52 = vmul.f32 -1.442695, %v2580_v5  ;;  %v3748_v19 = vpop.eup %3747  ;;  %2929 = vst.msk [vmem:[%s5104_s16 + $0x30] sm:$0xf] %vm1108_vm2, %v2913_v50 }
 0x35f   : > { %v2643_v62 = vadd.f32 1.0, %v3748_v19 }
 0x360   : > { %v2848_v11 = vsel %vm2847_vm1, %v3746_v22, %v2844_v12  ;;  %3749 = vpow2.f32 %v3515_v52 }
 0x361   : > { %v2853_v42 = vsel %vm2850_vm7, %v2852_v26, %v2848_v11  ;;  %3751 = vrcp.f32 %v2643_v62  ;;  %v2866_v13 = vand.u32 2147483648, %v2643_v62  ;;  %v2864_v1 = vand.u32 2147483647, %v2643_v62 }
 0x362   : > { %v2898_v57 = vmul.f32 %v2853_v42, %v5292_v31  ;;  %vm2860_vm12 = vweird.f32 %v2643_v62 }
 0x363   : > { %v2867_v31 = vor.u32 1.1754944e-38, %v2866_v13  ;;  %vm2865_vm6 = vcmp.eq.f32.partialorder %v2864_v1, 8.507059e+37 }
 0x364   : > { %v2914_v37 = vpack.c.bf16 %v2898_v57, %v2898_v57 }
 0x366   : > { %v3750_v23 = vpop.eup %3749  ;;  %2930 = vst.msk [vmem:[%s5104_s16 + $0x34] sm:$0xf] %vm1108_vm2, %v2914_v37 }
 0x367   : > { %v2644_v59 = vadd.f32 1.0, %v3750_v23  ;;  %v3752_v47 = vpop.eup %3751 }
 0x368   : > { %v2856_v29 = vmul.f32 %v3752_v47, %v2643_v62  ;;  %vm2861_vm0 = vweird.f32 %v3752_v47 }
 0x369   : > { %3753 = vrcp.f32 %v2644_v59  ;;  %vm2862_vm8 = vmor %vm2860_vm12, %vm2861_vm0  ;;  %v2881_v58 = vand.u32 2147483648, %v2644_v59  ;;  %v2879_v63 = vand.u32 2147483647, %v2644_v59  ;;  %vm2875_vm9 = vweird.f32 %v2644_v59 }
 0x36a   : > { %v2857_v33 = vsub.f32 1.0, %v2856_v29 }
 0x36b   : > { %v2882_v35 = vor.u32 1.1754944e-38, %v2881_v58  ;;  %vm2880_vm13 = vcmp.eq.f32.partialorder %v2879_v63, 8.507059e+37 }
 0x36c   : > { %v2858_v0 = vmul.f32 %v3752_v47, %v2857_v33 }
 0x36e   : > { %v2859_v21 = vadd.f32 %v3752_v47, %v2858_v0 }
 0x36f   : > { %v3754_v48 = vpop.eup %3753 }
 0x370   : > { %v2871_v49 = vmul.f32 %v3754_v48, %v2644_v59  ;;  %v2863_v30 = vsel %vm2862_vm8, %v3752_v47, %v2859_v21  ;;  %vm2876_vm10 = vweird.f32 %v3754_v48 }
 0x371   : > { %v2868_v45 = vsel %vm2865_vm6, %v2867_v31, %v2863_v30  ;;  %vm2877_vm11 = vmor %vm2875_vm9, %vm2876_vm10 }
 0x372   : > { %v2872_v32 = vsub.f32 1.0, %v2871_v49  ;;  %v2899_v40 = vmul.f32 %v2868_v45, %v2579_v36 }
 0x374   : > { %v2873_v60 = vmul.f32 %v3754_v48, %v2872_v32  ;;  %v2915_v38 = vpack.c.bf16 %v2899_v40, %v2899_v40 }
 0x376   : > { %v2874_v25 = vadd.f32 %v3754_v48, %v2873_v60  ;;  %2931 = vst.msk [vmem:[%s5104_s16 + $0x38] sm:$0xf] %vm1108_vm2, %v2915_v38 }
 0x378   : > { %v2878_v7 = vsel %vm2877_vm11, %v3754_v48, %v2874_v25 }
 0x379   : > { %v2883_v3 = vsel %vm2880_vm13, %v2882_v35, %v2878_v7 }
 0x37a   : > { %v2900_v15 = vmul.f32 %v2883_v3, %v2580_v5 }
 0x37c   : > { %v2916_v9 = vpack.c.bf16 %v2900_v15, %v2900_v15 }
 0x37e   : > { %2932 = vst.msk [vmem:[%s5104_s16 + $0x3c] sm:$0xf] %vm1108_vm2, %v2916_v9 }
 0x37f PF: > { %s19_s9 = sadd.s32 1, %s3798_s9   ;;  %s5406_s27 = smov %s3790_s29 }
 0x380   : > { %p16_p12 = scmp.ge.s32.totalorder %s19_s9, 6   ;;  %s5407_s28 = smov %s3794_s30 }
 0x381   : > { %s5408_s29 = smov %s5411_s10  ;;  %s5409_s30 = smov %s5415_s11 }
 0x382   :  { %18 = sbr.rel (!%p16_p12) target bundleno = 3 (0x3), region = 107 }

</bundles_post_ra>
